<compile_context>
chip_gen: v7x
topology: tpu7x:2x2x1
jax: 0.10.0
libtpu: 0.0.40
codegen_flags: <defaults>
</compile_context>

<pallas_src>
import math
import functools

import jax
import jax.numpy as jnp
from jax.experimental import pallas as pl
from jax.experimental.pallas import tpu as pltpu

NEG_INF = -1e30
LN_EPS = 1e-5


# ------------------------- shared math (pure jnp, used in-kernel) -------------------------

def _layernorm(x, g, b):
    mean = jnp.mean(x, axis=-1, keepdims=True)
    var = jnp.mean((x - mean) ** 2, axis=-1, keepdims=True)
    return (x - mean) * jax.lax.rsqrt(var + LN_EPS) * g + b


def _ffn(x, w1, b1, w2, b2):
    h = jnp.dot(x, w1, preferred_element_type=jnp.float32) + b1
    h = jnp.maximum(h, 0.0)
    return jnp.dot(h, w2, preferred_element_type=jnp.float32) + b2


def _mha(q_all, kv_all, wo, head_num, head_dim, causal):
    """q_all: (Sq, D) projected queries; kv_all: (Sk, 2D) with K=[:, :D], V=[:, D:].

    Output projection accumulated per head (wo: (H, head_dim, D)) so no lane
    concat of head fragments is needed.
    """
    Sq, D = q_all.shape
    Sk = kv_all.shape[0]
    scale = 1.0 / math.sqrt(head_dim)
    if causal:
        qi = jax.lax.broadcasted_iota(jnp.int32, (Sq, Sk), 0)
        ki = jax.lax.broadcasted_iota(jnp.int32, (Sq, Sk), 1)
        keep = ki <= qi
    out = jnp.zeros((Sq, D), jnp.float32)
    for h in range(head_num):  # static unroll (head_num=4)
        lo, hi = h * head_dim, (h + 1) * head_dim
        Qh = q_all[:, lo:hi]
        Kh = kv_all[:, lo:hi]
        Vh = kv_all[:, D + lo:D + hi]
        s = jax.lax.dot_general(Qh, Kh, (((1,), (1,)), ((), ())),
                                preferred_element_type=jnp.float32) * scale
        if causal:
            s = jnp.where(keep, s, NEG_INF)
        s = s - jnp.max(s, axis=-1, keepdims=True)
        p = jnp.exp(s)
        p = p / jnp.sum(p, axis=-1, keepdims=True)        # exact softmax
        ctx = jnp.dot(p, Vh, preferred_element_type=jnp.float32)   # (Sq, head_dim)
        out = out + jnp.dot(ctx, wo[h], preferred_element_type=jnp.float32)
    return out


# ------------------------------ the fused kernel --------------------------------

def _actformer_kernel(
        x_enc_ref, x_dec_ref,
        # encoder params (stacked along leading layer dim)
        ewqkv, ebqkv, ewo, eln1g, eln1b, efw1, efb1, efw2, efb2, eln2g, eln2b,
        # decoder params (stacked along leading layer dim)
        dwqkv, dbqkv, dwo, dln1g, dln1b,
        dcwq, dcbq, dcwkv, dcbkv, dcwo, dln2g, dln2b,
        dfw1, dfb1, dfw2, dfb2, dln3g, dln3b,
        # merged + lane-padded logit head
        w_head, b_head,
        out_ref, *, n_enc, n_dec, head_num):
    Se, D = x_enc_ref.shape[1], x_enc_ref.shape[2]
    Sd = x_dec_ref.shape[1]
    head_dim = D // head_num

    # ---------------- encoder stack (one batch element per grid step) ----------------
    x = x_enc_ref[...].reshape(Se, D)
    for l in range(n_enc):
        qkv = jnp.dot(x, ewqkv[l], preferred_element_type=jnp.float32) + ebqkv[l]
        a = _mha(qkv[:, :D], qkv[:, D:], ewo[l], head_num, head_dim, causal=False)
        x = _layernorm(a + x, eln1g[l], eln1b[l])
        f = _ffn(x, efw1[l], efb1[l], efw2[l], efb2[l])
        x = _layernorm(f + x, eln2g[l], eln2b[l])
    y = x  # encoder memory (Se, D), stays in VMEM

    # ---------------- decoder stack ----------------
    x = x_dec_ref[...].reshape(Sd, D)
    for l in range(n_dec):
        # causal self-attention (fused QKV projection)
        qkv = jnp.dot(x, dwqkv[l], preferred_element_type=jnp.float32) + dbqkv[l]
        a = _mha(qkv[:, :D], qkv[:, D:], dwo[l], head_num, head_dim, causal=True)
        x = _layernorm(a + x, dln1g[l], dln1b[l])
        # cross-attention (Q from decoder, fused KV projection of encoder memory)
        q = jnp.dot(x, dcwq[l], preferred_element_type=jnp.float32) + dcbq[l]
        kv = jnp.dot(y, dcwkv[l], preferred_element_type=jnp.float32) + dcbkv[l]
        a = _mha(q, kv, dcwo[l], head_num, head_dim, causal=False)
        x = _layernorm(a + x, dln2g[l], dln2b[l])
        # feed-forward
        f = _ffn(x, dfw1[l], dfb1[l], dfw2[l], dfb2[l])
        x = _layernorm(f + x, dln3g[l], dln3b[l])

    # merged (act|loc) logit head, lane-padded to a multiple of 128 -> dense store
    logits = jnp.dot(x, w_head[...], preferred_element_type=jnp.float32) + b_head[...]
    out_ref[...] = logits.reshape(out_ref.shape)


# ------------------------------ JAX-side glue (wrapper) --------------------------------

def _embed(p, loc_tokens, act_tokens, features, pe, pad_mask, dim):
    """Embedding lookups + feature projection + concat + scale + positional encoding.

    Kept in plain JAX: gathers have no clean Pallas equivalent and the 12/12/8
    concat is lane-misaligned (XLA handles it once, outside the kernel)."""
    l_vec = jnp.take(p['loc_emb'], loc_tokens, axis=0)
    a_vec = jnp.take(p['act_emb'], act_tokens, axis=0)
    femb = jnp.dot(features, p['wf']) + p['bf']
    emb = jnp.concatenate([l_vec, a_vec, femb], axis=-1)
    nonpad = (~pad_mask).astype(jnp.int32)
    positions = jnp.where(pad_mask, 0, jnp.cumsum(nonpad, axis=1) - 1)
    pe_use = pe[positions]                               # (B, S, dim)
    return emb * (dim ** 0.5) + pe_use


_ENC_NAMES = ['wqkv', 'bqkv', 'wo', 'ln1g', 'ln1b',
              'fw1', 'fb1', 'fw2', 'fb2', 'ln2g', 'ln2b']
_DEC_NAMES = ['wqkv', 'bqkv', 'wo', 'ln1g', 'ln1b',
              'cwq', 'cbq', 'cwkv', 'cbkv', 'cwo', 'ln2g', 'ln2b',
              'fw1', 'fb1', 'fw2', 'fb2', 'ln3g', 'ln3b']


def _const_spec(shape):
    nd = len(shape)
    return pl.BlockSpec(shape, lambda b, _nd=nd: (0,) * _nd)


def actformer_forward(params, cfg, enc_input_act, enc_input_loc, enc_feature,
                      dec_input_act, dec_input_loc, dec_feature):
    dim = cfg['dim']
    head_num = cfg['head_num']
    n_act = cfg['act_vocab_size'] + 4
    n_loc = cfg['loc_vocab_size'] + 4
    pe = params['pe']

    x_enc = _embed(params['enc_embed'], enc_input_loc, enc_input_act, enc_feature,
                   pe, enc_input_act == 4, dim)
    x_dec = _embed(params['dec_embed'], dec_input_loc, dec_input_act, dec_feature,
                   pe, dec_input_act == 4, dim)

    B, Se, _ = x_enc.shape
    _, Sd, _ = x_dec.shape
    enc, dec = params['enc'], params['dec']
    enc_args = [enc[n] for n in _ENC_NAMES]
    dec_args = [dec[n] for n in _DEC_NAMES]
    head_args = [params['w_head'], params['b_head']]
    weight_args = enc_args + dec_args + head_args

    HP = params['w_head'].shape[1]   # lane-padded head width (multiple of 128)

    kernel = functools.partial(_actformer_kernel,
                               n_enc=cfg['B_en'], n_dec=cfg['B_de'],
                               head_num=head_num)

    in_specs = ([pl.BlockSpec((1, Se, dim), lambda b: (b, 0, 0)),
                 pl.BlockSpec((1, Sd, dim), lambda b: (b, 0, 0))]
                + [_const_spec(a.shape) for a in weight_args])

    out = pl.pallas_call(
        kernel,
        out_shape=jax.ShapeDtypeStruct((B, Sd, HP), jnp.float32),
        grid=(B,),
        in_specs=in_specs,
        out_specs=pl.BlockSpec((1, Sd, HP), lambda b: (b, 0, 0)),
        compiler_params=pltpu.CompilerParams(
            dimension_semantics=("parallel",)),   # shards batch across v7x's 2 TCs
    )(x_enc, x_dec, *weight_args)

    act_logits = out[:, :, :n_act]
    loc_logits = out[:, :, n_act:n_act + n_loc]
    return act_logits, loc_logits


# ------------------------------ pure-JAX reference (sanity check) -------------------------

def reference_forward(params, cfg, enc_input_act, enc_input_loc, enc_feature,
                      dec_input_act, dec_input_loc, dec_feature):
    dim = cfg['dim']
    head_num = cfg['head_num']
    head_dim = dim // head_num
    n_act = cfg['act_vocab_size'] + 4
    n_loc = cfg['loc_vocab_size'] + 4
    pe = params['pe']
    x_enc = _embed(params['enc_embed'], enc_input_loc, enc_input_act, enc_feature,
                   pe, enc_input_act == 4, dim)
    x_dec = _embed(params['dec_embed'], dec_input_loc, dec_input_act, dec_feature,
                   pe, dec_input_act == 4, dim)
    enc, dec = params['enc'], params['dec']
    outs = []
    for b in range(x_enc.shape[0]):
        x = x_enc[b]
        for l in range(cfg['B_en']):
            qkv = x @ enc['wqkv'][l] + enc['bqkv'][l]
            a = _mha(qkv[:, :dim], qkv[:, dim:], enc['wo'][l], head_num, head_dim, False)
            x = _layernorm(a + x, enc['ln1g'][l], enc['ln1b'][l])
            f = _ffn(x, enc['fw1'][l], enc['fb1'][l], enc['fw2'][l], enc['fb2'][l])
            x = _layernorm(f + x, enc['ln2g'][l], enc['ln2b'][l])
        y = x
        x = x_dec[b]
        for l in range(cfg['B_de']):
            qkv = x @ dec['wqkv'][l] + dec['bqkv'][l]
            a = _mha(qkv[:, :dim], qkv[:, dim:], dec['wo'][l], head_num, head_dim, True)
            x = _layernorm(a + x, dec['ln1g'][l], dec['ln1b'][l])
            q = x @ dec['cwq'][l] + dec['cbq'][l]
            kv = y @ dec['cwkv'][l] + dec['cbkv'][l]
            a = _mha(q, kv, dec['cwo'][l], head_num, head_dim, False)
            x = _layernorm(a + x, dec['ln2g'][l], dec['ln2b'][l])
            f = _ffn(x, dec['fw1'][l], dec['fb1'][l], dec['fw2'][l], dec['fb2'][l])
            x = _layernorm(f + x, dec['ln3g'][l], dec['ln3b'][l])
        outs.append(x @ params['w_head'] + params['b_head'])
    out = jnp.stack(outs, 0)
    return out[:, :, :n_act], out[:, :, n_act:n_act + n_loc]


# ------------------------------ parameter init -------------------------------

def positional_encoding_table(dim, max_len=500):
    position = jnp.arange(max_len, dtype=jnp.float32)[:, None]
    div_term = jnp.exp(jnp.arange(0, dim, 2, dtype=jnp.float32) *
                       (-math.log(10000.0) / dim))
    pe = jnp.zeros((max_len, dim), jnp.float32)
    pe = pe.at[:, 0::2].set(jnp.sin(position * div_term))
    pe = pe.at[:, 1::2].set(jnp.cos(position * div_term))
    return pe


def init_params(key, cfg):
    dim = cfg['dim']
    head_num = cfg['head_num']
    head_dim = dim // head_num
    d_ff = cfg['d_ff']
    n_act = cfg['act_vocab_size'] + 4
    n_loc = cfg['loc_vocab_size'] + 4

    kb = [key]

    def nxt():
        kb[0], sub = jax.random.split(kb[0])
        return sub

    def lin(din, dout):
        w = jax.random.normal(nxt(), (din, dout), jnp.float32) * 0.02
        b = jax.random.normal(nxt(), (1, dout), jnp.float32) * 0.02
        return w, b

    def attn():
        wq, bq = lin(dim, dim)
        wk, bk = lin(dim, dim)
        wv, bv = lin(dim, dim)
        wo, _ = lin(dim, dim)   # output projection has no bias in the module
        return dict(
            wqkv=jnp.concatenate([wq, wk, wv], axis=1),    # (D, 3D)
            bqkv=jnp.concatenate([bq, bk, bv], axis=1),    # (1, 3D)
            wq=wq, bq=bq,
            wkv=jnp.concatenate([wk, wv], axis=1),         # (D, 2D)
            bkv=jnp.concatenate([bk, bv], axis=1),         # (1, 2D)
            wo=wo.reshape(head_num, head_dim, dim))        # (H, hd, D)

    def ln():
        return jnp.ones((1, dim), jnp.float32), jnp.zeros((1, dim), jnp.float32)

    def enc_layer():
        a = attn()
        w1, b1 = lin(dim, d_ff)
        w2, b2 = lin(d_ff, dim)
        g1, be1 = ln()
        g2, be2 = ln()
        return dict(wqkv=a['wqkv'], bqkv=a['bqkv'], wo=a['wo'],
                    ln1g=g1, ln1b=be1,
                    fw1=w1, fb1=b1, fw2=w2, fb2=b2,
                    ln2g=g2, ln2b=be2)

    def dec_layer():
        sa, ca = attn(), attn()
        w1, b1 = lin(dim, d_ff)
        w2, b2 = lin(d_ff, dim)
        g1, be1 = ln()
        g2, be2 = ln()
        g3, be3 = ln()
        return dict(wqkv=sa['wqkv'], bqkv=sa['bqkv'], wo=sa['wo'],
                    ln1g=g1, ln1b=be1,
                    cwq=ca['wq'], cbq=ca['bq'], cwkv=ca['wkv'], cbkv=ca['bkv'],
                    cwo=ca['wo'],
                    ln2g=g2, ln2b=be2,
                    fw1=w1, fb1=b1, fw2=w2, fb2=b2,
                    ln3g=g3, ln3b=be3)

    def stack(layers):
        return jax.tree_util.tree_map(lambda *xs: jnp.stack(xs, axis=0), *layers)

    def embed_params():
        wf, bf = lin(cfg['feature_dim'], cfg['feature_emb_dim'])
        return dict(
            loc_emb=jax.random.normal(nxt(), (n_loc, cfg['loc_emb_dim']),
                                      jnp.float32) * 0.02,
            act_emb=jax.random.normal(nxt(), (n_act, cfg['act_emb_dim']),
                                      jnp.float32) * 0.02,
            wf=wf, bf=bf)

    # merged logit head, lane-padded to a multiple of 128 for dense stores
    w_act, b_act = lin(dim, n_act)
    w_loc, b_loc = lin(dim, n_loc)
    HP = ((n_act + n_loc + 127) // 128) * 128
    w_head = (jnp.zeros((dim, HP), jnp.float32)
              .at[:, :n_act].set(w_act)
              .at[:, n_act:n_act + n_loc].set(w_loc))
    b_head = (jnp.zeros((1, HP), jnp.float32)
              .at[:, :n_act].set(b_act)
              .at[:, n_act:n_act + n_loc].set(b_loc))

    return dict(
        enc_embed=embed_params(),
        dec_embed=embed_params(),
        enc=stack([enc_layer() for _ in range(cfg['B_en'])]),
        dec=stack([dec_layer() for _ in range(cfg['B_de'])]),
        w_head=w_head, b_head=b_head,
        pe=positional_encoding_table(dim),
    )


# ----------------------------------- main -------------------------------------

if __name__ == "__main__":
    cfg = dict(loc_vocab_size=10, act_vocab_size=8,
               loc_emb_dim=12, act_emb_dim=12,
               feature_dim=6, feature_emb_dim=8,
               d_ff=64, head_num=4, B_en=2, B_de=2)
    cfg['dim'] = cfg['loc_emb_dim'] + cfg['act_emb_dim'] + cfg['feature_emb_dim']  # 32

    key = jax.random.PRNGKey(0)
    kp, k1, k2, k3, k4, k5, k6 = jax.random.split(key, 7)
    params = init_params(kp, cfg)

    B, Se, Sd = 2, 8, 8
    enc_input_act = jax.random.randint(k1, (B, Se), 0, cfg['act_vocab_size'] + 4)
    enc_input_loc = jax.random.randint(k2, (B, Se), 0, cfg['loc_vocab_size'] + 4)
    dec_input_act = jax.random.randint(k3, (B, Sd), 0, cfg['act_vocab_size'] + 4)
    dec_input_loc = jax.random.randint(k4, (B, Sd), 0, cfg['loc_vocab_size'] + 4)
    enc_feature = jax.random.normal(k5, (B, Se, cfg['feature_dim']), jnp.float32)
    dec_feature = jax.random.normal(k6, (B, Sd, cfg['feature_dim']), jnp.float32)

    inputs = (enc_input_act, enc_input_loc, enc_feature,
              dec_input_act, dec_input_loc, dec_feature)

    forward = jax.jit(lambda p, *inp: actformer_forward(p, cfg, *inp))
    act_out, loc_out = forward(params, *inputs)
    jax.block_until_ready((act_out, loc_out))

    assert act_out.shape == (B, Sd, cfg['act_vocab_size'] + 4)
    assert loc_out.shape == (B, Sd, cfg['loc_vocab_size'] + 4)
    assert jnp.all(jnp.isfinite(act_out)) and jnp.all(jnp.isfinite(loc_out))

    # sanity check against the pure-JAX reference (same math, XLA execution)
    ref_act, ref_loc = reference_forward(params, cfg, *inputs)
    max_diff = max(float(jnp.max(jnp.abs(act_out - ref_act))),
                   float(jnp.max(jnp.abs(loc_out - ref_loc))))
    assert max_diff < 5e-3, f"kernel/reference mismatch: {max_diff}"

    print("KERNEL_OK")
</pallas_src>

<mosaic_0001>
module attributes {stable_mosaic.version = 11 : i64} {
  func.func @_actformer_kernel(%arg0: i32, %arg1: memref<1x8x32xf32, #tpu.memory_space<vmem>>, %arg2: memref<1x8x32xf32, #tpu.memory_space<vmem>>, %arg3: memref<2x32x96xf32, #tpu.memory_space<vmem>>, %arg4: memref<2x1x96xf32, #tpu.memory_space<vmem>>, %arg5: memref<2x4x8x32xf32, #tpu.memory_space<vmem>>, %arg6: memref<2x1x32xf32, #tpu.memory_space<vmem>>, %arg7: memref<2x1x32xf32, #tpu.memory_space<vmem>>, %arg8: memref<2x32x64xf32, #tpu.memory_space<vmem>>, %arg9: memref<2x1x64xf32, #tpu.memory_space<vmem>>, %arg10: memref<2x64x32xf32, #tpu.memory_space<vmem>>, %arg11: memref<2x1x32xf32, #tpu.memory_space<vmem>>, %arg12: memref<2x1x32xf32, #tpu.memory_space<vmem>>, %arg13: memref<2x1x32xf32, #tpu.memory_space<vmem>>, %arg14: memref<2x32x96xf32, #tpu.memory_space<vmem>>, %arg15: memref<2x1x96xf32, #tpu.memory_space<vmem>>, %arg16: memref<2x4x8x32xf32, #tpu.memory_space<vmem>>, %arg17: memref<2x1x32xf32, #tpu.memory_space<vmem>>, %arg18: memref<2x1x32xf32, #tpu.memory_space<vmem>>, %arg19: memref<2x32x32xf32, #tpu.memory_space<vmem>>, %arg20: memref<2x1x32xf32, #tpu.memory_space<vmem>>, %arg21: memref<2x32x64xf32, #tpu.memory_space<vmem>>, %arg22: memref<2x1x64xf32, #tpu.memory_space<vmem>>, %arg23: memref<2x4x8x32xf32, #tpu.memory_space<vmem>>, %arg24: memref<2x1x32xf32, #tpu.memory_space<vmem>>, %arg25: memref<2x1x32xf32, #tpu.memory_space<vmem>>, %arg26: memref<2x32x64xf32, #tpu.memory_space<vmem>>, %arg27: memref<2x1x64xf32, #tpu.memory_space<vmem>>, %arg28: memref<2x64x32xf32, #tpu.memory_space<vmem>>, %arg29: memref<2x1x32xf32, #tpu.memory_space<vmem>>, %arg30: memref<2x1x32xf32, #tpu.memory_space<vmem>>, %arg31: memref<2x1x32xf32, #tpu.memory_space<vmem>>, %arg32: memref<32x128xf32, #tpu.memory_space<vmem>>, %arg33: memref<1x128xf32, #tpu.memory_space<vmem>>, %arg34: memref<1x8x128xf32, #tpu.memory_space<vmem>>) attributes {dimension_semantics = [#tpu.dimension_semantics<parallel>], iteration_bounds = array<i64: 2>, scalar_prefetch = 0 : i64, scratch_operands = 0 : i64, tpu.core_type = #tpu.core_type<tc>, window_params = [{transform_indices = @transform_0, window_bounds = array<i64: 1, 8, 32>}, {transform_indices = @transform_1, window_bounds = array<i64: 1, 8, 32>}, {pipeline_mode = #tpu.pipeline_mode<synchronous>, transform_indices = @transform_2, window_bounds = array<i64: 2, 32, 96>}, {pipeline_mode = #tpu.pipeline_mode<synchronous>, transform_indices = @transform_3, window_bounds = array<i64: 2, 1, 96>}, {pipeline_mode = #tpu.pipeline_mode<synchronous>, transform_indices = @transform_4, window_bounds = array<i64: 2, 4, 8, 32>}, {pipeline_mode = #tpu.pipeline_mode<synchronous>, transform_indices = @transform_5, window_bounds = array<i64: 2, 1, 32>}, {pipeline_mode = #tpu.pipeline_mode<synchronous>, transform_indices = @transform_6, window_bounds = array<i64: 2, 1, 32>}, {pipeline_mode = #tpu.pipeline_mode<synchronous>, transform_indices = @transform_7, window_bounds = array<i64: 2, 32, 64>}, {pipeline_mode = #tpu.pipeline_mode<synchronous>, transform_indices = @transform_8, window_bounds = array<i64: 2, 1, 64>}, {pipeline_mode = #tpu.pipeline_mode<synchronous>, transform_indices = @transform_9, window_bounds = array<i64: 2, 64, 32>}, {pipeline_mode = #tpu.pipeline_mode<synchronous>, transform_indices = @transform_10, window_bounds = array<i64: 2, 1, 32>}, {pipeline_mode = #tpu.pipeline_mode<synchronous>, transform_indices = @transform_11, window_bounds = array<i64: 2, 1, 32>}, {pipeline_mode = #tpu.pipeline_mode<synchronous>, transform_indices = @transform_12, window_bounds = array<i64: 2, 1, 32>}, {pipeline_mode = #tpu.pipeline_mode<synchronous>, transform_indices = @transform_13, window_bounds = array<i64: 2, 32, 96>}, {pipeline_mode = #tpu.pipeline_mode<synchronous>, transform_indices = @transform_14, window_bounds = array<i64: 2, 1, 96>}, {pipeline_mode = #tpu.pipeline_mode<synchronous>, transform_indices = @transform_15, window_bounds = array<i64: 2, 4, 8, 32>}, {pipeline_mode = #tpu.pipeline_mode<synchronous>, transform_indices = @transform_16, window_bounds = array<i64: 2, 1, 32>}, {pipeline_mode = #tpu.pipeline_mode<synchronous>, transform_indices = @transform_17, window_bounds = array<i64: 2, 1, 32>}, {pipeline_mode = #tpu.pipeline_mode<synchronous>, transform_indices = @transform_18, window_bounds = array<i64: 2, 32, 32>}, {pipeline_mode = #tpu.pipeline_mode<synchronous>, transform_indices = @transform_19, window_bounds = array<i64: 2, 1, 32>}, {pipeline_mode = #tpu.pipeline_mode<synchronous>, transform_indices = @transform_20, window_bounds = array<i64: 2, 32, 64>}, {pipeline_mode = #tpu.pipeline_mode<synchronous>, transform_indices = @transform_21, window_bounds = array<i64: 2, 1, 64>}, {pipeline_mode = #tpu.pipeline_mode<synchronous>, transform_indices = @transform_22, window_bounds = array<i64: 2, 4, 8, 32>}, {pipeline_mode = #tpu.pipeline_mode<synchronous>, transform_indices = @transform_23, window_bounds = array<i64: 2, 1, 32>}, {pipeline_mode = #tpu.pipeline_mode<synchronous>, transform_indices = @transform_24, window_bounds = array<i64: 2, 1, 32>}, {pipeline_mode = #tpu.pipeline_mode<synchronous>, transform_indices = @transform_25, window_bounds = array<i64: 2, 32, 64>}, {pipeline_mode = #tpu.pipeline_mode<synchronous>, transform_indices = @transform_26, window_bounds = array<i64: 2, 1, 64>}, {pipeline_mode = #tpu.pipeline_mode<synchronous>, transform_indices = @transform_27, window_bounds = array<i64: 2, 64, 32>}, {pipeline_mode = #tpu.pipeline_mode<synchronous>, transform_indices = @transform_28, window_bounds = array<i64: 2, 1, 32>}, {pipeline_mode = #tpu.pipeline_mode<synchronous>, transform_indices = @transform_29, window_bounds = array<i64: 2, 1, 32>}, {pipeline_mode = #tpu.pipeline_mode<synchronous>, transform_indices = @transform_30, window_bounds = array<i64: 2, 1, 32>}, {pipeline_mode = #tpu.pipeline_mode<synchronous>, transform_indices = @transform_31, window_bounds = array<i64: 32, 128>}, {pipeline_mode = #tpu.pipeline_mode<synchronous>, transform_indices = @transform_32, window_bounds = array<i64: 1, 128>}, {transform_indices = @transform_33, window_bounds = array<i64: 1, 8, 128>}]} {
    %c0 = arith.constant 0 : index
    %c0_0 = arith.constant 0 : index
    %c0_1 = arith.constant 0 : index
    %0 = vector.load %arg1[%c0, %c0_0, %c0_1] : memref<1x8x32xf32, #tpu.memory_space<vmem>>, vector<1x8x32xf32>
    %1 = vector.shape_cast %0 : vector<1x8x32xf32> to vector<8x32xf32>
    %c0_2 = arith.constant 0 : index
    %c0_3 = arith.constant 0 : index
    %c0_4 = arith.constant 0 : index
    %2 = vector.load %arg3[%c0_2, %c0_3, %c0_4] : memref<2x32x96xf32, #tpu.memory_space<vmem>>, vector<1x32x96xf32>
    %3 = vector.shape_cast %2 : vector<1x32x96xf32> to vector<32x96xf32>
    %cst = arith.constant dense<0.000000e+00> : vector<8x96xf32>
    %4 = tpu.matmul %1, %3, %cst {dimension_numbers = #tpu.dot_dimension_numbers<[1], [0], [0], [1], [0, 0, 1, 1], [], []>} : vector<8x32xf32>, vector<32x96xf32>, vector<8x96xf32> -> vector<8x96xf32>
    %c0_5 = arith.constant 0 : index
    %c0_6 = arith.constant 0 : index
    %c0_7 = arith.constant 0 : index
    %5 = vector.load %arg4[%c0_5, %c0_6, %c0_7] : memref<2x1x96xf32, #tpu.memory_space<vmem>>, vector<1x1x96xf32>
    %6 = vector.shape_cast %5 : vector<1x1x96xf32> to vector<1x96xf32>
    %7 = vector.broadcast %6 : vector<1x96xf32> to vector<8x96xf32>
    %8 = arith.addf %4, %7 : vector<8x96xf32>
    %9 = vector.extract_strided_slice %8 {offsets = [0, 0], sizes = [8, 32], strides = [1, 1]} : vector<8x96xf32> to vector<8x32xf32>
    %10 = vector.extract_strided_slice %8 {offsets = [0, 32], sizes = [8, 64], strides = [1, 1]} : vector<8x96xf32> to vector<8x64xf32>
    %c0_8 = arith.constant 0 : index
    %c0_9 = arith.constant 0 : index
    %c0_10 = arith.constant 0 : index
    %c0_11 = arith.constant 0 : index
    %11 = vector.load %arg5[%c0_8, %c0_9, %c0_10, %c0_11] : memref<2x4x8x32xf32, #tpu.memory_space<vmem>>, vector<1x4x8x32xf32>
    %12 = vector.shape_cast %11 : vector<1x4x8x32xf32> to vector<4x8x32xf32>
    %cst_12 = arith.constant 0.000000e+00 : f32
    %13 = vector.broadcast %cst_12 : f32 to vector<8x32xf32>
    %14 = vector.extract_strided_slice %9 {offsets = [0, 0], sizes = [8, 8], strides = [1, 1]} : vector<8x32xf32> to vector<8x8xf32>
    %15 = vector.extract_strided_slice %10 {offsets = [0, 0], sizes = [8, 8], strides = [1, 1]} : vector<8x64xf32> to vector<8x8xf32>
    %16 = vector.extract_strided_slice %10 {offsets = [0, 32], sizes = [8, 8], strides = [1, 1]} : vector<8x64xf32> to vector<8x8xf32>
    %cst_13 = arith.constant dense<0.000000e+00> : vector<8x8xf32>
    %17 = tpu.matmul %14, %15, %cst_13 {dimension_numbers = #tpu.dot_dimension_numbers<[1], [1], [0], [0], [0, 0, 1, 0], [], []>} : vector<8x8xf32>, vector<8x8xf32>, vector<8x8xf32> -> vector<8x8xf32>
    %cst_14 = arith.constant 0.353553385 : f32
    %18 = vector.broadcast %cst_14 : f32 to vector<8x8xf32>
    %19 = arith.mulf %17, %18 : vector<8x8xf32>
    %cst_15 = arith.constant dense<0xFF800000> : vector<8xf32>
    %20 = vector.multi_reduction <maximumf>, %19, %cst_15 [1] : vector<8x8xf32> to vector<8xf32>
    %21 = vector.shape_cast %20 : vector<8xf32> to vector<8x1xf32>
    %22 = vector.broadcast %21 : vector<8x1xf32> to vector<8x8xf32>
    %23 = arith.subf %19, %22 : vector<8x8xf32>
    %24 = math.exp %23 : vector<8x8xf32>
    %cst_16 = arith.constant dense<0.000000e+00> : vector<8xf32>
    %25 = vector.multi_reduction <add>, %24, %cst_16 [1] : vector<8x8xf32> to vector<8xf32>
    %26 = vector.shape_cast %25 : vector<8xf32> to vector<8x1xf32>
    %27 = vector.broadcast %26 : vector<8x1xf32> to vector<8x8xf32>
    %28 = arith.divf %24, %27 : vector<8x8xf32>
    %cst_17 = arith.constant dense<0.000000e+00> : vector<8x8xf32>
    %29 = tpu.matmul %28, %16, %cst_17 {dimension_numbers = #tpu.dot_dimension_numbers<[1], [0], [0], [1], [0, 0, 1, 1], [], []>} : vector<8x8xf32>, vector<8x8xf32>, vector<8x8xf32> -> vector<8x8xf32>
    %30 = vector.extract_strided_slice %12 {offsets = [0, 0, 0], sizes = [1, 8, 32], strides = [1, 1, 1]} : vector<4x8x32xf32> to vector<1x8x32xf32>
    %31 = vector.shape_cast %30 : vector<1x8x32xf32> to vector<8x32xf32>
    %cst_18 = arith.constant dense<0.000000e+00> : vector<8x32xf32>
    %32 = tpu.matmul %29, %31, %cst_18 {dimension_numbers = #tpu.dot_dimension_numbers<[1], [0], [0], [1], [0, 0, 1, 1], [], []>} : vector<8x8xf32>, vector<8x32xf32>, vector<8x32xf32> -> vector<8x32xf32>
    %33 = arith.addf %13, %32 : vector<8x32xf32>
    %34 = vector.extract_strided_slice %9 {offsets = [0, 8], sizes = [8, 8], strides = [1, 1]} : vector<8x32xf32> to vector<8x8xf32>
    %35 = vector.extract_strided_slice %10 {offsets = [0, 8], sizes = [8, 8], strides = [1, 1]} : vector<8x64xf32> to vector<8x8xf32>
    %36 = vector.extract_strided_slice %10 {offsets = [0, 40], sizes = [8, 8], strides = [1, 1]} : vector<8x64xf32> to vector<8x8xf32>
    %cst_19 = arith.constant dense<0.000000e+00> : vector<8x8xf32>
    %37 = tpu.matmul %34, %35, %cst_19 {dimension_numbers = #tpu.dot_dimension_numbers<[1], [1], [0], [0], [0, 0, 1, 0], [], []>} : vector<8x8xf32>, vector<8x8xf32>, vector<8x8xf32> -> vector<8x8xf32>
    %cst_20 = arith.constant 0.353553385 : f32
    %38 = vector.broadcast %cst_20 : f32 to vector<8x8xf32>
    %39 = arith.mulf %37, %38 : vector<8x8xf32>
    %cst_21 = arith.constant dense<0xFF800000> : vector<8xf32>
    %40 = vector.multi_reduction <maximumf>, %39, %cst_21 [1] : vector<8x8xf32> to vector<8xf32>
    %41 = vector.shape_cast %40 : vector<8xf32> to vector<8x1xf32>
    %42 = vector.broadcast %41 : vector<8x1xf32> to vector<8x8xf32>
    %43 = arith.subf %39, %42 : vector<8x8xf32>
    %44 = math.exp %43 : vector<8x8xf32>
    %cst_22 = arith.constant dense<0.000000e+00> : vector<8xf32>
    %45 = vector.multi_reduction <add>, %44, %cst_22 [1] : vector<8x8xf32> to vector<8xf32>
    %46 = vector.shape_cast %45 : vector<8xf32> to vector<8x1xf32>
    %47 = vector.broadcast %46 : vector<8x1xf32> to vector<8x8xf32>
    %48 = arith.divf %44, %47 : vector<8x8xf32>
    %cst_23 = arith.constant dense<0.000000e+00> : vector<8x8xf32>
    %49 = tpu.matmul %48, %36, %cst_23 {dimension_numbers = #tpu.dot_dimension_numbers<[1], [0], [0], [1], [0, 0, 1, 1], [], []>} : vector<8x8xf32>, vector<8x8xf32>, vector<8x8xf32> -> vector<8x8xf32>
    %50 = vector.extract_strided_slice %12 {offsets = [1, 0, 0], sizes = [1, 8, 32], strides = [1, 1, 1]} : vector<4x8x32xf32> to vector<1x8x32xf32>
    %51 = vector.shape_cast %50 : vector<1x8x32xf32> to vector<8x32xf32>
    %cst_24 = arith.constant dense<0.000000e+00> : vector<8x32xf32>
    %52 = tpu.matmul %49, %51, %cst_24 {dimension_numbers = #tpu.dot_dimension_numbers<[1], [0], [0], [1], [0, 0, 1, 1], [], []>} : vector<8x8xf32>, vector<8x32xf32>, vector<8x32xf32> -> vector<8x32xf32>
    %53 = arith.addf %33, %52 : vector<8x32xf32>
    %54 = vector.extract_strided_slice %9 {offsets = [0, 16], sizes = [8, 8], strides = [1, 1]} : vector<8x32xf32> to vector<8x8xf32>
    %55 = vector.extract_strided_slice %10 {offsets = [0, 16], sizes = [8, 8], strides = [1, 1]} : vector<8x64xf32> to vector<8x8xf32>
    %56 = vector.extract_strided_slice %10 {offsets = [0, 48], sizes = [8, 8], strides = [1, 1]} : vector<8x64xf32> to vector<8x8xf32>
    %cst_25 = arith.constant dense<0.000000e+00> : vector<8x8xf32>
    %57 = tpu.matmul %54, %55, %cst_25 {dimension_numbers = #tpu.dot_dimension_numbers<[1], [1], [0], [0], [0, 0, 1, 0], [], []>} : vector<8x8xf32>, vector<8x8xf32>, vector<8x8xf32> -> vector<8x8xf32>
    %cst_26 = arith.constant 0.353553385 : f32
    %58 = vector.broadcast %cst_26 : f32 to vector<8x8xf32>
    %59 = arith.mulf %57, %58 : vector<8x8xf32>
    %cst_27 = arith.constant dense<0xFF800000> : vector<8xf32>
    %60 = vector.multi_reduction <maximumf>, %59, %cst_27 [1] : vector<8x8xf32> to vector<8xf32>
    %61 = vector.shape_cast %60 : vector<8xf32> to vector<8x1xf32>
    %62 = vector.broadcast %61 : vector<8x1xf32> to vector<8x8xf32>
    %63 = arith.subf %59, %62 : vector<8x8xf32>
    %64 = math.exp %63 : vector<8x8xf32>
    %cst_28 = arith.constant dense<0.000000e+00> : vector<8xf32>
    %65 = vector.multi_reduction <add>, %64, %cst_28 [1] : vector<8x8xf32> to vector<8xf32>
    %66 = vector.shape_cast %65 : vector<8xf32> to vector<8x1xf32>
    %67 = vector.broadcast %66 : vector<8x1xf32> to vector<8x8xf32>
    %68 = arith.divf %64, %67 : vector<8x8xf32>
    %cst_29 = arith.constant dense<0.000000e+00> : vector<8x8xf32>
    %69 = tpu.matmul %68, %56, %cst_29 {dimension_numbers = #tpu.dot_dimension_numbers<[1], [0], [0], [1], [0, 0, 1, 1], [], []>} : vector<8x8xf32>, vector<8x8xf32>, vector<8x8xf32> -> vector<8x8xf32>
    %70 = vector.extract_strided_slice %12 {offsets = [2, 0, 0], sizes = [1, 8, 32], strides = [1, 1, 1]} : vector<4x8x32xf32> to vector<1x8x32xf32>
    %71 = vector.shape_cast %70 : vector<1x8x32xf32> to vector<8x32xf32>
    %cst_30 = arith.constant dense<0.000000e+00> : vector<8x32xf32>
    %72 = tpu.matmul %69, %71, %cst_30 {dimension_numbers = #tpu.dot_dimension_numbers<[1], [0], [0], [1], [0, 0, 1, 1], [], []>} : vector<8x8xf32>, vector<8x32xf32>, vector<8x32xf32> -> vector<8x32xf32>
    %73 = arith.addf %53, %72 : vector<8x32xf32>
    %74 = vector.extract_strided_slice %9 {offsets = [0, 24], sizes = [8, 8], strides = [1, 1]} : vector<8x32xf32> to vector<8x8xf32>
    %75 = vector.extract_strided_slice %10 {offsets = [0, 24], sizes = [8, 8], strides = [1, 1]} : vector<8x64xf32> to vector<8x8xf32>
    %76 = vector.extract_strided_slice %10 {offsets = [0, 56], sizes = [8, 8], strides = [1, 1]} : vector<8x64xf32> to vector<8x8xf32>
    %cst_31 = arith.constant dense<0.000000e+00> : vector<8x8xf32>
    %77 = tpu.matmul %74, %75, %cst_31 {dimension_numbers = #tpu.dot_dimension_numbers<[1], [1], [0], [0], [0, 0, 1, 0], [], []>} : vector<8x8xf32>, vector<8x8xf32>, vector<8x8xf32> -> vector<8x8xf32>
    %cst_32 = arith.constant 0.353553385 : f32
    %78 = vector.broadcast %cst_32 : f32 to vector<8x8xf32>
    %79 = arith.mulf %77, %78 : vector<8x8xf32>
    %cst_33 = arith.constant dense<0xFF800000> : vector<8xf32>
    %80 = vector.multi_reduction <maximumf>, %79, %cst_33 [1] : vector<8x8xf32> to vector<8xf32>
    %81 = vector.shape_cast %80 : vector<8xf32> to vector<8x1xf32>
    %82 = vector.broadcast %81 : vector<8x1xf32> to vector<8x8xf32>
    %83 = arith.subf %79, %82 : vector<8x8xf32>
    %84 = math.exp %83 : vector<8x8xf32>
    %cst_34 = arith.constant dense<0.000000e+00> : vector<8xf32>
    %85 = vector.multi_reduction <add>, %84, %cst_34 [1] : vector<8x8xf32> to vector<8xf32>
    %86 = vector.shape_cast %85 : vector<8xf32> to vector<8x1xf32>
    %87 = vector.broadcast %86 : vector<8x1xf32> to vector<8x8xf32>
    %88 = arith.divf %84, %87 : vector<8x8xf32>
    %cst_35 = arith.constant dense<0.000000e+00> : vector<8x8xf32>
    %89 = tpu.matmul %88, %76, %cst_35 {dimension_numbers = #tpu.dot_dimension_numbers<[1], [0], [0], [1], [0, 0, 1, 1], [], []>} : vector<8x8xf32>, vector<8x8xf32>, vector<8x8xf32> -> vector<8x8xf32>
    %90 = vector.extract_strided_slice %12 {offsets = [3, 0, 0], sizes = [1, 8, 32], strides = [1, 1, 1]} : vector<4x8x32xf32> to vector<1x8x32xf32>
    %91 = vector.shape_cast %90 : vector<1x8x32xf32> to vector<8x32xf32>
    %cst_36 = arith.constant dense<0.000000e+00> : vector<8x32xf32>
    %92 = tpu.matmul %89, %91, %cst_36 {dimension_numbers = #tpu.dot_dimension_numbers<[1], [0], [0], [1], [0, 0, 1, 1], [], []>} : vector<8x8xf32>, vector<8x32xf32>, vector<8x32xf32> -> vector<8x32xf32>
    %93 = arith.addf %73, %92 : vector<8x32xf32>
    %94 = arith.addf %93, %1 : vector<8x32xf32>
    %c0_37 = arith.constant 0 : index
    %c0_38 = arith.constant 0 : index
    %c0_39 = arith.constant 0 : index
    %95 = vector.load %arg6[%c0_37, %c0_38, %c0_39] : memref<2x1x32xf32, #tpu.memory_space<vmem>>, vector<1x1x32xf32>
    %96 = vector.shape_cast %95 : vector<1x1x32xf32> to vector<1x32xf32>
    %c0_40 = arith.constant 0 : index
    %c0_41 = arith.constant 0 : index
    %c0_42 = arith.constant 0 : index
    %97 = vector.load %arg7[%c0_40, %c0_41, %c0_42] : memref<2x1x32xf32, #tpu.memory_space<vmem>>, vector<1x1x32xf32>
    %98 = vector.shape_cast %97 : vector<1x1x32xf32> to vector<1x32xf32>
    %cst_43 = arith.constant dense<0.000000e+00> : vector<8xf32>
    %99 = vector.multi_reduction <add>, %94, %cst_43 [1] : vector<8x32xf32> to vector<8xf32>
    %100 = vector.shape_cast %99 : vector<8xf32> to vector<8x1xf32>
    %cst_44 = arith.constant 3.200000e+01 : f32
    %101 = vector.broadcast %cst_44 : f32 to vector<8x1xf32>
    %102 = arith.divf %100, %101 : vector<8x1xf32>
    %103 = vector.broadcast %102 : vector<8x1xf32> to vector<8x32xf32>
    %104 = arith.subf %94, %103 : vector<8x32xf32>
    %105 = arith.mulf %104, %104 : vector<8x32xf32>
    %cst_45 = arith.constant dense<0.000000e+00> : vector<8xf32>
    %106 = vector.multi_reduction <add>, %105, %cst_45 [1] : vector<8x32xf32> to vector<8xf32>
    %107 = vector.shape_cast %106 : vector<8xf32> to vector<8x1xf32>
    %cst_46 = arith.constant 3.200000e+01 : f32
    %108 = vector.broadcast %cst_46 : f32 to vector<8x1xf32>
    %109 = arith.divf %107, %108 : vector<8x1xf32>
    %110 = vector.broadcast %102 : vector<8x1xf32> to vector<8x32xf32>
    %111 = arith.subf %94, %110 : vector<8x32xf32>
    %cst_47 = arith.constant 9.99999974E-6 : f32
    %112 = vector.broadcast %cst_47 : f32 to vector<8x1xf32>
    %113 = arith.addf %109, %112 : vector<8x1xf32>
    %114 = math.rsqrt %113 : vector<8x1xf32>
    %115 = vector.broadcast %114 : vector<8x1xf32> to vector<8x32xf32>
    %116 = arith.mulf %111, %115 : vector<8x32xf32>
    %117 = vector.broadcast %96 : vector<1x32xf32> to vector<8x32xf32>
    %118 = arith.mulf %116, %117 : vector<8x32xf32>
    %119 = vector.broadcast %98 : vector<1x32xf32> to vector<8x32xf32>
    %120 = arith.addf %118, %119 : vector<8x32xf32>
    %c0_48 = arith.constant 0 : index
    %c0_49 = arith.constant 0 : index
    %c0_50 = arith.constant 0 : index
    %121 = vector.load %arg8[%c0_48, %c0_49, %c0_50] : memref<2x32x64xf32, #tpu.memory_space<vmem>>, vector<1x32x64xf32>
    %122 = vector.shape_cast %121 : vector<1x32x64xf32> to vector<32x64xf32>
    %c0_51 = arith.constant 0 : index
    %c0_52 = arith.constant 0 : index
    %c0_53 = arith.constant 0 : index
    %123 = vector.load %arg9[%c0_51, %c0_52, %c0_53] : memref<2x1x64xf32, #tpu.memory_space<vmem>>, vector<1x1x64xf32>
    %124 = vector.shape_cast %123 : vector<1x1x64xf32> to vector<1x64xf32>
    %c0_54 = arith.constant 0 : index
    %c0_55 = arith.constant 0 : index
    %c0_56 = arith.constant 0 : index
    %125 = vector.load %arg10[%c0_54, %c0_55, %c0_56] : memref<2x64x32xf32, #tpu.memory_space<vmem>>, vector<1x64x32xf32>
    %126 = vector.shape_cast %125 : vector<1x64x32xf32> to vector<64x32xf32>
    %c0_57 = arith.constant 0 : index
    %c0_58 = arith.constant 0 : index
    %c0_59 = arith.constant 0 : index
    %127 = vector.load %arg11[%c0_57, %c0_58, %c0_59] : memref<2x1x32xf32, #tpu.memory_space<vmem>>, vector<1x1x32xf32>
    %128 = vector.shape_cast %127 : vector<1x1x32xf32> to vector<1x32xf32>
    %cst_60 = arith.constant dense<0.000000e+00> : vector<8x64xf32>
    %129 = tpu.matmul %120, %122, %cst_60 {dimension_numbers = #tpu.dot_dimension_numbers<[1], [0], [0], [1], [0, 0, 1, 1], [], []>} : vector<8x32xf32>, vector<32x64xf32>, vector<8x64xf32> -> vector<8x64xf32>
    %130 = vector.broadcast %124 : vector<1x64xf32> to vector<8x64xf32>
    %131 = arith.addf %129, %130 : vector<8x64xf32>
    %cst_61 = arith.constant 0.000000e+00 : f32
    %132 = vector.broadcast %cst_61 : f32 to vector<8x64xf32>
    %133 = arith.maximumf %131, %132 : vector<8x64xf32>
    %cst_62 = arith.constant dense<0.000000e+00> : vector<8x32xf32>
    %134 = tpu.matmul %133, %126, %cst_62 {dimension_numbers = #tpu.dot_dimension_numbers<[1], [0], [0], [1], [0, 0, 1, 1], [], []>} : vector<8x64xf32>, vector<64x32xf32>, vector<8x32xf32> -> vector<8x32xf32>
    %135 = vector.broadcast %128 : vector<1x32xf32> to vector<8x32xf32>
    %136 = arith.addf %134, %135 : vector<8x32xf32>
    %137 = arith.addf %136, %120 : vector<8x32xf32>
    %c0_63 = arith.constant 0 : index
    %c0_64 = arith.constant 0 : index
    %c0_65 = arith.constant 0 : index
    %138 = vector.load %arg12[%c0_63, %c0_64, %c0_65] : memref<2x1x32xf32, #tpu.memory_space<vmem>>, vector<1x1x32xf32>
    %139 = vector.shape_cast %138 : vector<1x1x32xf32> to vector<1x32xf32>
    %c0_66 = arith.constant 0 : index
    %c0_67 = arith.constant 0 : index
    %c0_68 = arith.constant 0 : index
    %140 = vector.load %arg13[%c0_66, %c0_67, %c0_68] : memref<2x1x32xf32, #tpu.memory_space<vmem>>, vector<1x1x32xf32>
    %141 = vector.shape_cast %140 : vector<1x1x32xf32> to vector<1x32xf32>
    %cst_69 = arith.constant dense<0.000000e+00> : vector<8xf32>
    %142 = vector.multi_reduction <add>, %137, %cst_69 [1] : vector<8x32xf32> to vector<8xf32>
    %143 = vector.shape_cast %142 : vector<8xf32> to vector<8x1xf32>
    %cst_70 = arith.constant 3.200000e+01 : f32
    %144 = vector.broadcast %cst_70 : f32 to vector<8x1xf32>
    %145 = arith.divf %143, %144 : vector<8x1xf32>
    %146 = vector.broadcast %145 : vector<8x1xf32> to vector<8x32xf32>
    %147 = arith.subf %137, %146 : vector<8x32xf32>
    %148 = arith.mulf %147, %147 : vector<8x32xf32>
    %cst_71 = arith.constant dense<0.000000e+00> : vector<8xf32>
    %149 = vector.multi_reduction <add>, %148, %cst_71 [1] : vector<8x32xf32> to vector<8xf32>
    %150 = vector.shape_cast %149 : vector<8xf32> to vector<8x1xf32>
    %cst_72 = arith.constant 3.200000e+01 : f32
    %151 = vector.broadcast %cst_72 : f32 to vector<8x1xf32>
    %152 = arith.divf %150, %151 : vector<8x1xf32>
    %153 = vector.broadcast %145 : vector<8x1xf32> to vector<8x32xf32>
    %154 = arith.subf %137, %153 : vector<8x32xf32>
    %cst_73 = arith.constant 9.99999974E-6 : f32
    %155 = vector.broadcast %cst_73 : f32 to vector<8x1xf32>
    %156 = arith.addf %152, %155 : vector<8x1xf32>
    %157 = math.rsqrt %156 : vector<8x1xf32>
    %158 = vector.broadcast %157 : vector<8x1xf32> to vector<8x32xf32>
    %159 = arith.mulf %154, %158 : vector<8x32xf32>
    %160 = vector.broadcast %139 : vector<1x32xf32> to vector<8x32xf32>
    %161 = arith.mulf %159, %160 : vector<8x32xf32>
    %162 = vector.broadcast %141 : vector<1x32xf32> to vector<8x32xf32>
    %163 = arith.addf %161, %162 : vector<8x32xf32>
    %c1 = arith.constant 1 : index
    %c0_74 = arith.constant 0 : index
    %c0_75 = arith.constant 0 : index
    %164 = vector.load %arg3[%c1, %c0_74, %c0_75] : memref<2x32x96xf32, #tpu.memory_space<vmem>>, vector<1x32x96xf32>
    %165 = vector.shape_cast %164 : vector<1x32x96xf32> to vector<32x96xf32>
    %cst_76 = arith.constant dense<0.000000e+00> : vector<8x96xf32>
    %166 = tpu.matmul %163, %165, %cst_76 {dimension_numbers = #tpu.dot_dimension_numbers<[1], [0], [0], [1], [0, 0, 1, 1], [], []>} : vector<8x32xf32>, vector<32x96xf32>, vector<8x96xf32> -> vector<8x96xf32>
    %c1_77 = arith.constant 1 : index
    %c0_78 = arith.constant 0 : index
    %c0_79 = arith.constant 0 : index
    %167 = vector.load %arg4[%c1_77, %c0_78, %c0_79] : memref<2x1x96xf32, #tpu.memory_space<vmem>>, vector<1x1x96xf32>
    %168 = vector.shape_cast %167 : vector<1x1x96xf32> to vector<1x96xf32>
    %169 = vector.broadcast %168 : vector<1x96xf32> to vector<8x96xf32>
    %170 = arith.addf %166, %169 : vector<8x96xf32>
    %171 = vector.extract_strided_slice %170 {offsets = [0, 0], sizes = [8, 32], strides = [1, 1]} : vector<8x96xf32> to vector<8x32xf32>
    %172 = vector.extract_strided_slice %170 {offsets = [0, 32], sizes = [8, 64], strides = [1, 1]} : vector<8x96xf32> to vector<8x64xf32>
    %c1_80 = arith.constant 1 : index
    %c0_81 = arith.constant 0 : index
    %c0_82 = arith.constant 0 : index
    %c0_83 = arith.constant 0 : index
    %173 = vector.load %arg5[%c1_80, %c0_81, %c0_82, %c0_83] : memref<2x4x8x32xf32, #tpu.memory_space<vmem>>, vector<1x4x8x32xf32>
    %174 = vector.shape_cast %173 : vector<1x4x8x32xf32> to vector<4x8x32xf32>
    %cst_84 = arith.constant 0.000000e+00 : f32
    %175 = vector.broadcast %cst_84 : f32 to vector<8x32xf32>
    %176 = vector.extract_strided_slice %171 {offsets = [0, 0], sizes = [8, 8], strides = [1, 1]} : vector<8x32xf32> to vector<8x8xf32>
    %177 = vector.extract_strided_slice %172 {offsets = [0, 0], sizes = [8, 8], strides = [1, 1]} : vector<8x64xf32> to vector<8x8xf32>
    %178 = vector.extract_strided_slice %172 {offsets = [0, 32], sizes = [8, 8], strides = [1, 1]} : vector<8x64xf32> to vector<8x8xf32>
    %cst_85 = arith.constant dense<0.000000e+00> : vector<8x8xf32>
    %179 = tpu.matmul %176, %177, %cst_85 {dimension_numbers = #tpu.dot_dimension_numbers<[1], [1], [0], [0], [0, 0, 1, 0], [], []>} : vector<8x8xf32>, vector<8x8xf32>, vector<8x8xf32> -> vector<8x8xf32>
    %cst_86 = arith.constant 0.353553385 : f32
    %180 = vector.broadcast %cst_86 : f32 to vector<8x8xf32>
    %181 = arith.mulf %179, %180 : vector<8x8xf32>
    %cst_87 = arith.constant dense<0xFF800000> : vector<8xf32>
    %182 = vector.multi_reduction <maximumf>, %181, %cst_87 [1] : vector<8x8xf32> to vector<8xf32>
    %183 = vector.shape_cast %182 : vector<8xf32> to vector<8x1xf32>
    %184 = vector.broadcast %183 : vector<8x1xf32> to vector<8x8xf32>
    %185 = arith.subf %181, %184 : vector<8x8xf32>
    %186 = math.exp %185 : vector<8x8xf32>
    %cst_88 = arith.constant dense<0.000000e+00> : vector<8xf32>
    %187 = vector.multi_reduction <add>, %186, %cst_88 [1] : vector<8x8xf32> to vector<8xf32>
    %188 = vector.shape_cast %187 : vector<8xf32> to vector<8x1xf32>
    %189 = vector.broadcast %188 : vector<8x1xf32> to vector<8x8xf32>
    %190 = arith.divf %186, %189 : vector<8x8xf32>
    %cst_89 = arith.constant dense<0.000000e+00> : vector<8x8xf32>
    %191 = tpu.matmul %190, %178, %cst_89 {dimension_numbers = #tpu.dot_dimension_numbers<[1], [0], [0], [1], [0, 0, 1, 1], [], []>} : vector<8x8xf32>, vector<8x8xf32>, vector<8x8xf32> -> vector<8x8xf32>
    %192 = vector.extract_strided_slice %174 {offsets = [0, 0, 0], sizes = [1, 8, 32], strides = [1, 1, 1]} : vector<4x8x32xf32> to vector<1x8x32xf32>
    %193 = vector.shape_cast %192 : vector<1x8x32xf32> to vector<8x32xf32>
    %cst_90 = arith.constant dense<0.000000e+00> : vector<8x32xf32>
    %194 = tpu.matmul %191, %193, %cst_90 {dimension_numbers = #tpu.dot_dimension_numbers<[1], [0], [0], [1], [0, 0, 1, 1], [], []>} : vector<8x8xf32>, vector<8x32xf32>, vector<8x32xf32> -> vector<8x32xf32>
    %195 = arith.addf %175, %194 : vector<8x32xf32>
    %196 = vector.extract_strided_slice %171 {offsets = [0, 8], sizes = [8, 8], strides = [1, 1]} : vector<8x32xf32> to vector<8x8xf32>
    %197 = vector.extract_strided_slice %172 {offsets = [0, 8], sizes = [8, 8], strides = [1, 1]} : vector<8x64xf32> to vector<8x8xf32>
    %198 = vector.extract_strided_slice %172 {offsets = [0, 40], sizes = [8, 8], strides = [1, 1]} : vector<8x64xf32> to vector<8x8xf32>
    %cst_91 = arith.constant dense<0.000000e+00> : vector<8x8xf32>
    %199 = tpu.matmul %196, %197, %cst_91 {dimension_numbers = #tpu.dot_dimension_numbers<[1], [1], [0], [0], [0, 0, 1, 0], [], []>} : vector<8x8xf32>, vector<8x8xf32>, vector<8x8xf32> -> vector<8x8xf32>
    %cst_92 = arith.constant 0.353553385 : f32
    %200 = vector.broadcast %cst_92 : f32 to vector<8x8xf32>
    %201 = arith.mulf %199, %200 : vector<8x8xf32>
    %cst_93 = arith.constant dense<0xFF800000> : vector<8xf32>
    %202 = vector.multi_reduction <maximumf>, %201, %cst_93 [1] : vector<8x8xf32> to vector<8xf32>
    %203 = vector.shape_cast %202 : vector<8xf32> to vector<8x1xf32>
    %204 = vector.broadcast %203 : vector<8x1xf32> to vector<8x8xf32>
    %205 = arith.subf %201, %204 : vector<8x8xf32>
    %206 = math.exp %205 : vector<8x8xf32>
    %cst_94 = arith.constant dense<0.000000e+00> : vector<8xf32>
    %207 = vector.multi_reduction <add>, %206, %cst_94 [1] : vector<8x8xf32> to vector<8xf32>
    %208 = vector.shape_cast %207 : vector<8xf32> to vector<8x1xf32>
    %209 = vector.broadcast %208 : vector<8x1xf32> to vector<8x8xf32>
    %210 = arith.divf %206, %209 : vector<8x8xf32>
    %cst_95 = arith.constant dense<0.000000e+00> : vector<8x8xf32>
    %211 = tpu.matmul %210, %198, %cst_95 {dimension_numbers = #tpu.dot_dimension_numbers<[1], [0], [0], [1], [0, 0, 1, 1], [], []>} : vector<8x8xf32>, vector<8x8xf32>, vector<8x8xf32> -> vector<8x8xf32>
    %212 = vector.extract_strided_slice %174 {offsets = [1, 0, 0], sizes = [1, 8, 32], strides = [1, 1, 1]} : vector<4x8x32xf32> to vector<1x8x32xf32>
    %213 = vector.shape_cast %212 : vector<1x8x32xf32> to vector<8x32xf32>
    %cst_96 = arith.constant dense<0.000000e+00> : vector<8x32xf32>
    %214 = tpu.matmul %211, %213, %cst_96 {dimension_numbers = #tpu.dot_dimension_numbers<[1], [0], [0], [1], [0, 0, 1, 1], [], []>} : vector<8x8xf32>, vector<8x32xf32>, vector<8x32xf32> -> vector<8x32xf32>
    %215 = arith.addf %195, %214 : vector<8x32xf32>
    %216 = vector.extract_strided_slice %171 {offsets = [0, 16], sizes = [8, 8], strides = [1, 1]} : vector<8x32xf32> to vector<8x8xf32>
    %217 = vector.extract_strided_slice %172 {offsets = [0, 16], sizes = [8, 8], strides = [1, 1]} : vector<8x64xf32> to vector<8x8xf32>
    %218 = vector.extract_strided_slice %172 {offsets = [0, 48], sizes = [8, 8], strides = [1, 1]} : vector<8x64xf32> to vector<8x8xf32>
    %cst_97 = arith.constant dense<0.000000e+00> : vector<8x8xf32>
    %219 = tpu.matmul %216, %217, %cst_97 {dimension_numbers = #tpu.dot_dimension_numbers<[1], [1], [0], [0], [0, 0, 1, 0], [], []>} : vector<8x8xf32>, vector<8x8xf32>, vector<8x8xf32> -> vector<8x8xf32>
    %cst_98 = arith.constant 0.353553385 : f32
    %220 = vector.broadcast %cst_98 : f32 to vector<8x8xf32>
    %221 = arith.mulf %219, %220 : vector<8x8xf32>
    %cst_99 = arith.constant dense<0xFF800000> : vector<8xf32>
    %222 = vector.multi_reduction <maximumf>, %221, %cst_99 [1] : vector<8x8xf32> to vector<8xf32>
    %223 = vector.shape_cast %222 : vector<8xf32> to vector<8x1xf32>
    %224 = vector.broadcast %223 : vector<8x1xf32> to vector<8x8xf32>
    %225 = arith.subf %221, %224 : vector<8x8xf32>
    %226 = math.exp %225 : vector<8x8xf32>
    %cst_100 = arith.constant dense<0.000000e+00> : vector<8xf32>
    %227 = vector.multi_reduction <add>, %226, %cst_100 [1] : vector<8x8xf32> to vector<8xf32>
    %228 = vector.shape_cast %227 : vector<8xf32> to vector<8x1xf32>
    %229 = vector.broadcast %228 : vector<8x1xf32> to vector<8x8xf32>
    %230 = arith.divf %226, %229 : vector<8x8xf32>
    %cst_101 = arith.constant dense<0.000000e+00> : vector<8x8xf32>
    %231 = tpu.matmul %230, %218, %cst_101 {dimension_numbers = #tpu.dot_dimension_numbers<[1], [0], [0], [1], [0, 0, 1, 1], [], []>} : vector<8x8xf32>, vector<8x8xf32>, vector<8x8xf32> -> vector<8x8xf32>
    %232 = vector.extract_strided_slice %174 {offsets = [2, 0, 0], sizes = [1, 8, 32], strides = [1, 1, 1]} : vector<4x8x32xf32> to vector<1x8x32xf32>
    %233 = vector.shape_cast %232 : vector<1x8x32xf32> to vector<8x32xf32>
    %cst_102 = arith.constant dense<0.000000e+00> : vector<8x32xf32>
    %234 = tpu.matmul %231, %233, %cst_102 {dimension_numbers = #tpu.dot_dimension_numbers<[1], [0], [0], [1], [0, 0, 1, 1], [], []>} : vector<8x8xf32>, vector<8x32xf32>, vector<8x32xf32> -> vector<8x32xf32>
    %235 = arith.addf %215, %234 : vector<8x32xf32>
    %236 = vector.extract_strided_slice %171 {offsets = [0, 24], sizes = [8, 8], strides = [1, 1]} : vector<8x32xf32> to vector<8x8xf32>
    %237 = vector.extract_strided_slice %172 {offsets = [0, 24], sizes = [8, 8], strides = [1, 1]} : vector<8x64xf32> to vector<8x8xf32>
    %238 = vector.extract_strided_slice %172 {offsets = [0, 56], sizes = [8, 8], strides = [1, 1]} : vector<8x64xf32> to vector<8x8xf32>
    %cst_103 = arith.constant dense<0.000000e+00> : vector<8x8xf32>
    %239 = tpu.matmul %236, %237, %cst_103 {dimension_numbers = #tpu.dot_dimension_numbers<[1], [1], [0], [0], [0, 0, 1, 0], [], []>} : vector<8x8xf32>, vector<8x8xf32>, vector<8x8xf32> -> vector<8x8xf32>
    %cst_104 = arith.constant 0.353553385 : f32
    %240 = vector.broadcast %cst_104 : f32 to vector<8x8xf32>
    %241 = arith.mulf %239, %240 : vector<8x8xf32>
    %cst_105 = arith.constant dense<0xFF800000> : vector<8xf32>
    %242 = vector.multi_reduction <maximumf>, %241, %cst_105 [1] : vector<8x8xf32> to vector<8xf32>
    %243 = vector.shape_cast %242 : vector<8xf32> to vector<8x1xf32>
    %244 = vector.broadcast %243 : vector<8x1xf32> to vector<8x8xf32>
    %245 = arith.subf %241, %244 : vector<8x8xf32>
    %246 = math.exp %245 : vector<8x8xf32>
    %cst_106 = arith.constant dense<0.000000e+00> : vector<8xf32>
    %247 = vector.multi_reduction <add>, %246, %cst_106 [1] : vector<8x8xf32> to vector<8xf32>
    %248 = vector.shape_cast %247 : vector<8xf32> to vector<8x1xf32>
    %249 = vector.broadcast %248 : vector<8x1xf32> to vector<8x8xf32>
    %250 = arith.divf %246, %249 : vector<8x8xf32>
    %cst_107 = arith.constant dense<0.000000e+00> : vector<8x8xf32>
    %251 = tpu.matmul %250, %238, %cst_107 {dimension_numbers = #tpu.dot_dimension_numbers<[1], [0], [0], [1], [0, 0, 1, 1], [], []>} : vector<8x8xf32>, vector<8x8xf32>, vector<8x8xf32> -> vector<8x8xf32>
    %252 = vector.extract_strided_slice %174 {offsets = [3, 0, 0], sizes = [1, 8, 32], strides = [1, 1, 1]} : vector<4x8x32xf32> to vector<1x8x32xf32>
    %253 = vector.shape_cast %252 : vector<1x8x32xf32> to vector<8x32xf32>
    %cst_108 = arith.constant dense<0.000000e+00> : vector<8x32xf32>
    %254 = tpu.matmul %251, %253, %cst_108 {dimension_numbers = #tpu.dot_dimension_numbers<[1], [0], [0], [1], [0, 0, 1, 1], [], []>} : vector<8x8xf32>, vector<8x32xf32>, vector<8x32xf32> -> vector<8x32xf32>
    %255 = arith.addf %235, %254 : vector<8x32xf32>
    %256 = arith.addf %255, %163 : vector<8x32xf32>
    %c1_109 = arith.constant 1 : index
    %c0_110 = arith.constant 0 : index
    %c0_111 = arith.constant 0 : index
    %257 = vector.load %arg6[%c1_109, %c0_110, %c0_111] : memref<2x1x32xf32, #tpu.memory_space<vmem>>, vector<1x1x32xf32>
    %258 = vector.shape_cast %257 : vector<1x1x32xf32> to vector<1x32xf32>
    %c1_112 = arith.constant 1 : index
    %c0_113 = arith.constant 0 : index
    %c0_114 = arith.constant 0 : index
    %259 = vector.load %arg7[%c1_112, %c0_113, %c0_114] : memref<2x1x32xf32, #tpu.memory_space<vmem>>, vector<1x1x32xf32>
    %260 = vector.shape_cast %259 : vector<1x1x32xf32> to vector<1x32xf32>
    %cst_115 = arith.constant dense<0.000000e+00> : vector<8xf32>
    %261 = vector.multi_reduction <add>, %256, %cst_115 [1] : vector<8x32xf32> to vector<8xf32>
    %262 = vector.shape_cast %261 : vector<8xf32> to vector<8x1xf32>
    %cst_116 = arith.constant 3.200000e+01 : f32
    %263 = vector.broadcast %cst_116 : f32 to vector<8x1xf32>
    %264 = arith.divf %262, %263 : vector<8x1xf32>
    %265 = vector.broadcast %264 : vector<8x1xf32> to vector<8x32xf32>
    %266 = arith.subf %256, %265 : vector<8x32xf32>
    %267 = arith.mulf %266, %266 : vector<8x32xf32>
    %cst_117 = arith.constant dense<0.000000e+00> : vector<8xf32>
    %268 = vector.multi_reduction <add>, %267, %cst_117 [1] : vector<8x32xf32> to vector<8xf32>
    %269 = vector.shape_cast %268 : vector<8xf32> to vector<8x1xf32>
    %cst_118 = arith.constant 3.200000e+01 : f32
    %270 = vector.broadcast %cst_118 : f32 to vector<8x1xf32>
    %271 = arith.divf %269, %270 : vector<8x1xf32>
    %272 = vector.broadcast %264 : vector<8x1xf32> to vector<8x32xf32>
    %273 = arith.subf %256, %272 : vector<8x32xf32>
    %cst_119 = arith.constant 9.99999974E-6 : f32
    %274 = vector.broadcast %cst_119 : f32 to vector<8x1xf32>
    %275 = arith.addf %271, %274 : vector<8x1xf32>
    %276 = math.rsqrt %275 : vector<8x1xf32>
    %277 = vector.broadcast %276 : vector<8x1xf32> to vector<8x32xf32>
    %278 = arith.mulf %273, %277 : vector<8x32xf32>
    %279 = vector.broadcast %258 : vector<1x32xf32> to vector<8x32xf32>
    %280 = arith.mulf %278, %279 : vector<8x32xf32>
    %281 = vector.broadcast %260 : vector<1x32xf32> to vector<8x32xf32>
    %282 = arith.addf %280, %281 : vector<8x32xf32>
    %c1_120 = arith.constant 1 : index
    %c0_121 = arith.constant 0 : index
    %c0_122 = arith.constant 0 : index
    %283 = vector.load %arg8[%c1_120, %c0_121, %c0_122] : memref<2x32x64xf32, #tpu.memory_space<vmem>>, vector<1x32x64xf32>
    %284 = vector.shape_cast %283 : vector<1x32x64xf32> to vector<32x64xf32>
    %c1_123 = arith.constant 1 : index
    %c0_124 = arith.constant 0 : index
    %c0_125 = arith.constant 0 : index
    %285 = vector.load %arg9[%c1_123, %c0_124, %c0_125] : memref<2x1x64xf32, #tpu.memory_space<vmem>>, vector<1x1x64xf32>
    %286 = vector.shape_cast %285 : vector<1x1x64xf32> to vector<1x64xf32>
    %c1_126 = arith.constant 1 : index
    %c0_127 = arith.constant 0 : index
    %c0_128 = arith.constant 0 : index
    %287 = vector.load %arg10[%c1_126, %c0_127, %c0_128] : memref<2x64x32xf32, #tpu.memory_space<vmem>>, vector<1x64x32xf32>
    %288 = vector.shape_cast %287 : vector<1x64x32xf32> to vector<64x32xf32>
    %c1_129 = arith.constant 1 : index
    %c0_130 = arith.constant 0 : index
    %c0_131 = arith.constant 0 : index
    %289 = vector.load %arg11[%c1_129, %c0_130, %c0_131] : memref<2x1x32xf32, #tpu.memory_space<vmem>>, vector<1x1x32xf32>
    %290 = vector.shape_cast %289 : vector<1x1x32xf32> to vector<1x32xf32>
    %cst_132 = arith.constant dense<0.000000e+00> : vector<8x64xf32>
    %291 = tpu.matmul %282, %284, %cst_132 {dimension_numbers = #tpu.dot_dimension_numbers<[1], [0], [0], [1], [0, 0, 1, 1], [], []>} : vector<8x32xf32>, vector<32x64xf32>, vector<8x64xf32> -> vector<8x64xf32>
    %292 = vector.broadcast %286 : vector<1x64xf32> to vector<8x64xf32>
    %293 = arith.addf %291, %292 : vector<8x64xf32>
    %cst_133 = arith.constant 0.000000e+00 : f32
    %294 = vector.broadcast %cst_133 : f32 to vector<8x64xf32>
    %295 = arith.maximumf %293, %294 : vector<8x64xf32>
    %cst_134 = arith.constant dense<0.000000e+00> : vector<8x32xf32>
    %296 = tpu.matmul %295, %288, %cst_134 {dimension_numbers = #tpu.dot_dimension_numbers<[1], [0], [0], [1], [0, 0, 1, 1], [], []>} : vector<8x64xf32>, vector<64x32xf32>, vector<8x32xf32> -> vector<8x32xf32>
    %297 = vector.broadcast %290 : vector<1x32xf32> to vector<8x32xf32>
    %298 = arith.addf %296, %297 : vector<8x32xf32>
    %299 = arith.addf %298, %282 : vector<8x32xf32>
    %c1_135 = arith.constant 1 : index
    %c0_136 = arith.constant 0 : index
    %c0_137 = arith.constant 0 : index
    %300 = vector.load %arg12[%c1_135, %c0_136, %c0_137] : memref<2x1x32xf32, #tpu.memory_space<vmem>>, vector<1x1x32xf32>
    %301 = vector.shape_cast %300 : vector<1x1x32xf32> to vector<1x32xf32>
    %c1_138 = arith.constant 1 : index
    %c0_139 = arith.constant 0 : index
    %c0_140 = arith.constant 0 : index
    %302 = vector.load %arg13[%c1_138, %c0_139, %c0_140] : memref<2x1x32xf32, #tpu.memory_space<vmem>>, vector<1x1x32xf32>
    %303 = vector.shape_cast %302 : vector<1x1x32xf32> to vector<1x32xf32>
    %cst_141 = arith.constant dense<0.000000e+00> : vector<8xf32>
    %304 = vector.multi_reduction <add>, %299, %cst_141 [1] : vector<8x32xf32> to vector<8xf32>
    %305 = vector.shape_cast %304 : vector<8xf32> to vector<8x1xf32>
    %cst_142 = arith.constant 3.200000e+01 : f32
    %306 = vector.broadcast %cst_142 : f32 to vector<8x1xf32>
    %307 = arith.divf %305, %306 : vector<8x1xf32>
    %308 = vector.broadcast %307 : vector<8x1xf32> to vector<8x32xf32>
    %309 = arith.subf %299, %308 : vector<8x32xf32>
    %310 = arith.mulf %309, %309 : vector<8x32xf32>
    %cst_143 = arith.constant dense<0.000000e+00> : vector<8xf32>
    %311 = vector.multi_reduction <add>, %310, %cst_143 [1] : vector<8x32xf32> to vector<8xf32>
    %312 = vector.shape_cast %311 : vector<8xf32> to vector<8x1xf32>
    %cst_144 = arith.constant 3.200000e+01 : f32
    %313 = vector.broadcast %cst_144 : f32 to vector<8x1xf32>
    %314 = arith.divf %312, %313 : vector<8x1xf32>
    %315 = vector.broadcast %307 : vector<8x1xf32> to vector<8x32xf32>
    %316 = arith.subf %299, %315 : vector<8x32xf32>
    %cst_145 = arith.constant 9.99999974E-6 : f32
    %317 = vector.broadcast %cst_145 : f32 to vector<8x1xf32>
    %318 = arith.addf %314, %317 : vector<8x1xf32>
    %319 = math.rsqrt %318 : vector<8x1xf32>
    %320 = vector.broadcast %319 : vector<8x1xf32> to vector<8x32xf32>
    %321 = arith.mulf %316, %320 : vector<8x32xf32>
    %322 = vector.broadcast %301 : vector<1x32xf32> to vector<8x32xf32>
    %323 = arith.mulf %321, %322 : vector<8x32xf32>
    %324 = vector.broadcast %303 : vector<1x32xf32> to vector<8x32xf32>
    %325 = arith.addf %323, %324 : vector<8x32xf32>
    %c0_146 = arith.constant 0 : index
    %c0_147 = arith.constant 0 : index
    %c0_148 = arith.constant 0 : index
    %326 = vector.load %arg2[%c0_146, %c0_147, %c0_148] : memref<1x8x32xf32, #tpu.memory_space<vmem>>, vector<1x8x32xf32>
    %327 = vector.shape_cast %326 : vector<1x8x32xf32> to vector<8x32xf32>
    %c0_149 = arith.constant 0 : index
    %c0_150 = arith.constant 0 : index
    %c0_151 = arith.constant 0 : index
    %328 = vector.load %arg14[%c0_149, %c0_150, %c0_151] : memref<2x32x96xf32, #tpu.memory_space<vmem>>, vector<1x32x96xf32>
    %329 = vector.shape_cast %328 : vector<1x32x96xf32> to vector<32x96xf32>
    %cst_152 = arith.constant dense<0.000000e+00> : vector<8x96xf32>
    %330 = tpu.matmul %327, %329, %cst_152 {dimension_numbers = #tpu.dot_dimension_numbers<[1], [0], [0], [1], [0, 0, 1, 1], [], []>} : vector<8x32xf32>, vector<32x96xf32>, vector<8x96xf32> -> vector<8x96xf32>
    %c0_153 = arith.constant 0 : index
    %c0_154 = arith.constant 0 : index
    %c0_155 = arith.constant 0 : index
    %331 = vector.load %arg15[%c0_153, %c0_154, %c0_155] : memref<2x1x96xf32, #tpu.memory_space<vmem>>, vector<1x1x96xf32>
    %332 = vector.shape_cast %331 : vector<1x1x96xf32> to vector<1x96xf32>
    %333 = vector.broadcast %332 : vector<1x96xf32> to vector<8x96xf32>
    %334 = arith.addf %330, %333 : vector<8x96xf32>
    %335 = vector.extract_strided_slice %334 {offsets = [0, 0], sizes = [8, 32], strides = [1, 1]} : vector<8x96xf32> to vector<8x32xf32>
    %336 = vector.extract_strided_slice %334 {offsets = [0, 32], sizes = [8, 64], strides = [1, 1]} : vector<8x96xf32> to vector<8x64xf32>
    %c0_156 = arith.constant 0 : index
    %c0_157 = arith.constant 0 : index
    %c0_158 = arith.constant 0 : index
    %c0_159 = arith.constant 0 : index
    %337 = vector.load %arg16[%c0_156, %c0_157, %c0_158, %c0_159] : memref<2x4x8x32xf32, #tpu.memory_space<vmem>>, vector<1x4x8x32xf32>
    %338 = vector.shape_cast %337 : vector<1x4x8x32xf32> to vector<4x8x32xf32>
    %339 = tpu.iota {dimensions = array<i32: 0>} : vector<8x8xi32>
    %340 = tpu.iota {dimensions = array<i32: 1>} : vector<8x8xi32>
    %341 = arith.cmpi sle, %340, %339 : vector<8x8xi32>
    %cst_160 = arith.constant 0.000000e+00 : f32
    %342 = vector.broadcast %cst_160 : f32 to vector<8x32xf32>
    %343 = vector.extract_strided_slice %335 {offsets = [0, 0], sizes = [8, 8], strides = [1, 1]} : vector<8x32xf32> to vector<8x8xf32>
    %344 = vector.extract_strided_slice %336 {offsets = [0, 0], sizes = [8, 8], strides = [1, 1]} : vector<8x64xf32> to vector<8x8xf32>
    %345 = vector.extract_strided_slice %336 {offsets = [0, 32], sizes = [8, 8], strides = [1, 1]} : vector<8x64xf32> to vector<8x8xf32>
    %cst_161 = arith.constant dense<0.000000e+00> : vector<8x8xf32>
    %346 = tpu.matmul %343, %344, %cst_161 {dimension_numbers = #tpu.dot_dimension_numbers<[1], [1], [0], [0], [0, 0, 1, 0], [], []>} : vector<8x8xf32>, vector<8x8xf32>, vector<8x8xf32> -> vector<8x8xf32>
    %cst_162 = arith.constant 0.353553385 : f32
    %347 = vector.broadcast %cst_162 : f32 to vector<8x8xf32>
    %348 = arith.mulf %346, %347 : vector<8x8xf32>
    %cst_163 = arith.constant -1.000000e+30 : f32
    %349 = vector.broadcast %cst_163 : f32 to vector<8x8xf32>
    %350 = arith.select %341, %348, %349 : vector<8x8xi1>, vector<8x8xf32>
    %cst_164 = arith.constant dense<0xFF800000> : vector<8xf32>
    %351 = vector.multi_reduction <maximumf>, %350, %cst_164 [1] : vector<8x8xf32> to vector<8xf32>
    %352 = vector.shape_cast %351 : vector<8xf32> to vector<8x1xf32>
    %353 = vector.broadcast %352 : vector<8x1xf32> to vector<8x8xf32>
    %354 = arith.subf %350, %353 : vector<8x8xf32>
    %355 = math.exp %354 : vector<8x8xf32>
    %cst_165 = arith.constant dense<0.000000e+00> : vector<8xf32>
    %356 = vector.multi_reduction <add>, %355, %cst_165 [1] : vector<8x8xf32> to vector<8xf32>
    %357 = vector.shape_cast %356 : vector<8xf32> to vector<8x1xf32>
    %358 = vector.broadcast %357 : vector<8x1xf32> to vector<8x8xf32>
    %359 = arith.divf %355, %358 : vector<8x8xf32>
    %cst_166 = arith.constant dense<0.000000e+00> : vector<8x8xf32>
    %360 = tpu.matmul %359, %345, %cst_166 {dimension_numbers = #tpu.dot_dimension_numbers<[1], [0], [0], [1], [0, 0, 1, 1], [], []>} : vector<8x8xf32>, vector<8x8xf32>, vector<8x8xf32> -> vector<8x8xf32>
    %361 = vector.extract_strided_slice %338 {offsets = [0, 0, 0], sizes = [1, 8, 32], strides = [1, 1, 1]} : vector<4x8x32xf32> to vector<1x8x32xf32>
    %362 = vector.shape_cast %361 : vector<1x8x32xf32> to vector<8x32xf32>
    %cst_167 = arith.constant dense<0.000000e+00> : vector<8x32xf32>
    %363 = tpu.matmul %360, %362, %cst_167 {dimension_numbers = #tpu.dot_dimension_numbers<[1], [0], [0], [1], [0, 0, 1, 1], [], []>} : vector<8x8xf32>, vector<8x32xf32>, vector<8x32xf32> -> vector<8x32xf32>
    %364 = arith.addf %342, %363 : vector<8x32xf32>
    %365 = vector.extract_strided_slice %335 {offsets = [0, 8], sizes = [8, 8], strides = [1, 1]} : vector<8x32xf32> to vector<8x8xf32>
    %366 = vector.extract_strided_slice %336 {offsets = [0, 8], sizes = [8, 8], strides = [1, 1]} : vector<8x64xf32> to vector<8x8xf32>
    %367 = vector.extract_strided_slice %336 {offsets = [0, 40], sizes = [8, 8], strides = [1, 1]} : vector<8x64xf32> to vector<8x8xf32>
    %cst_168 = arith.constant dense<0.000000e+00> : vector<8x8xf32>
    %368 = tpu.matmul %365, %366, %cst_168 {dimension_numbers = #tpu.dot_dimension_numbers<[1], [1], [0], [0], [0, 0, 1, 0], [], []>} : vector<8x8xf32>, vector<8x8xf32>, vector<8x8xf32> -> vector<8x8xf32>
    %cst_169 = arith.constant 0.353553385 : f32
    %369 = vector.broadcast %cst_169 : f32 to vector<8x8xf32>
    %370 = arith.mulf %368, %369 : vector<8x8xf32>
    %cst_170 = arith.constant -1.000000e+30 : f32
    %371 = vector.broadcast %cst_170 : f32 to vector<8x8xf32>
    %372 = arith.select %341, %370, %371 : vector<8x8xi1>, vector<8x8xf32>
    %cst_171 = arith.constant dense<0xFF800000> : vector<8xf32>
    %373 = vector.multi_reduction <maximumf>, %372, %cst_171 [1] : vector<8x8xf32> to vector<8xf32>
    %374 = vector.shape_cast %373 : vector<8xf32> to vector<8x1xf32>
    %375 = vector.broadcast %374 : vector<8x1xf32> to vector<8x8xf32>
    %376 = arith.subf %372, %375 : vector<8x8xf32>
    %377 = math.exp %376 : vector<8x8xf32>
    %cst_172 = arith.constant dense<0.000000e+00> : vector<8xf32>
    %378 = vector.multi_reduction <add>, %377, %cst_172 [1] : vector<8x8xf32> to vector<8xf32>
    %379 = vector.shape_cast %378 : vector<8xf32> to vector<8x1xf32>
    %380 = vector.broadcast %379 : vector<8x1xf32> to vector<8x8xf32>
    %381 = arith.divf %377, %380 : vector<8x8xf32>
    %cst_173 = arith.constant dense<0.000000e+00> : vector<8x8xf32>
    %382 = tpu.matmul %381, %367, %cst_173 {dimension_numbers = #tpu.dot_dimension_numbers<[1], [0], [0], [1], [0, 0, 1, 1], [], []>} : vector<8x8xf32>, vector<8x8xf32>, vector<8x8xf32> -> vector<8x8xf32>
    %383 = vector.extract_strided_slice %338 {offsets = [1, 0, 0], sizes = [1, 8, 32], strides = [1, 1, 1]} : vector<4x8x32xf32> to vector<1x8x32xf32>
    %384 = vector.shape_cast %383 : vector<1x8x32xf32> to vector<8x32xf32>
    %cst_174 = arith.constant dense<0.000000e+00> : vector<8x32xf32>
    %385 = tpu.matmul %382, %384, %cst_174 {dimension_numbers = #tpu.dot_dimension_numbers<[1], [0], [0], [1], [0, 0, 1, 1], [], []>} : vector<8x8xf32>, vector<8x32xf32>, vector<8x32xf32> -> vector<8x32xf32>
    %386 = arith.addf %364, %385 : vector<8x32xf32>
    %387 = vector.extract_strided_slice %335 {offsets = [0, 16], sizes = [8, 8], strides = [1, 1]} : vector<8x32xf32> to vector<8x8xf32>
    %388 = vector.extract_strided_slice %336 {offsets = [0, 16], sizes = [8, 8], strides = [1, 1]} : vector<8x64xf32> to vector<8x8xf32>
    %389 = vector.extract_strided_slice %336 {offsets = [0, 48], sizes = [8, 8], strides = [1, 1]} : vector<8x64xf32> to vector<8x8xf32>
    %cst_175 = arith.constant dense<0.000000e+00> : vector<8x8xf32>
    %390 = tpu.matmul %387, %388, %cst_175 {dimension_numbers = #tpu.dot_dimension_numbers<[1], [1], [0], [0], [0, 0, 1, 0], [], []>} : vector<8x8xf32>, vector<8x8xf32>, vector<8x8xf32> -> vector<8x8xf32>
    %cst_176 = arith.constant 0.353553385 : f32
    %391 = vector.broadcast %cst_176 : f32 to vector<8x8xf32>
    %392 = arith.mulf %390, %391 : vector<8x8xf32>
    %cst_177 = arith.constant -1.000000e+30 : f32
    %393 = vector.broadcast %cst_177 : f32 to vector<8x8xf32>
    %394 = arith.select %341, %392, %393 : vector<8x8xi1>, vector<8x8xf32>
    %cst_178 = arith.constant dense<0xFF800000> : vector<8xf32>
    %395 = vector.multi_reduction <maximumf>, %394, %cst_178 [1] : vector<8x8xf32> to vector<8xf32>
    %396 = vector.shape_cast %395 : vector<8xf32> to vector<8x1xf32>
    %397 = vector.broadcast %396 : vector<8x1xf32> to vector<8x8xf32>
    %398 = arith.subf %394, %397 : vector<8x8xf32>
    %399 = math.exp %398 : vector<8x8xf32>
    %cst_179 = arith.constant dense<0.000000e+00> : vector<8xf32>
    %400 = vector.multi_reduction <add>, %399, %cst_179 [1] : vector<8x8xf32> to vector<8xf32>
    %401 = vector.shape_cast %400 : vector<8xf32> to vector<8x1xf32>
    %402 = vector.broadcast %401 : vector<8x1xf32> to vector<8x8xf32>
    %403 = arith.divf %399, %402 : vector<8x8xf32>
    %cst_180 = arith.constant dense<0.000000e+00> : vector<8x8xf32>
    %404 = tpu.matmul %403, %389, %cst_180 {dimension_numbers = #tpu.dot_dimension_numbers<[1], [0], [0], [1], [0, 0, 1, 1], [], []>} : vector<8x8xf32>, vector<8x8xf32>, vector<8x8xf32> -> vector<8x8xf32>
    %405 = vector.extract_strided_slice %338 {offsets = [2, 0, 0], sizes = [1, 8, 32], strides = [1, 1, 1]} : vector<4x8x32xf32> to vector<1x8x32xf32>
    %406 = vector.shape_cast %405 : vector<1x8x32xf32> to vector<8x32xf32>
    %cst_181 = arith.constant dense<0.000000e+00> : vector<8x32xf32>
    %407 = tpu.matmul %404, %406, %cst_181 {dimension_numbers = #tpu.dot_dimension_numbers<[1], [0], [0], [1], [0, 0, 1, 1], [], []>} : vector<8x8xf32>, vector<8x32xf32>, vector<8x32xf32> -> vector<8x32xf32>
    %408 = arith.addf %386, %407 : vector<8x32xf32>
    %409 = vector.extract_strided_slice %335 {offsets = [0, 24], sizes = [8, 8], strides = [1, 1]} : vector<8x32xf32> to vector<8x8xf32>
    %410 = vector.extract_strided_slice %336 {offsets = [0, 24], sizes = [8, 8], strides = [1, 1]} : vector<8x64xf32> to vector<8x8xf32>
    %411 = vector.extract_strided_slice %336 {offsets = [0, 56], sizes = [8, 8], strides = [1, 1]} : vector<8x64xf32> to vector<8x8xf32>
    %cst_182 = arith.constant dense<0.000000e+00> : vector<8x8xf32>
    %412 = tpu.matmul %409, %410, %cst_182 {dimension_numbers = #tpu.dot_dimension_numbers<[1], [1], [0], [0], [0, 0, 1, 0], [], []>} : vector<8x8xf32>, vector<8x8xf32>, vector<8x8xf32> -> vector<8x8xf32>
    %cst_183 = arith.constant 0.353553385 : f32
    %413 = vector.broadcast %cst_183 : f32 to vector<8x8xf32>
    %414 = arith.mulf %412, %413 : vector<8x8xf32>
    %cst_184 = arith.constant -1.000000e+30 : f32
    %415 = vector.broadcast %cst_184 : f32 to vector<8x8xf32>
    %416 = arith.select %341, %414, %415 : vector<8x8xi1>, vector<8x8xf32>
    %cst_185 = arith.constant dense<0xFF800000> : vector<8xf32>
    %417 = vector.multi_reduction <maximumf>, %416, %cst_185 [1] : vector<8x8xf32> to vector<8xf32>
    %418 = vector.shape_cast %417 : vector<8xf32> to vector<8x1xf32>
    %419 = vector.broadcast %418 : vector<8x1xf32> to vector<8x8xf32>
    %420 = arith.subf %416, %419 : vector<8x8xf32>
    %421 = math.exp %420 : vector<8x8xf32>
    %cst_186 = arith.constant dense<0.000000e+00> : vector<8xf32>
    %422 = vector.multi_reduction <add>, %421, %cst_186 [1] : vector<8x8xf32> to vector<8xf32>
    %423 = vector.shape_cast %422 : vector<8xf32> to vector<8x1xf32>
    %424 = vector.broadcast %423 : vector<8x1xf32> to vector<8x8xf32>
    %425 = arith.divf %421, %424 : vector<8x8xf32>
    %cst_187 = arith.constant dense<0.000000e+00> : vector<8x8xf32>
    %426 = tpu.matmul %425, %411, %cst_187 {dimension_numbers = #tpu.dot_dimension_numbers<[1], [0], [0], [1], [0, 0, 1, 1], [], []>} : vector<8x8xf32>, vector<8x8xf32>, vector<8x8xf32> -> vector<8x8xf32>
    %427 = vector.extract_strided_slice %338 {offsets = [3, 0, 0], sizes = [1, 8, 32], strides = [1, 1, 1]} : vector<4x8x32xf32> to vector<1x8x32xf32>
    %428 = vector.shape_cast %427 : vector<1x8x32xf32> to vector<8x32xf32>
    %cst_188 = arith.constant dense<0.000000e+00> : vector<8x32xf32>
    %429 = tpu.matmul %426, %428, %cst_188 {dimension_numbers = #tpu.dot_dimension_numbers<[1], [0], [0], [1], [0, 0, 1, 1], [], []>} : vector<8x8xf32>, vector<8x32xf32>, vector<8x32xf32> -> vector<8x32xf32>
    %430 = arith.addf %408, %429 : vector<8x32xf32>
    %431 = arith.addf %430, %327 : vector<8x32xf32>
    %c0_189 = arith.constant 0 : index
    %c0_190 = arith.constant 0 : index
    %c0_191 = arith.constant 0 : index
    %432 = vector.load %arg17[%c0_189, %c0_190, %c0_191] : memref<2x1x32xf32, #tpu.memory_space<vmem>>, vector<1x1x32xf32>
    %433 = vector.shape_cast %432 : vector<1x1x32xf32> to vector<1x32xf32>
    %c0_192 = arith.constant 0 : index
    %c0_193 = arith.constant 0 : index
    %c0_194 = arith.constant 0 : index
    %434 = vector.load %arg18[%c0_192, %c0_193, %c0_194] : memref<2x1x32xf32, #tpu.memory_space<vmem>>, vector<1x1x32xf32>
    %435 = vector.shape_cast %434 : vector<1x1x32xf32> to vector<1x32xf32>
    %cst_195 = arith.constant dense<0.000000e+00> : vector<8xf32>
    %436 = vector.multi_reduction <add>, %431, %cst_195 [1] : vector<8x32xf32> to vector<8xf32>
    %437 = vector.shape_cast %436 : vector<8xf32> to vector<8x1xf32>
    %cst_196 = arith.constant 3.200000e+01 : f32
    %438 = vector.broadcast %cst_196 : f32 to vector<8x1xf32>
    %439 = arith.divf %437, %438 : vector<8x1xf32>
    %440 = vector.broadcast %439 : vector<8x1xf32> to vector<8x32xf32>
    %441 = arith.subf %431, %440 : vector<8x32xf32>
    %442 = arith.mulf %441, %441 : vector<8x32xf32>
    %cst_197 = arith.constant dense<0.000000e+00> : vector<8xf32>
    %443 = vector.multi_reduction <add>, %442, %cst_197 [1] : vector<8x32xf32> to vector<8xf32>
    %444 = vector.shape_cast %443 : vector<8xf32> to vector<8x1xf32>
    %cst_198 = arith.constant 3.200000e+01 : f32
    %445 = vector.broadcast %cst_198 : f32 to vector<8x1xf32>
    %446 = arith.divf %444, %445 : vector<8x1xf32>
    %447 = vector.broadcast %439 : vector<8x1xf32> to vector<8x32xf32>
    %448 = arith.subf %431, %447 : vector<8x32xf32>
    %cst_199 = arith.constant 9.99999974E-6 : f32
    %449 = vector.broadcast %cst_199 : f32 to vector<8x1xf32>
    %450 = arith.addf %446, %449 : vector<8x1xf32>
    %451 = math.rsqrt %450 : vector<8x1xf32>
    %452 = vector.broadcast %451 : vector<8x1xf32> to vector<8x32xf32>
    %453 = arith.mulf %448, %452 : vector<8x32xf32>
    %454 = vector.broadcast %433 : vector<1x32xf32> to vector<8x32xf32>
    %455 = arith.mulf %453, %454 : vector<8x32xf32>
    %456 = vector.broadcast %435 : vector<1x32xf32> to vector<8x32xf32>
    %457 = arith.addf %455, %456 : vector<8x32xf32>
    %c0_200 = arith.constant 0 : index
    %c0_201 = arith.constant 0 : index
    %c0_202 = arith.constant 0 : index
    %458 = vector.load %arg19[%c0_200, %c0_201, %c0_202] : memref<2x32x32xf32, #tpu.memory_space<vmem>>, vector<1x32x32xf32>
    %459 = vector.shape_cast %458 : vector<1x32x32xf32> to vector<32x32xf32>
    %cst_203 = arith.constant dense<0.000000e+00> : vector<8x32xf32>
    %460 = tpu.matmul %457, %459, %cst_203 {dimension_numbers = #tpu.dot_dimension_numbers<[1], [0], [0], [1], [0, 0, 1, 1], [], []>} : vector<8x32xf32>, vector<32x32xf32>, vector<8x32xf32> -> vector<8x32xf32>
    %c0_204 = arith.constant 0 : index
    %c0_205 = arith.constant 0 : index
    %c0_206 = arith.constant 0 : index
    %461 = vector.load %arg20[%c0_204, %c0_205, %c0_206] : memref<2x1x32xf32, #tpu.memory_space<vmem>>, vector<1x1x32xf32>
    %462 = vector.shape_cast %461 : vector<1x1x32xf32> to vector<1x32xf32>
    %463 = vector.broadcast %462 : vector<1x32xf32> to vector<8x32xf32>
    %464 = arith.addf %460, %463 : vector<8x32xf32>
    %c0_207 = arith.constant 0 : index
    %c0_208 = arith.constant 0 : index
    %c0_209 = arith.constant 0 : index
    %465 = vector.load %arg21[%c0_207, %c0_208, %c0_209] : memref<2x32x64xf32, #tpu.memory_space<vmem>>, vector<1x32x64xf32>
    %466 = vector.shape_cast %465 : vector<1x32x64xf32> to vector<32x64xf32>
    %cst_210 = arith.constant dense<0.000000e+00> : vector<8x64xf32>
    %467 = tpu.matmul %325, %466, %cst_210 {dimension_numbers = #tpu.dot_dimension_numbers<[1], [0], [0], [1], [0, 0, 1, 1], [], []>} : vector<8x32xf32>, vector<32x64xf32>, vector<8x64xf32> -> vector<8x64xf32>
    %c0_211 = arith.constant 0 : index
    %c0_212 = arith.constant 0 : index
    %c0_213 = arith.constant 0 : index
    %468 = vector.load %arg22[%c0_211, %c0_212, %c0_213] : memref<2x1x64xf32, #tpu.memory_space<vmem>>, vector<1x1x64xf32>
    %469 = vector.shape_cast %468 : vector<1x1x64xf32> to vector<1x64xf32>
    %470 = vector.broadcast %469 : vector<1x64xf32> to vector<8x64xf32>
    %471 = arith.addf %467, %470 : vector<8x64xf32>
    %c0_214 = arith.constant 0 : index
    %c0_215 = arith.constant 0 : index
    %c0_216 = arith.constant 0 : index
    %c0_217 = arith.constant 0 : index
    %472 = vector.load %arg23[%c0_214, %c0_215, %c0_216, %c0_217] : memref<2x4x8x32xf32, #tpu.memory_space<vmem>>, vector<1x4x8x32xf32>
    %473 = vector.shape_cast %472 : vector<1x4x8x32xf32> to vector<4x8x32xf32>
    %cst_218 = arith.constant 0.000000e+00 : f32
    %474 = vector.broadcast %cst_218 : f32 to vector<8x32xf32>
    %475 = vector.extract_strided_slice %464 {offsets = [0, 0], sizes = [8, 8], strides = [1, 1]} : vector<8x32xf32> to vector<8x8xf32>
    %476 = vector.extract_strided_slice %471 {offsets = [0, 0], sizes = [8, 8], strides = [1, 1]} : vector<8x64xf32> to vector<8x8xf32>
    %477 = vector.extract_strided_slice %471 {offsets = [0, 32], sizes = [8, 8], strides = [1, 1]} : vector<8x64xf32> to vector<8x8xf32>
    %cst_219 = arith.constant dense<0.000000e+00> : vector<8x8xf32>
    %478 = tpu.matmul %475, %476, %cst_219 {dimension_numbers = #tpu.dot_dimension_numbers<[1], [1], [0], [0], [0, 0, 1, 0], [], []>} : vector<8x8xf32>, vector<8x8xf32>, vector<8x8xf32> -> vector<8x8xf32>
    %cst_220 = arith.constant 0.353553385 : f32
    %479 = vector.broadcast %cst_220 : f32 to vector<8x8xf32>
    %480 = arith.mulf %478, %479 : vector<8x8xf32>
    %cst_221 = arith.constant dense<0xFF800000> : vector<8xf32>
    %481 = vector.multi_reduction <maximumf>, %480, %cst_221 [1] : vector<8x8xf32> to vector<8xf32>
    %482 = vector.shape_cast %481 : vector<8xf32> to vector<8x1xf32>
    %483 = vector.broadcast %482 : vector<8x1xf32> to vector<8x8xf32>
    %484 = arith.subf %480, %483 : vector<8x8xf32>
    %485 = math.exp %484 : vector<8x8xf32>
    %cst_222 = arith.constant dense<0.000000e+00> : vector<8xf32>
    %486 = vector.multi_reduction <add>, %485, %cst_222 [1] : vector<8x8xf32> to vector<8xf32>
    %487 = vector.shape_cast %486 : vector<8xf32> to vector<8x1xf32>
    %488 = vector.broadcast %487 : vector<8x1xf32> to vector<8x8xf32>
    %489 = arith.divf %485, %488 : vector<8x8xf32>
    %cst_223 = arith.constant dense<0.000000e+00> : vector<8x8xf32>
    %490 = tpu.matmul %489, %477, %cst_223 {dimension_numbers = #tpu.dot_dimension_numbers<[1], [0], [0], [1], [0, 0, 1, 1], [], []>} : vector<8x8xf32>, vector<8x8xf32>, vector<8x8xf32> -> vector<8x8xf32>
    %491 = vector.extract_strided_slice %473 {offsets = [0, 0, 0], sizes = [1, 8, 32], strides = [1, 1, 1]} : vector<4x8x32xf32> to vector<1x8x32xf32>
    %492 = vector.shape_cast %491 : vector<1x8x32xf32> to vector<8x32xf32>
    %cst_224 = arith.constant dense<0.000000e+00> : vector<8x32xf32>
    %493 = tpu.matmul %490, %492, %cst_224 {dimension_numbers = #tpu.dot_dimension_numbers<[1], [0], [0], [1], [0, 0, 1, 1], [], []>} : vector<8x8xf32>, vector<8x32xf32>, vector<8x32xf32> -> vector<8x32xf32>
    %494 = arith.addf %474, %493 : vector<8x32xf32>
    %495 = vector.extract_strided_slice %464 {offsets = [0, 8], sizes = [8, 8], strides = [1, 1]} : vector<8x32xf32> to vector<8x8xf32>
    %496 = vector.extract_strided_slice %471 {offsets = [0, 8], sizes = [8, 8], strides = [1, 1]} : vector<8x64xf32> to vector<8x8xf32>
    %497 = vector.extract_strided_slice %471 {offsets = [0, 40], sizes = [8, 8], strides = [1, 1]} : vector<8x64xf32> to vector<8x8xf32>
    %cst_225 = arith.constant dense<0.000000e+00> : vector<8x8xf32>
    %498 = tpu.matmul %495, %496, %cst_225 {dimension_numbers = #tpu.dot_dimension_numbers<[1], [1], [0], [0], [0, 0, 1, 0], [], []>} : vector<8x8xf32>, vector<8x8xf32>, vector<8x8xf32> -> vector<8x8xf32>
    %cst_226 = arith.constant 0.353553385 : f32
    %499 = vector.broadcast %cst_226 : f32 to vector<8x8xf32>
    %500 = arith.mulf %498, %499 : vector<8x8xf32>
    %cst_227 = arith.constant dense<0xFF800000> : vector<8xf32>
    %501 = vector.multi_reduction <maximumf>, %500, %cst_227 [1] : vector<8x8xf32> to vector<8xf32>
    %502 = vector.shape_cast %501 : vector<8xf32> to vector<8x1xf32>
    %503 = vector.broadcast %502 : vector<8x1xf32> to vector<8x8xf32>
    %504 = arith.subf %500, %503 : vector<8x8xf32>
    %505 = math.exp %504 : vector<8x8xf32>
    %cst_228 = arith.constant dense<0.000000e+00> : vector<8xf32>
    %506 = vector.multi_reduction <add>, %505, %cst_228 [1] : vector<8x8xf32> to vector<8xf32>
    %507 = vector.shape_cast %506 : vector<8xf32> to vector<8x1xf32>
    %508 = vector.broadcast %507 : vector<8x1xf32> to vector<8x8xf32>
    %509 = arith.divf %505, %508 : vector<8x8xf32>
    %cst_229 = arith.constant dense<0.000000e+00> : vector<8x8xf32>
    %510 = tpu.matmul %509, %497, %cst_229 {dimension_numbers = #tpu.dot_dimension_numbers<[1], [0], [0], [1], [0, 0, 1, 1], [], []>} : vector<8x8xf32>, vector<8x8xf32>, vector<8x8xf32> -> vector<8x8xf32>
    %511 = vector.extract_strided_slice %473 {offsets = [1, 0, 0], sizes = [1, 8, 32], strides = [1, 1, 1]} : vector<4x8x32xf32> to vector<1x8x32xf32>
    %512 = vector.shape_cast %511 : vector<1x8x32xf32> to vector<8x32xf32>
    %cst_230 = arith.constant dense<0.000000e+00> : vector<8x32xf32>
    %513 = tpu.matmul %510, %512, %cst_230 {dimension_numbers = #tpu.dot_dimension_numbers<[1], [0], [0], [1], [0, 0, 1, 1], [], []>} : vector<8x8xf32>, vector<8x32xf32>, vector<8x32xf32> -> vector<8x32xf32>
    %514 = arith.addf %494, %513 : vector<8x32xf32>
    %515 = vector.extract_strided_slice %464 {offsets = [0, 16], sizes = [8, 8], strides = [1, 1]} : vector<8x32xf32> to vector<8x8xf32>
    %516 = vector.extract_strided_slice %471 {offsets = [0, 16], sizes = [8, 8], strides = [1, 1]} : vector<8x64xf32> to vector<8x8xf32>
    %517 = vector.extract_strided_slice %471 {offsets = [0, 48], sizes = [8, 8], strides = [1, 1]} : vector<8x64xf32> to vector<8x8xf32>
    %cst_231 = arith.constant dense<0.000000e+00> : vector<8x8xf32>
    %518 = tpu.matmul %515, %516, %cst_231 {dimension_numbers = #tpu.dot_dimension_numbers<[1], [1], [0], [0], [0, 0, 1, 0], [], []>} : vector<8x8xf32>, vector<8x8xf32>, vector<8x8xf32> -> vector<8x8xf32>
    %cst_232 = arith.constant 0.353553385 : f32
    %519 = vector.broadcast %cst_232 : f32 to vector<8x8xf32>
    %520 = arith.mulf %518, %519 : vector<8x8xf32>
    %cst_233 = arith.constant dense<0xFF800000> : vector<8xf32>
    %521 = vector.multi_reduction <maximumf>, %520, %cst_233 [1] : vector<8x8xf32> to vector<8xf32>
    %522 = vector.shape_cast %521 : vector<8xf32> to vector<8x1xf32>
    %523 = vector.broadcast %522 : vector<8x1xf32> to vector<8x8xf32>
    %524 = arith.subf %520, %523 : vector<8x8xf32>
    %525 = math.exp %524 : vector<8x8xf32>
    %cst_234 = arith.constant dense<0.000000e+00> : vector<8xf32>
    %526 = vector.multi_reduction <add>, %525, %cst_234 [1] : vector<8x8xf32> to vector<8xf32>
    %527 = vector.shape_cast %526 : vector<8xf32> to vector<8x1xf32>
    %528 = vector.broadcast %527 : vector<8x1xf32> to vector<8x8xf32>
    %529 = arith.divf %525, %528 : vector<8x8xf32>
    %cst_235 = arith.constant dense<0.000000e+00> : vector<8x8xf32>
    %530 = tpu.matmul %529, %517, %cst_235 {dimension_numbers = #tpu.dot_dimension_numbers<[1], [0], [0], [1], [0, 0, 1, 1], [], []>} : vector<8x8xf32>, vector<8x8xf32>, vector<8x8xf32> -> vector<8x8xf32>
    %531 = vector.extract_strided_slice %473 {offsets = [2, 0, 0], sizes = [1, 8, 32], strides = [1, 1, 1]} : vector<4x8x32xf32> to vector<1x8x32xf32>
    %532 = vector.shape_cast %531 : vector<1x8x32xf32> to vector<8x32xf32>
    %cst_236 = arith.constant dense<0.000000e+00> : vector<8x32xf32>
    %533 = tpu.matmul %530, %532, %cst_236 {dimension_numbers = #tpu.dot_dimension_numbers<[1], [0], [0], [1], [0, 0, 1, 1], [], []>} : vector<8x8xf32>, vector<8x32xf32>, vector<8x32xf32> -> vector<8x32xf32>
    %534 = arith.addf %514, %533 : vector<8x32xf32>
    %535 = vector.extract_strided_slice %464 {offsets = [0, 24], sizes = [8, 8], strides = [1, 1]} : vector<8x32xf32> to vector<8x8xf32>
    %536 = vector.extract_strided_slice %471 {offsets = [0, 24], sizes = [8, 8], strides = [1, 1]} : vector<8x64xf32> to vector<8x8xf32>
    %537 = vector.extract_strided_slice %471 {offsets = [0, 56], sizes = [8, 8], strides = [1, 1]} : vector<8x64xf32> to vector<8x8xf32>
    %cst_237 = arith.constant dense<0.000000e+00> : vector<8x8xf32>
    %538 = tpu.matmul %535, %536, %cst_237 {dimension_numbers = #tpu.dot_dimension_numbers<[1], [1], [0], [0], [0, 0, 1, 0], [], []>} : vector<8x8xf32>, vector<8x8xf32>, vector<8x8xf32> -> vector<8x8xf32>
    %cst_238 = arith.constant 0.353553385 : f32
    %539 = vector.broadcast %cst_238 : f32 to vector<8x8xf32>
    %540 = arith.mulf %538, %539 : vector<8x8xf32>
    %cst_239 = arith.constant dense<0xFF800000> : vector<8xf32>
    %541 = vector.multi_reduction <maximumf>, %540, %cst_239 [1] : vector<8x8xf32> to vector<8xf32>
    %542 = vector.shape_cast %541 : vector<8xf32> to vector<8x1xf32>
    %543 = vector.broadcast %542 : vector<8x1xf32> to vector<8x8xf32>
    %544 = arith.subf %540, %543 : vector<8x8xf32>
    %545 = math.exp %544 : vector<8x8xf32>
    %cst_240 = arith.constant dense<0.000000e+00> : vector<8xf32>
    %546 = vector.multi_reduction <add>, %545, %cst_240 [1] : vector<8x8xf32> to vector<8xf32>
    %547 = vector.shape_cast %546 : vector<8xf32> to vector<8x1xf32>
    %548 = vector.broadcast %547 : vector<8x1xf32> to vector<8x8xf32>
    %549 = arith.divf %545, %548 : vector<8x8xf32>
    %cst_241 = arith.constant dense<0.000000e+00> : vector<8x8xf32>
    %550 = tpu.matmul %549, %537, %cst_241 {dimension_numbers = #tpu.dot_dimension_numbers<[1], [0], [0], [1], [0, 0, 1, 1], [], []>} : vector<8x8xf32>, vector<8x8xf32>, vector<8x8xf32> -> vector<8x8xf32>
    %551 = vector.extract_strided_slice %473 {offsets = [3, 0, 0], sizes = [1, 8, 32], strides = [1, 1, 1]} : vector<4x8x32xf32> to vector<1x8x32xf32>
    %552 = vector.shape_cast %551 : vector<1x8x32xf32> to vector<8x32xf32>
    %cst_242 = arith.constant dense<0.000000e+00> : vector<8x32xf32>
    %553 = tpu.matmul %550, %552, %cst_242 {dimension_numbers = #tpu.dot_dimension_numbers<[1], [0], [0], [1], [0, 0, 1, 1], [], []>} : vector<8x8xf32>, vector<8x32xf32>, vector<8x32xf32> -> vector<8x32xf32>
    %554 = arith.addf %534, %553 : vector<8x32xf32>
    %555 = arith.addf %554, %457 : vector<8x32xf32>
    %c0_243 = arith.constant 0 : index
    %c0_244 = arith.constant 0 : index
    %c0_245 = arith.constant 0 : index
    %556 = vector.load %arg24[%c0_243, %c0_244, %c0_245] : memref<2x1x32xf32, #tpu.memory_space<vmem>>, vector<1x1x32xf32>
    %557 = vector.shape_cast %556 : vector<1x1x32xf32> to vector<1x32xf32>
    %c0_246 = arith.constant 0 : index
    %c0_247 = arith.constant 0 : index
    %c0_248 = arith.constant 0 : index
    %558 = vector.load %arg25[%c0_246, %c0_247, %c0_248] : memref<2x1x32xf32, #tpu.memory_space<vmem>>, vector<1x1x32xf32>
    %559 = vector.shape_cast %558 : vector<1x1x32xf32> to vector<1x32xf32>
    %cst_249 = arith.constant dense<0.000000e+00> : vector<8xf32>
    %560 = vector.multi_reduction <add>, %555, %cst_249 [1] : vector<8x32xf32> to vector<8xf32>
    %561 = vector.shape_cast %560 : vector<8xf32> to vector<8x1xf32>
    %cst_250 = arith.constant 3.200000e+01 : f32
    %562 = vector.broadcast %cst_250 : f32 to vector<8x1xf32>
    %563 = arith.divf %561, %562 : vector<8x1xf32>
    %564 = vector.broadcast %563 : vector<8x1xf32> to vector<8x32xf32>
    %565 = arith.subf %555, %564 : vector<8x32xf32>
    %566 = arith.mulf %565, %565 : vector<8x32xf32>
    %cst_251 = arith.constant dense<0.000000e+00> : vector<8xf32>
    %567 = vector.multi_reduction <add>, %566, %cst_251 [1] : vector<8x32xf32> to vector<8xf32>
    %568 = vector.shape_cast %567 : vector<8xf32> to vector<8x1xf32>
    %cst_252 = arith.constant 3.200000e+01 : f32
    %569 = vector.broadcast %cst_252 : f32 to vector<8x1xf32>
    %570 = arith.divf %568, %569 : vector<8x1xf32>
    %571 = vector.broadcast %563 : vector<8x1xf32> to vector<8x32xf32>
    %572 = arith.subf %555, %571 : vector<8x32xf32>
    %cst_253 = arith.constant 9.99999974E-6 : f32
    %573 = vector.broadcast %cst_253 : f32 to vector<8x1xf32>
    %574 = arith.addf %570, %573 : vector<8x1xf32>
    %575 = math.rsqrt %574 : vector<8x1xf32>
    %576 = vector.broadcast %575 : vector<8x1xf32> to vector<8x32xf32>
    %577 = arith.mulf %572, %576 : vector<8x32xf32>
    %578 = vector.broadcast %557 : vector<1x32xf32> to vector<8x32xf32>
    %579 = arith.mulf %577, %578 : vector<8x32xf32>
    %580 = vector.broadcast %559 : vector<1x32xf32> to vector<8x32xf32>
    %581 = arith.addf %579, %580 : vector<8x32xf32>
    %c0_254 = arith.constant 0 : index
    %c0_255 = arith.constant 0 : index
    %c0_256 = arith.constant 0 : index
    %582 = vector.load %arg26[%c0_254, %c0_255, %c0_256] : memref<2x32x64xf32, #tpu.memory_space<vmem>>, vector<1x32x64xf32>
    %583 = vector.shape_cast %582 : vector<1x32x64xf32> to vector<32x64xf32>
    %c0_257 = arith.constant 0 : index
    %c0_258 = arith.constant 0 : index
    %c0_259 = arith.constant 0 : index
    %584 = vector.load %arg27[%c0_257, %c0_258, %c0_259] : memref<2x1x64xf32, #tpu.memory_space<vmem>>, vector<1x1x64xf32>
    %585 = vector.shape_cast %584 : vector<1x1x64xf32> to vector<1x64xf32>
    %c0_260 = arith.constant 0 : index
    %c0_261 = arith.constant 0 : index
    %c0_262 = arith.constant 0 : index
    %586 = vector.load %arg28[%c0_260, %c0_261, %c0_262] : memref<2x64x32xf32, #tpu.memory_space<vmem>>, vector<1x64x32xf32>
    %587 = vector.shape_cast %586 : vector<1x64x32xf32> to vector<64x32xf32>
    %c0_263 = arith.constant 0 : index
    %c0_264 = arith.constant 0 : index
    %c0_265 = arith.constant 0 : index
    %588 = vector.load %arg29[%c0_263, %c0_264, %c0_265] : memref<2x1x32xf32, #tpu.memory_space<vmem>>, vector<1x1x32xf32>
    %589 = vector.shape_cast %588 : vector<1x1x32xf32> to vector<1x32xf32>
    %cst_266 = arith.constant dense<0.000000e+00> : vector<8x64xf32>
    %590 = tpu.matmul %581, %583, %cst_266 {dimension_numbers = #tpu.dot_dimension_numbers<[1], [0], [0], [1], [0, 0, 1, 1], [], []>} : vector<8x32xf32>, vector<32x64xf32>, vector<8x64xf32> -> vector<8x64xf32>
    %591 = vector.broadcast %585 : vector<1x64xf32> to vector<8x64xf32>
    %592 = arith.addf %590, %591 : vector<8x64xf32>
    %cst_267 = arith.constant 0.000000e+00 : f32
    %593 = vector.broadcast %cst_267 : f32 to vector<8x64xf32>
    %594 = arith.maximumf %592, %593 : vector<8x64xf32>
    %cst_268 = arith.constant dense<0.000000e+00> : vector<8x32xf32>
    %595 = tpu.matmul %594, %587, %cst_268 {dimension_numbers = #tpu.dot_dimension_numbers<[1], [0], [0], [1], [0, 0, 1, 1], [], []>} : vector<8x64xf32>, vector<64x32xf32>, vector<8x32xf32> -> vector<8x32xf32>
    %596 = vector.broadcast %589 : vector<1x32xf32> to vector<8x32xf32>
    %597 = arith.addf %595, %596 : vector<8x32xf32>
    %598 = arith.addf %597, %581 : vector<8x32xf32>
    %c0_269 = arith.constant 0 : index
    %c0_270 = arith.constant 0 : index
    %c0_271 = arith.constant 0 : index
    %599 = vector.load %arg30[%c0_269, %c0_270, %c0_271] : memref<2x1x32xf32, #tpu.memory_space<vmem>>, vector<1x1x32xf32>
    %600 = vector.shape_cast %599 : vector<1x1x32xf32> to vector<1x32xf32>
    %c0_272 = arith.constant 0 : index
    %c0_273 = arith.constant 0 : index
    %c0_274 = arith.constant 0 : index
    %601 = vector.load %arg31[%c0_272, %c0_273, %c0_274] : memref<2x1x32xf32, #tpu.memory_space<vmem>>, vector<1x1x32xf32>
    %602 = vector.shape_cast %601 : vector<1x1x32xf32> to vector<1x32xf32>
    %cst_275 = arith.constant dense<0.000000e+00> : vector<8xf32>
    %603 = vector.multi_reduction <add>, %598, %cst_275 [1] : vector<8x32xf32> to vector<8xf32>
    %604 = vector.shape_cast %603 : vector<8xf32> to vector<8x1xf32>
    %cst_276 = arith.constant 3.200000e+01 : f32
    %605 = vector.broadcast %cst_276 : f32 to vector<8x1xf32>
    %606 = arith.divf %604, %605 : vector<8x1xf32>
    %607 = vector.broadcast %606 : vector<8x1xf32> to vector<8x32xf32>
    %608 = arith.subf %598, %607 : vector<8x32xf32>
    %609 = arith.mulf %608, %608 : vector<8x32xf32>
    %cst_277 = arith.constant dense<0.000000e+00> : vector<8xf32>
    %610 = vector.multi_reduction <add>, %609, %cst_277 [1] : vector<8x32xf32> to vector<8xf32>
    %611 = vector.shape_cast %610 : vector<8xf32> to vector<8x1xf32>
    %cst_278 = arith.constant 3.200000e+01 : f32
    %612 = vector.broadcast %cst_278 : f32 to vector<8x1xf32>
    %613 = arith.divf %611, %612 : vector<8x1xf32>
    %614 = vector.broadcast %606 : vector<8x1xf32> to vector<8x32xf32>
    %615 = arith.subf %598, %614 : vector<8x32xf32>
    %cst_279 = arith.constant 9.99999974E-6 : f32
    %616 = vector.broadcast %cst_279 : f32 to vector<8x1xf32>
    %617 = arith.addf %613, %616 : vector<8x1xf32>
    %618 = math.rsqrt %617 : vector<8x1xf32>
    %619 = vector.broadcast %618 : vector<8x1xf32> to vector<8x32xf32>
    %620 = arith.mulf %615, %619 : vector<8x32xf32>
    %621 = vector.broadcast %600 : vector<1x32xf32> to vector<8x32xf32>
    %622 = arith.mulf %620, %621 : vector<8x32xf32>
    %623 = vector.broadcast %602 : vector<1x32xf32> to vector<8x32xf32>
    %624 = arith.addf %622, %623 : vector<8x32xf32>
    %c1_280 = arith.constant 1 : index
    %c0_281 = arith.constant 0 : index
    %c0_282 = arith.constant 0 : index
    %625 = vector.load %arg14[%c1_280, %c0_281, %c0_282] : memref<2x32x96xf32, #tpu.memory_space<vmem>>, vector<1x32x96xf32>
    %626 = vector.shape_cast %625 : vector<1x32x96xf32> to vector<32x96xf32>
    %cst_283 = arith.constant dense<0.000000e+00> : vector<8x96xf32>
    %627 = tpu.matmul %624, %626, %cst_283 {dimension_numbers = #tpu.dot_dimension_numbers<[1], [0], [0], [1], [0, 0, 1, 1], [], []>} : vector<8x32xf32>, vector<32x96xf32>, vector<8x96xf32> -> vector<8x96xf32>
    %c1_284 = arith.constant 1 : index
    %c0_285 = arith.constant 0 : index
    %c0_286 = arith.constant 0 : index
    %628 = vector.load %arg15[%c1_284, %c0_285, %c0_286] : memref<2x1x96xf32, #tpu.memory_space<vmem>>, vector<1x1x96xf32>
    %629 = vector.shape_cast %628 : vector<1x1x96xf32> to vector<1x96xf32>
    %630 = vector.broadcast %629 : vector<1x96xf32> to vector<8x96xf32>
    %631 = arith.addf %627, %630 : vector<8x96xf32>
    %632 = vector.extract_strided_slice %631 {offsets = [0, 0], sizes = [8, 32], strides = [1, 1]} : vector<8x96xf32> to vector<8x32xf32>
    %633 = vector.extract_strided_slice %631 {offsets = [0, 32], sizes = [8, 64], strides = [1, 1]} : vector<8x96xf32> to vector<8x64xf32>
    %c1_287 = arith.constant 1 : index
    %c0_288 = arith.constant 0 : index
    %c0_289 = arith.constant 0 : index
    %c0_290 = arith.constant 0 : index
    %634 = vector.load %arg16[%c1_287, %c0_288, %c0_289, %c0_290] : memref<2x4x8x32xf32, #tpu.memory_space<vmem>>, vector<1x4x8x32xf32>
    %635 = vector.shape_cast %634 : vector<1x4x8x32xf32> to vector<4x8x32xf32>
    %636 = tpu.iota {dimensions = array<i32: 0>} : vector<8x8xi32>
    %637 = tpu.iota {dimensions = array<i32: 1>} : vector<8x8xi32>
    %638 = arith.cmpi sle, %637, %636 : vector<8x8xi32>
    %cst_291 = arith.constant 0.000000e+00 : f32
    %639 = vector.broadcast %cst_291 : f32 to vector<8x32xf32>
    %640 = vector.extract_strided_slice %632 {offsets = [0, 0], sizes = [8, 8], strides = [1, 1]} : vector<8x32xf32> to vector<8x8xf32>
    %641 = vector.extract_strided_slice %633 {offsets = [0, 0], sizes = [8, 8], strides = [1, 1]} : vector<8x64xf32> to vector<8x8xf32>
    %642 = vector.extract_strided_slice %633 {offsets = [0, 32], sizes = [8, 8], strides = [1, 1]} : vector<8x64xf32> to vector<8x8xf32>
    %cst_292 = arith.constant dense<0.000000e+00> : vector<8x8xf32>
    %643 = tpu.matmul %640, %641, %cst_292 {dimension_numbers = #tpu.dot_dimension_numbers<[1], [1], [0], [0], [0, 0, 1, 0], [], []>} : vector<8x8xf32>, vector<8x8xf32>, vector<8x8xf32> -> vector<8x8xf32>
    %cst_293 = arith.constant 0.353553385 : f32
    %644 = vector.broadcast %cst_293 : f32 to vector<8x8xf32>
    %645 = arith.mulf %643, %644 : vector<8x8xf32>
    %cst_294 = arith.constant -1.000000e+30 : f32
    %646 = vector.broadcast %cst_294 : f32 to vector<8x8xf32>
    %647 = arith.select %638, %645, %646 : vector<8x8xi1>, vector<8x8xf32>
    %cst_295 = arith.constant dense<0xFF800000> : vector<8xf32>
    %648 = vector.multi_reduction <maximumf>, %647, %cst_295 [1] : vector<8x8xf32> to vector<8xf32>
    %649 = vector.shape_cast %648 : vector<8xf32> to vector<8x1xf32>
    %650 = vector.broadcast %649 : vector<8x1xf32> to vector<8x8xf32>
    %651 = arith.subf %647, %650 : vector<8x8xf32>
    %652 = math.exp %651 : vector<8x8xf32>
    %cst_296 = arith.constant dense<0.000000e+00> : vector<8xf32>
    %653 = vector.multi_reduction <add>, %652, %cst_296 [1] : vector<8x8xf32> to vector<8xf32>
    %654 = vector.shape_cast %653 : vector<8xf32> to vector<8x1xf32>
    %655 = vector.broadcast %654 : vector<8x1xf32> to vector<8x8xf32>
    %656 = arith.divf %652, %655 : vector<8x8xf32>
    %cst_297 = arith.constant dense<0.000000e+00> : vector<8x8xf32>
    %657 = tpu.matmul %656, %642, %cst_297 {dimension_numbers = #tpu.dot_dimension_numbers<[1], [0], [0], [1], [0, 0, 1, 1], [], []>} : vector<8x8xf32>, vector<8x8xf32>, vector<8x8xf32> -> vector<8x8xf32>
    %658 = vector.extract_strided_slice %635 {offsets = [0, 0, 0], sizes = [1, 8, 32], strides = [1, 1, 1]} : vector<4x8x32xf32> to vector<1x8x32xf32>
    %659 = vector.shape_cast %658 : vector<1x8x32xf32> to vector<8x32xf32>
    %cst_298 = arith.constant dense<0.000000e+00> : vector<8x32xf32>
    %660 = tpu.matmul %657, %659, %cst_298 {dimension_numbers = #tpu.dot_dimension_numbers<[1], [0], [0], [1], [0, 0, 1, 1], [], []>} : vector<8x8xf32>, vector<8x32xf32>, vector<8x32xf32> -> vector<8x32xf32>
    %661 = arith.addf %639, %660 : vector<8x32xf32>
    %662 = vector.extract_strided_slice %632 {offsets = [0, 8], sizes = [8, 8], strides = [1, 1]} : vector<8x32xf32> to vector<8x8xf32>
    %663 = vector.extract_strided_slice %633 {offsets = [0, 8], sizes = [8, 8], strides = [1, 1]} : vector<8x64xf32> to vector<8x8xf32>
    %664 = vector.extract_strided_slice %633 {offsets = [0, 40], sizes = [8, 8], strides = [1, 1]} : vector<8x64xf32> to vector<8x8xf32>
    %cst_299 = arith.constant dense<0.000000e+00> : vector<8x8xf32>
    %665 = tpu.matmul %662, %663, %cst_299 {dimension_numbers = #tpu.dot_dimension_numbers<[1], [1], [0], [0], [0, 0, 1, 0], [], []>} : vector<8x8xf32>, vector<8x8xf32>, vector<8x8xf32> -> vector<8x8xf32>
    %cst_300 = arith.constant 0.353553385 : f32
    %666 = vector.broadcast %cst_300 : f32 to vector<8x8xf32>
    %667 = arith.mulf %665, %666 : vector<8x8xf32>
    %cst_301 = arith.constant -1.000000e+30 : f32
    %668 = vector.broadcast %cst_301 : f32 to vector<8x8xf32>
    %669 = arith.select %638, %667, %668 : vector<8x8xi1>, vector<8x8xf32>
    %cst_302 = arith.constant dense<0xFF800000> : vector<8xf32>
    %670 = vector.multi_reduction <maximumf>, %669, %cst_302 [1] : vector<8x8xf32> to vector<8xf32>
    %671 = vector.shape_cast %670 : vector<8xf32> to vector<8x1xf32>
    %672 = vector.broadcast %671 : vector<8x1xf32> to vector<8x8xf32>
    %673 = arith.subf %669, %672 : vector<8x8xf32>
    %674 = math.exp %673 : vector<8x8xf32>
    %cst_303 = arith.constant dense<0.000000e+00> : vector<8xf32>
    %675 = vector.multi_reduction <add>, %674, %cst_303 [1] : vector<8x8xf32> to vector<8xf32>
    %676 = vector.shape_cast %675 : vector<8xf32> to vector<8x1xf32>
    %677 = vector.broadcast %676 : vector<8x1xf32> to vector<8x8xf32>
    %678 = arith.divf %674, %677 : vector<8x8xf32>
    %cst_304 = arith.constant dense<0.000000e+00> : vector<8x8xf32>
    %679 = tpu.matmul %678, %664, %cst_304 {dimension_numbers = #tpu.dot_dimension_numbers<[1], [0], [0], [1], [0, 0, 1, 1], [], []>} : vector<8x8xf32>, vector<8x8xf32>, vector<8x8xf32> -> vector<8x8xf32>
    %680 = vector.extract_strided_slice %635 {offsets = [1, 0, 0], sizes = [1, 8, 32], strides = [1, 1, 1]} : vector<4x8x32xf32> to vector<1x8x32xf32>
    %681 = vector.shape_cast %680 : vector<1x8x32xf32> to vector<8x32xf32>
    %cst_305 = arith.constant dense<0.000000e+00> : vector<8x32xf32>
    %682 = tpu.matmul %679, %681, %cst_305 {dimension_numbers = #tpu.dot_dimension_numbers<[1], [0], [0], [1], [0, 0, 1, 1], [], []>} : vector<8x8xf32>, vector<8x32xf32>, vector<8x32xf32> -> vector<8x32xf32>
    %683 = arith.addf %661, %682 : vector<8x32xf32>
    %684 = vector.extract_strided_slice %632 {offsets = [0, 16], sizes = [8, 8], strides = [1, 1]} : vector<8x32xf32> to vector<8x8xf32>
    %685 = vector.extract_strided_slice %633 {offsets = [0, 16], sizes = [8, 8], strides = [1, 1]} : vector<8x64xf32> to vector<8x8xf32>
    %686 = vector.extract_strided_slice %633 {offsets = [0, 48], sizes = [8, 8], strides = [1, 1]} : vector<8x64xf32> to vector<8x8xf32>
    %cst_306 = arith.constant dense<0.000000e+00> : vector<8x8xf32>
    %687 = tpu.matmul %684, %685, %cst_306 {dimension_numbers = #tpu.dot_dimension_numbers<[1], [1], [0], [0], [0, 0, 1, 0], [], []>} : vector<8x8xf32>, vector<8x8xf32>, vector<8x8xf32> -> vector<8x8xf32>
    %cst_307 = arith.constant 0.353553385 : f32
    %688 = vector.broadcast %cst_307 : f32 to vector<8x8xf32>
    %689 = arith.mulf %687, %688 : vector<8x8xf32>
    %cst_308 = arith.constant -1.000000e+30 : f32
    %690 = vector.broadcast %cst_308 : f32 to vector<8x8xf32>
    %691 = arith.select %638, %689, %690 : vector<8x8xi1>, vector<8x8xf32>
    %cst_309 = arith.constant dense<0xFF800000> : vector<8xf32>
    %692 = vector.multi_reduction <maximumf>, %691, %cst_309 [1] : vector<8x8xf32> to vector<8xf32>
    %693 = vector.shape_cast %692 : vector<8xf32> to vector<8x1xf32>
    %694 = vector.broadcast %693 : vector<8x1xf32> to vector<8x8xf32>
    %695 = arith.subf %691, %694 : vector<8x8xf32>
    %696 = math.exp %695 : vector<8x8xf32>
    %cst_310 = arith.constant dense<0.000000e+00> : vector<8xf32>
    %697 = vector.multi_reduction <add>, %696, %cst_310 [1] : vector<8x8xf32> to vector<8xf32>
    %698 = vector.shape_cast %697 : vector<8xf32> to vector<8x1xf32>
    %699 = vector.broadcast %698 : vector<8x1xf32> to vector<8x8xf32>
    %700 = arith.divf %696, %699 : vector<8x8xf32>
    %cst_311 = arith.constant dense<0.000000e+00> : vector<8x8xf32>
    %701 = tpu.matmul %700, %686, %cst_311 {dimension_numbers = #tpu.dot_dimension_numbers<[1], [0], [0], [1], [0, 0, 1, 1], [], []>} : vector<8x8xf32>, vector<8x8xf32>, vector<8x8xf32> -> vector<8x8xf32>
    %702 = vector.extract_strided_slice %635 {offsets = [2, 0, 0], sizes = [1, 8, 32], strides = [1, 1, 1]} : vector<4x8x32xf32> to vector<1x8x32xf32>
    %703 = vector.shape_cast %702 : vector<1x8x32xf32> to vector<8x32xf32>
    %cst_312 = arith.constant dense<0.000000e+00> : vector<8x32xf32>
    %704 = tpu.matmul %701, %703, %cst_312 {dimension_numbers = #tpu.dot_dimension_numbers<[1], [0], [0], [1], [0, 0, 1, 1], [], []>} : vector<8x8xf32>, vector<8x32xf32>, vector<8x32xf32> -> vector<8x32xf32>
    %705 = arith.addf %683, %704 : vector<8x32xf32>
    %706 = vector.extract_strided_slice %632 {offsets = [0, 24], sizes = [8, 8], strides = [1, 1]} : vector<8x32xf32> to vector<8x8xf32>
    %707 = vector.extract_strided_slice %633 {offsets = [0, 24], sizes = [8, 8], strides = [1, 1]} : vector<8x64xf32> to vector<8x8xf32>
    %708 = vector.extract_strided_slice %633 {offsets = [0, 56], sizes = [8, 8], strides = [1, 1]} : vector<8x64xf32> to vector<8x8xf32>
    %cst_313 = arith.constant dense<0.000000e+00> : vector<8x8xf32>
    %709 = tpu.matmul %706, %707, %cst_313 {dimension_numbers = #tpu.dot_dimension_numbers<[1], [1], [0], [0], [0, 0, 1, 0], [], []>} : vector<8x8xf32>, vector<8x8xf32>, vector<8x8xf32> -> vector<8x8xf32>
    %cst_314 = arith.constant 0.353553385 : f32
    %710 = vector.broadcast %cst_314 : f32 to vector<8x8xf32>
    %711 = arith.mulf %709, %710 : vector<8x8xf32>
    %cst_315 = arith.constant -1.000000e+30 : f32
    %712 = vector.broadcast %cst_315 : f32 to vector<8x8xf32>
    %713 = arith.select %638, %711, %712 : vector<8x8xi1>, vector<8x8xf32>
    %cst_316 = arith.constant dense<0xFF800000> : vector<8xf32>
    %714 = vector.multi_reduction <maximumf>, %713, %cst_316 [1] : vector<8x8xf32> to vector<8xf32>
    %715 = vector.shape_cast %714 : vector<8xf32> to vector<8x1xf32>
    %716 = vector.broadcast %715 : vector<8x1xf32> to vector<8x8xf32>
    %717 = arith.subf %713, %716 : vector<8x8xf32>
    %718 = math.exp %717 : vector<8x8xf32>
    %cst_317 = arith.constant dense<0.000000e+00> : vector<8xf32>
    %719 = vector.multi_reduction <add>, %718, %cst_317 [1] : vector<8x8xf32> to vector<8xf32>
    %720 = vector.shape_cast %719 : vector<8xf32> to vector<8x1xf32>
    %721 = vector.broadcast %720 : vector<8x1xf32> to vector<8x8xf32>
    %722 = arith.divf %718, %721 : vector<8x8xf32>
    %cst_318 = arith.constant dense<0.000000e+00> : vector<8x8xf32>
    %723 = tpu.matmul %722, %708, %cst_318 {dimension_numbers = #tpu.dot_dimension_numbers<[1], [0], [0], [1], [0, 0, 1, 1], [], []>} : vector<8x8xf32>, vector<8x8xf32>, vector<8x8xf32> -> vector<8x8xf32>
    %724 = vector.extract_strided_slice %635 {offsets = [3, 0, 0], sizes = [1, 8, 32], strides = [1, 1, 1]} : vector<4x8x32xf32> to vector<1x8x32xf32>
    %725 = vector.shape_cast %724 : vector<1x8x32xf32> to vector<8x32xf32>
    %cst_319 = arith.constant dense<0.000000e+00> : vector<8x32xf32>
    %726 = tpu.matmul %723, %725, %cst_319 {dimension_numbers = #tpu.dot_dimension_numbers<[1], [0], [0], [1], [0, 0, 1, 1], [], []>} : vector<8x8xf32>, vector<8x32xf32>, vector<8x32xf32> -> vector<8x32xf32>
    %727 = arith.addf %705, %726 : vector<8x32xf32>
    %728 = arith.addf %727, %624 : vector<8x32xf32>
    %c1_320 = arith.constant 1 : index
    %c0_321 = arith.constant 0 : index
    %c0_322 = arith.constant 0 : index
    %729 = vector.load %arg17[%c1_320, %c0_321, %c0_322] : memref<2x1x32xf32, #tpu.memory_space<vmem>>, vector<1x1x32xf32>
    %730 = vector.shape_cast %729 : vector<1x1x32xf32> to vector<1x32xf32>
    %c1_323 = arith.constant 1 : index
    %c0_324 = arith.constant 0 : index
    %c0_325 = arith.constant 0 : index
    %731 = vector.load %arg18[%c1_323, %c0_324, %c0_325] : memref<2x1x32xf32, #tpu.memory_space<vmem>>, vector<1x1x32xf32>
    %732 = vector.shape_cast %731 : vector<1x1x32xf32> to vector<1x32xf32>
    %cst_326 = arith.constant dense<0.000000e+00> : vector<8xf32>
    %733 = vector.multi_reduction <add>, %728, %cst_326 [1] : vector<8x32xf32> to vector<8xf32>
    %734 = vector.shape_cast %733 : vector<8xf32> to vector<8x1xf32>
    %cst_327 = arith.constant 3.200000e+01 : f32
    %735 = vector.broadcast %cst_327 : f32 to vector<8x1xf32>
    %736 = arith.divf %734, %735 : vector<8x1xf32>
    %737 = vector.broadcast %736 : vector<8x1xf32> to vector<8x32xf32>
    %738 = arith.subf %728, %737 : vector<8x32xf32>
    %739 = arith.mulf %738, %738 : vector<8x32xf32>
    %cst_328 = arith.constant dense<0.000000e+00> : vector<8xf32>
    %740 = vector.multi_reduction <add>, %739, %cst_328 [1] : vector<8x32xf32> to vector<8xf32>
    %741 = vector.shape_cast %740 : vector<8xf32> to vector<8x1xf32>
    %cst_329 = arith.constant 3.200000e+01 : f32
    %742 = vector.broadcast %cst_329 : f32 to vector<8x1xf32>
    %743 = arith.divf %741, %742 : vector<8x1xf32>
    %744 = vector.broadcast %736 : vector<8x1xf32> to vector<8x32xf32>
    %745 = arith.subf %728, %744 : vector<8x32xf32>
    %cst_330 = arith.constant 9.99999974E-6 : f32
    %746 = vector.broadcast %cst_330 : f32 to vector<8x1xf32>
    %747 = arith.addf %743, %746 : vector<8x1xf32>
    %748 = math.rsqrt %747 : vector<8x1xf32>
    %749 = vector.broadcast %748 : vector<8x1xf32> to vector<8x32xf32>
    %750 = arith.mulf %745, %749 : vector<8x32xf32>
    %751 = vector.broadcast %730 : vector<1x32xf32> to vector<8x32xf32>
    %752 = arith.mulf %750, %751 : vector<8x32xf32>
    %753 = vector.broadcast %732 : vector<1x32xf32> to vector<8x32xf32>
    %754 = arith.addf %752, %753 : vector<8x32xf32>
    %c1_331 = arith.constant 1 : index
    %c0_332 = arith.constant 0 : index
    %c0_333 = arith.constant 0 : index
    %755 = vector.load %arg19[%c1_331, %c0_332, %c0_333] : memref<2x32x32xf32, #tpu.memory_space<vmem>>, vector<1x32x32xf32>
    %756 = vector.shape_cast %755 : vector<1x32x32xf32> to vector<32x32xf32>
    %cst_334 = arith.constant dense<0.000000e+00> : vector<8x32xf32>
    %757 = tpu.matmul %754, %756, %cst_334 {dimension_numbers = #tpu.dot_dimension_numbers<[1], [0], [0], [1], [0, 0, 1, 1], [], []>} : vector<8x32xf32>, vector<32x32xf32>, vector<8x32xf32> -> vector<8x32xf32>
    %c1_335 = arith.constant 1 : index
    %c0_336 = arith.constant 0 : index
    %c0_337 = arith.constant 0 : index
    %758 = vector.load %arg20[%c1_335, %c0_336, %c0_337] : memref<2x1x32xf32, #tpu.memory_space<vmem>>, vector<1x1x32xf32>
    %759 = vector.shape_cast %758 : vector<1x1x32xf32> to vector<1x32xf32>
    %760 = vector.broadcast %759 : vector<1x32xf32> to vector<8x32xf32>
    %761 = arith.addf %757, %760 : vector<8x32xf32>
    %c1_338 = arith.constant 1 : index
    %c0_339 = arith.constant 0 : index
    %c0_340 = arith.constant 0 : index
    %762 = vector.load %arg21[%c1_338, %c0_339, %c0_340] : memref<2x32x64xf32, #tpu.memory_space<vmem>>, vector<1x32x64xf32>
    %763 = vector.shape_cast %762 : vector<1x32x64xf32> to vector<32x64xf32>
    %cst_341 = arith.constant dense<0.000000e+00> : vector<8x64xf32>
    %764 = tpu.matmul %325, %763, %cst_341 {dimension_numbers = #tpu.dot_dimension_numbers<[1], [0], [0], [1], [0, 0, 1, 1], [], []>} : vector<8x32xf32>, vector<32x64xf32>, vector<8x64xf32> -> vector<8x64xf32>
    %c1_342 = arith.constant 1 : index
    %c0_343 = arith.constant 0 : index
    %c0_344 = arith.constant 0 : index
    %765 = vector.load %arg22[%c1_342, %c0_343, %c0_344] : memref<2x1x64xf32, #tpu.memory_space<vmem>>, vector<1x1x64xf32>
    %766 = vector.shape_cast %765 : vector<1x1x64xf32> to vector<1x64xf32>
    %767 = vector.broadcast %766 : vector<1x64xf32> to vector<8x64xf32>
    %768 = arith.addf %764, %767 : vector<8x64xf32>
    %c1_345 = arith.constant 1 : index
    %c0_346 = arith.constant 0 : index
    %c0_347 = arith.constant 0 : index
    %c0_348 = arith.constant 0 : index
    %769 = vector.load %arg23[%c1_345, %c0_346, %c0_347, %c0_348] : memref<2x4x8x32xf32, #tpu.memory_space<vmem>>, vector<1x4x8x32xf32>
    %770 = vector.shape_cast %769 : vector<1x4x8x32xf32> to vector<4x8x32xf32>
    %cst_349 = arith.constant 0.000000e+00 : f32
    %771 = vector.broadcast %cst_349 : f32 to vector<8x32xf32>
    %772 = vector.extract_strided_slice %761 {offsets = [0, 0], sizes = [8, 8], strides = [1, 1]} : vector<8x32xf32> to vector<8x8xf32>
    %773 = vector.extract_strided_slice %768 {offsets = [0, 0], sizes = [8, 8], strides = [1, 1]} : vector<8x64xf32> to vector<8x8xf32>
    %774 = vector.extract_strided_slice %768 {offsets = [0, 32], sizes = [8, 8], strides = [1, 1]} : vector<8x64xf32> to vector<8x8xf32>
    %cst_350 = arith.constant dense<0.000000e+00> : vector<8x8xf32>
    %775 = tpu.matmul %772, %773, %cst_350 {dimension_numbers = #tpu.dot_dimension_numbers<[1], [1], [0], [0], [0, 0, 1, 0], [], []>} : vector<8x8xf32>, vector<8x8xf32>, vector<8x8xf32> -> vector<8x8xf32>
    %cst_351 = arith.constant 0.353553385 : f32
    %776 = vector.broadcast %cst_351 : f32 to vector<8x8xf32>
    %777 = arith.mulf %775, %776 : vector<8x8xf32>
    %cst_352 = arith.constant dense<0xFF800000> : vector<8xf32>
    %778 = vector.multi_reduction <maximumf>, %777, %cst_352 [1] : vector<8x8xf32> to vector<8xf32>
    %779 = vector.shape_cast %778 : vector<8xf32> to vector<8x1xf32>
    %780 = vector.broadcast %779 : vector<8x1xf32> to vector<8x8xf32>
    %781 = arith.subf %777, %780 : vector<8x8xf32>
    %782 = math.exp %781 : vector<8x8xf32>
    %cst_353 = arith.constant dense<0.000000e+00> : vector<8xf32>
    %783 = vector.multi_reduction <add>, %782, %cst_353 [1] : vector<8x8xf32> to vector<8xf32>
    %784 = vector.shape_cast %783 : vector<8xf32> to vector<8x1xf32>
    %785 = vector.broadcast %784 : vector<8x1xf32> to vector<8x8xf32>
    %786 = arith.divf %782, %785 : vector<8x8xf32>
    %cst_354 = arith.constant dense<0.000000e+00> : vector<8x8xf32>
    %787 = tpu.matmul %786, %774, %cst_354 {dimension_numbers = #tpu.dot_dimension_numbers<[1], [0], [0], [1], [0, 0, 1, 1], [], []>} : vector<8x8xf32>, vector<8x8xf32>, vector<8x8xf32> -> vector<8x8xf32>
    %788 = vector.extract_strided_slice %770 {offsets = [0, 0, 0], sizes = [1, 8, 32], strides = [1, 1, 1]} : vector<4x8x32xf32> to vector<1x8x32xf32>
    %789 = vector.shape_cast %788 : vector<1x8x32xf32> to vector<8x32xf32>
    %cst_355 = arith.constant dense<0.000000e+00> : vector<8x32xf32>
    %790 = tpu.matmul %787, %789, %cst_355 {dimension_numbers = #tpu.dot_dimension_numbers<[1], [0], [0], [1], [0, 0, 1, 1], [], []>} : vector<8x8xf32>, vector<8x32xf32>, vector<8x32xf32> -> vector<8x32xf32>
    %791 = arith.addf %771, %790 : vector<8x32xf32>
    %792 = vector.extract_strided_slice %761 {offsets = [0, 8], sizes = [8, 8], strides = [1, 1]} : vector<8x32xf32> to vector<8x8xf32>
    %793 = vector.extract_strided_slice %768 {offsets = [0, 8], sizes = [8, 8], strides = [1, 1]} : vector<8x64xf32> to vector<8x8xf32>
    %794 = vector.extract_strided_slice %768 {offsets = [0, 40], sizes = [8, 8], strides = [1, 1]} : vector<8x64xf32> to vector<8x8xf32>
    %cst_356 = arith.constant dense<0.000000e+00> : vector<8x8xf32>
    %795 = tpu.matmul %792, %793, %cst_356 {dimension_numbers = #tpu.dot_dimension_numbers<[1], [1], [0], [0], [0, 0, 1, 0], [], []>} : vector<8x8xf32>, vector<8x8xf32>, vector<8x8xf32> -> vector<8x8xf32>
    %cst_357 = arith.constant 0.353553385 : f32
    %796 = vector.broadcast %cst_357 : f32 to vector<8x8xf32>
    %797 = arith.mulf %795, %796 : vector<8x8xf32>
    %cst_358 = arith.constant dense<0xFF800000> : vector<8xf32>
    %798 = vector.multi_reduction <maximumf>, %797, %cst_358 [1] : vector<8x8xf32> to vector<8xf32>
    %799 = vector.shape_cast %798 : vector<8xf32> to vector<8x1xf32>
    %800 = vector.broadcast %799 : vector<8x1xf32> to vector<8x8xf32>
    %801 = arith.subf %797, %800 : vector<8x8xf32>
    %802 = math.exp %801 : vector<8x8xf32>
    %cst_359 = arith.constant dense<0.000000e+00> : vector<8xf32>
    %803 = vector.multi_reduction <add>, %802, %cst_359 [1] : vector<8x8xf32> to vector<8xf32>
    %804 = vector.shape_cast %803 : vector<8xf32> to vector<8x1xf32>
    %805 = vector.broadcast %804 : vector<8x1xf32> to vector<8x8xf32>
    %806 = arith.divf %802, %805 : vector<8x8xf32>
    %cst_360 = arith.constant dense<0.000000e+00> : vector<8x8xf32>
    %807 = tpu.matmul %806, %794, %cst_360 {dimension_numbers = #tpu.dot_dimension_numbers<[1], [0], [0], [1], [0, 0, 1, 1], [], []>} : vector<8x8xf32>, vector<8x8xf32>, vector<8x8xf32> -> vector<8x8xf32>
    %808 = vector.extract_strided_slice %770 {offsets = [1, 0, 0], sizes = [1, 8, 32], strides = [1, 1, 1]} : vector<4x8x32xf32> to vector<1x8x32xf32>
    %809 = vector.shape_cast %808 : vector<1x8x32xf32> to vector<8x32xf32>
    %cst_361 = arith.constant dense<0.000000e+00> : vector<8x32xf32>
    %810 = tpu.matmul %807, %809, %cst_361 {dimension_numbers = #tpu.dot_dimension_numbers<[1], [0], [0], [1], [0, 0, 1, 1], [], []>} : vector<8x8xf32>, vector<8x32xf32>, vector<8x32xf32> -> vector<8x32xf32>
    %811 = arith.addf %791, %810 : vector<8x32xf32>
    %812 = vector.extract_strided_slice %761 {offsets = [0, 16], sizes = [8, 8], strides = [1, 1]} : vector<8x32xf32> to vector<8x8xf32>
    %813 = vector.extract_strided_slice %768 {offsets = [0, 16], sizes = [8, 8], strides = [1, 1]} : vector<8x64xf32> to vector<8x8xf32>
    %814 = vector.extract_strided_slice %768 {offsets = [0, 48], sizes = [8, 8], strides = [1, 1]} : vector<8x64xf32> to vector<8x8xf32>
    %cst_362 = arith.constant dense<0.000000e+00> : vector<8x8xf32>
    %815 = tpu.matmul %812, %813, %cst_362 {dimension_numbers = #tpu.dot_dimension_numbers<[1], [1], [0], [0], [0, 0, 1, 0], [], []>} : vector<8x8xf32>, vector<8x8xf32>, vector<8x8xf32> -> vector<8x8xf32>
    %cst_363 = arith.constant 0.353553385 : f32
    %816 = vector.broadcast %cst_363 : f32 to vector<8x8xf32>
    %817 = arith.mulf %815, %816 : vector<8x8xf32>
    %cst_364 = arith.constant dense<0xFF800000> : vector<8xf32>
    %818 = vector.multi_reduction <maximumf>, %817, %cst_364 [1] : vector<8x8xf32> to vector<8xf32>
    %819 = vector.shape_cast %818 : vector<8xf32> to vector<8x1xf32>
    %820 = vector.broadcast %819 : vector<8x1xf32> to vector<8x8xf32>
    %821 = arith.subf %817, %820 : vector<8x8xf32>
    %822 = math.exp %821 : vector<8x8xf32>
    %cst_365 = arith.constant dense<0.000000e+00> : vector<8xf32>
    %823 = vector.multi_reduction <add>, %822, %cst_365 [1] : vector<8x8xf32> to vector<8xf32>
    %824 = vector.shape_cast %823 : vector<8xf32> to vector<8x1xf32>
    %825 = vector.broadcast %824 : vector<8x1xf32> to vector<8x8xf32>
    %826 = arith.divf %822, %825 : vector<8x8xf32>
    %cst_366 = arith.constant dense<0.000000e+00> : vector<8x8xf32>
    %827 = tpu.matmul %826, %814, %cst_366 {dimension_numbers = #tpu.dot_dimension_numbers<[1], [0], [0], [1], [0, 0, 1, 1], [], []>} : vector<8x8xf32>, vector<8x8xf32>, vector<8x8xf32> -> vector<8x8xf32>
    %828 = vector.extract_strided_slice %770 {offsets = [2, 0, 0], sizes = [1, 8, 32], strides = [1, 1, 1]} : vector<4x8x32xf32> to vector<1x8x32xf32>
    %829 = vector.shape_cast %828 : vector<1x8x32xf32> to vector<8x32xf32>
    %cst_367 = arith.constant dense<0.000000e+00> : vector<8x32xf32>
    %830 = tpu.matmul %827, %829, %cst_367 {dimension_numbers = #tpu.dot_dimension_numbers<[1], [0], [0], [1], [0, 0, 1, 1], [], []>} : vector<8x8xf32>, vector<8x32xf32>, vector<8x32xf32> -> vector<8x32xf32>
    %831 = arith.addf %811, %830 : vector<8x32xf32>
    %832 = vector.extract_strided_slice %761 {offsets = [0, 24], sizes = [8, 8], strides = [1, 1]} : vector<8x32xf32> to vector<8x8xf32>
    %833 = vector.extract_strided_slice %768 {offsets = [0, 24], sizes = [8, 8], strides = [1, 1]} : vector<8x64xf32> to vector<8x8xf32>
    %834 = vector.extract_strided_slice %768 {offsets = [0, 56], sizes = [8, 8], strides = [1, 1]} : vector<8x64xf32> to vector<8x8xf32>
    %cst_368 = arith.constant dense<0.000000e+00> : vector<8x8xf32>
    %835 = tpu.matmul %832, %833, %cst_368 {dimension_numbers = #tpu.dot_dimension_numbers<[1], [1], [0], [0], [0, 0, 1, 0], [], []>} : vector<8x8xf32>, vector<8x8xf32>, vector<8x8xf32> -> vector<8x8xf32>
    %cst_369 = arith.constant 0.353553385 : f32
    %836 = vector.broadcast %cst_369 : f32 to vector<8x8xf32>
    %837 = arith.mulf %835, %836 : vector<8x8xf32>
    %cst_370 = arith.constant dense<0xFF800000> : vector<8xf32>
    %838 = vector.multi_reduction <maximumf>, %837, %cst_370 [1] : vector<8x8xf32> to vector<8xf32>
    %839 = vector.shape_cast %838 : vector<8xf32> to vector<8x1xf32>
    %840 = vector.broadcast %839 : vector<8x1xf32> to vector<8x8xf32>
    %841 = arith.subf %837, %840 : vector<8x8xf32>
    %842 = math.exp %841 : vector<8x8xf32>
    %cst_371 = arith.constant dense<0.000000e+00> : vector<8xf32>
    %843 = vector.multi_reduction <add>, %842, %cst_371 [1] : vector<8x8xf32> to vector<8xf32>
    %844 = vector.shape_cast %843 : vector<8xf32> to vector<8x1xf32>
    %845 = vector.broadcast %844 : vector<8x1xf32> to vector<8x8xf32>
    %846 = arith.divf %842, %845 : vector<8x8xf32>
    %cst_372 = arith.constant dense<0.000000e+00> : vector<8x8xf32>
    %847 = tpu.matmul %846, %834, %cst_372 {dimension_numbers = #tpu.dot_dimension_numbers<[1], [0], [0], [1], [0, 0, 1, 1], [], []>} : vector<8x8xf32>, vector<8x8xf32>, vector<8x8xf32> -> vector<8x8xf32>
    %848 = vector.extract_strided_slice %770 {offsets = [3, 0, 0], sizes = [1, 8, 32], strides = [1, 1, 1]} : vector<4x8x32xf32> to vector<1x8x32xf32>
    %849 = vector.shape_cast %848 : vector<1x8x32xf32> to vector<8x32xf32>
    %cst_373 = arith.constant dense<0.000000e+00> : vector<8x32xf32>
    %850 = tpu.matmul %847, %849, %cst_373 {dimension_numbers = #tpu.dot_dimension_numbers<[1], [0], [0], [1], [0, 0, 1, 1], [], []>} : vector<8x8xf32>, vector<8x32xf32>, vector<8x32xf32> -> vector<8x32xf32>
    %851 = arith.addf %831, %850 : vector<8x32xf32>
    %852 = arith.addf %851, %754 : vector<8x32xf32>
    %c1_374 = arith.constant 1 : index
    %c0_375 = arith.constant 0 : index
    %c0_376 = arith.constant 0 : index
    %853 = vector.load %arg24[%c1_374, %c0_375, %c0_376] : memref<2x1x32xf32, #tpu.memory_space<vmem>>, vector<1x1x32xf32>
    %854 = vector.shape_cast %853 : vector<1x1x32xf32> to vector<1x32xf32>
    %c1_377 = arith.constant 1 : index
    %c0_378 = arith.constant 0 : index
    %c0_379 = arith.constant 0 : index
    %855 = vector.load %arg25[%c1_377, %c0_378, %c0_379] : memref<2x1x32xf32, #tpu.memory_space<vmem>>, vector<1x1x32xf32>
    %856 = vector.shape_cast %855 : vector<1x1x32xf32> to vector<1x32xf32>
    %cst_380 = arith.constant dense<0.000000e+00> : vector<8xf32>
    %857 = vector.multi_reduction <add>, %852, %cst_380 [1] : vector<8x32xf32> to vector<8xf32>
    %858 = vector.shape_cast %857 : vector<8xf32> to vector<8x1xf32>
    %cst_381 = arith.constant 3.200000e+01 : f32
    %859 = vector.broadcast %cst_381 : f32 to vector<8x1xf32>
    %860 = arith.divf %858, %859 : vector<8x1xf32>
    %861 = vector.broadcast %860 : vector<8x1xf32> to vector<8x32xf32>
    %862 = arith.subf %852, %861 : vector<8x32xf32>
    %863 = arith.mulf %862, %862 : vector<8x32xf32>
    %cst_382 = arith.constant dense<0.000000e+00> : vector<8xf32>
    %864 = vector.multi_reduction <add>, %863, %cst_382 [1] : vector<8x32xf32> to vector<8xf32>
    %865 = vector.shape_cast %864 : vector<8xf32> to vector<8x1xf32>
    %cst_383 = arith.constant 3.200000e+01 : f32
    %866 = vector.broadcast %cst_383 : f32 to vector<8x1xf32>
    %867 = arith.divf %865, %866 : vector<8x1xf32>
    %868 = vector.broadcast %860 : vector<8x1xf32> to vector<8x32xf32>
    %869 = arith.subf %852, %868 : vector<8x32xf32>
    %cst_384 = arith.constant 9.99999974E-6 : f32
    %870 = vector.broadcast %cst_384 : f32 to vector<8x1xf32>
    %871 = arith.addf %867, %870 : vector<8x1xf32>
    %872 = math.rsqrt %871 : vector<8x1xf32>
    %873 = vector.broadcast %872 : vector<8x1xf32> to vector<8x32xf32>
    %874 = arith.mulf %869, %873 : vector<8x32xf32>
    %875 = vector.broadcast %854 : vector<1x32xf32> to vector<8x32xf32>
    %876 = arith.mulf %874, %875 : vector<8x32xf32>
    %877 = vector.broadcast %856 : vector<1x32xf32> to vector<8x32xf32>
    %878 = arith.addf %876, %877 : vector<8x32xf32>
    %c1_385 = arith.constant 1 : index
    %c0_386 = arith.constant 0 : index
    %c0_387 = arith.constant 0 : index
    %879 = vector.load %arg26[%c1_385, %c0_386, %c0_387] : memref<2x32x64xf32, #tpu.memory_space<vmem>>, vector<1x32x64xf32>
    %880 = vector.shape_cast %879 : vector<1x32x64xf32> to vector<32x64xf32>
    %c1_388 = arith.constant 1 : index
    %c0_389 = arith.constant 0 : index
    %c0_390 = arith.constant 0 : index
    %881 = vector.load %arg27[%c1_388, %c0_389, %c0_390] : memref<2x1x64xf32, #tpu.memory_space<vmem>>, vector<1x1x64xf32>
    %882 = vector.shape_cast %881 : vector<1x1x64xf32> to vector<1x64xf32>
    %c1_391 = arith.constant 1 : index
    %c0_392 = arith.constant 0 : index
    %c0_393 = arith.constant 0 : index
    %883 = vector.load %arg28[%c1_391, %c0_392, %c0_393] : memref<2x64x32xf32, #tpu.memory_space<vmem>>, vector<1x64x32xf32>
    %884 = vector.shape_cast %883 : vector<1x64x32xf32> to vector<64x32xf32>
    %c1_394 = arith.constant 1 : index
    %c0_395 = arith.constant 0 : index
    %c0_396 = arith.constant 0 : index
    %885 = vector.load %arg29[%c1_394, %c0_395, %c0_396] : memref<2x1x32xf32, #tpu.memory_space<vmem>>, vector<1x1x32xf32>
    %886 = vector.shape_cast %885 : vector<1x1x32xf32> to vector<1x32xf32>
    %cst_397 = arith.constant dense<0.000000e+00> : vector<8x64xf32>
    %887 = tpu.matmul %878, %880, %cst_397 {dimension_numbers = #tpu.dot_dimension_numbers<[1], [0], [0], [1], [0, 0, 1, 1], [], []>} : vector<8x32xf32>, vector<32x64xf32>, vector<8x64xf32> -> vector<8x64xf32>
    %888 = vector.broadcast %882 : vector<1x64xf32> to vector<8x64xf32>
    %889 = arith.addf %887, %888 : vector<8x64xf32>
    %cst_398 = arith.constant 0.000000e+00 : f32
    %890 = vector.broadcast %cst_398 : f32 to vector<8x64xf32>
    %891 = arith.maximumf %889, %890 : vector<8x64xf32>
    %cst_399 = arith.constant dense<0.000000e+00> : vector<8x32xf32>
    %892 = tpu.matmul %891, %884, %cst_399 {dimension_numbers = #tpu.dot_dimension_numbers<[1], [0], [0], [1], [0, 0, 1, 1], [], []>} : vector<8x64xf32>, vector<64x32xf32>, vector<8x32xf32> -> vector<8x32xf32>
    %893 = vector.broadcast %886 : vector<1x32xf32> to vector<8x32xf32>
    %894 = arith.addf %892, %893 : vector<8x32xf32>
    %895 = arith.addf %894, %878 : vector<8x32xf32>
    %c1_400 = arith.constant 1 : index
    %c0_401 = arith.constant 0 : index
    %c0_402 = arith.constant 0 : index
    %896 = vector.load %arg30[%c1_400, %c0_401, %c0_402] : memref<2x1x32xf32, #tpu.memory_space<vmem>>, vector<1x1x32xf32>
    %897 = vector.shape_cast %896 : vector<1x1x32xf32> to vector<1x32xf32>
    %c1_403 = arith.constant 1 : index
    %c0_404 = arith.constant 0 : index
    %c0_405 = arith.constant 0 : index
    %898 = vector.load %arg31[%c1_403, %c0_404, %c0_405] : memref<2x1x32xf32, #tpu.memory_space<vmem>>, vector<1x1x32xf32>
    %899 = vector.shape_cast %898 : vector<1x1x32xf32> to vector<1x32xf32>
    %cst_406 = arith.constant dense<0.000000e+00> : vector<8xf32>
    %900 = vector.multi_reduction <add>, %895, %cst_406 [1] : vector<8x32xf32> to vector<8xf32>
    %901 = vector.shape_cast %900 : vector<8xf32> to vector<8x1xf32>
    %cst_407 = arith.constant 3.200000e+01 : f32
    %902 = vector.broadcast %cst_407 : f32 to vector<8x1xf32>
    %903 = arith.divf %901, %902 : vector<8x1xf32>
    %904 = vector.broadcast %903 : vector<8x1xf32> to vector<8x32xf32>
    %905 = arith.subf %895, %904 : vector<8x32xf32>
    %906 = arith.mulf %905, %905 : vector<8x32xf32>
    %cst_408 = arith.constant dense<0.000000e+00> : vector<8xf32>
    %907 = vector.multi_reduction <add>, %906, %cst_408 [1] : vector<8x32xf32> to vector<8xf32>
    %908 = vector.shape_cast %907 : vector<8xf32> to vector<8x1xf32>
    %cst_409 = arith.constant 3.200000e+01 : f32
    %909 = vector.broadcast %cst_409 : f32 to vector<8x1xf32>
    %910 = arith.divf %908, %909 : vector<8x1xf32>
    %911 = vector.broadcast %903 : vector<8x1xf32> to vector<8x32xf32>
    %912 = arith.subf %895, %911 : vector<8x32xf32>
    %cst_410 = arith.constant 9.99999974E-6 : f32
    %913 = vector.broadcast %cst_410 : f32 to vector<8x1xf32>
    %914 = arith.addf %910, %913 : vector<8x1xf32>
    %915 = math.rsqrt %914 : vector<8x1xf32>
    %916 = vector.broadcast %915 : vector<8x1xf32> to vector<8x32xf32>
    %917 = arith.mulf %912, %916 : vector<8x32xf32>
    %918 = vector.broadcast %897 : vector<1x32xf32> to vector<8x32xf32>
    %919 = arith.mulf %917, %918 : vector<8x32xf32>
    %920 = vector.broadcast %899 : vector<1x32xf32> to vector<8x32xf32>
    %921 = arith.addf %919, %920 : vector<8x32xf32>
    %c0_411 = arith.constant 0 : index
    %c0_412 = arith.constant 0 : index
    %922 = vector.load %arg32[%c0_411, %c0_412] : memref<32x128xf32, #tpu.memory_space<vmem>>, vector<32x128xf32>
    %cst_413 = arith.constant dense<0.000000e+00> : vector<8x128xf32>
    %923 = tpu.matmul %921, %922, %cst_413 {dimension_numbers = #tpu.dot_dimension_numbers<[1], [0], [0], [1], [0, 0, 1, 1], [], []>} : vector<8x32xf32>, vector<32x128xf32>, vector<8x128xf32> -> vector<8x128xf32>
    %c0_414 = arith.constant 0 : index
    %c0_415 = arith.constant 0 : index
    %924 = vector.load %arg33[%c0_414, %c0_415] : memref<1x128xf32, #tpu.memory_space<vmem>>, vector<1x128xf32>
    %925 = vector.broadcast %924 : vector<1x128xf32> to vector<8x128xf32>
    %926 = arith.addf %923, %925 : vector<8x128xf32>
    %927 = vector.shape_cast %926 : vector<8x128xf32> to vector<1x8x128xf32>
    %c0_416 = arith.constant 0 : index
    %c0_417 = arith.constant 0 : index
    %c0_418 = arith.constant 0 : index
    %928 = vector.load %arg34[%c0_416, %c0_417, %c0_418] : memref<1x8x128xf32, #tpu.memory_space<vmem>>, vector<1x8x128xf32>
    tpu.vector_store %arg34[%c0_416, %c0_417, %c0_418], %927 {strides = array<i32>} : memref<1x8x128xf32, #tpu.memory_space<vmem>>, vector<1x8x128xf32>,
    return
  }
  func.func @transform_0(%arg0: i32) -> (i32, i32, i32) {
    %c0_i32 = arith.constant 0 : i32
    %c0_i32_0 = arith.constant 0 : i32
    %c0_i32_1 = arith.constant 0 : i32
    return %arg0, %c0_i32, %c0_i32_0 : i32, i32, i32
  }
  func.func @transform_1(%arg0: i32) -> (i32, i32, i32) {
    %c0_i32 = arith.constant 0 : i32
    %c0_i32_0 = arith.constant 0 : i32
    %c0_i32_1 = arith.constant 0 : i32
    return %arg0, %c0_i32, %c0_i32_0 : i32, i32, i32
  }
  func.func @transform_2(%arg0: i32) -> (i32, i32, i32) {
    %c0_i32 = arith.constant 0 : i32
    %c0_i32_0 = arith.constant 0 : i32
    %c0_i32_1 = arith.constant 0 : i32
    %c0_i32_2 = arith.constant 0 : i32
    return %c0_i32, %c0_i32_0, %c0_i32_1 : i32, i32, i32
  }
  func.func @transform_3(%arg0: i32) -> (i32, i32, i32) {
    %c0_i32 = arith.constant 0 : i32
    %c0_i32_0 = arith.constant 0 : i32
    %c0_i32_1 = arith.constant 0 : i32
    %c0_i32_2 = arith.constant 0 : i32
    return %c0_i32, %c0_i32_0, %c0_i32_1 : i32, i32, i32
  }
  func.func @transform_4(%arg0: i32) -> (i32, i32, i32, i32) {
    %c0_i32 = arith.constant 0 : i32
    %c0_i32_0 = arith.constant 0 : i32
    %c0_i32_1 = arith.constant 0 : i32
    %c0_i32_2 = arith.constant 0 : i32
    %c0_i32_3 = arith.constant 0 : i32
    return %c0_i32, %c0_i32_0, %c0_i32_1, %c0_i32_2 : i32, i32, i32, i32
  }
  func.func @transform_5(%arg0: i32) -> (i32, i32, i32) {
    %c0_i32 = arith.constant 0 : i32
    %c0_i32_0 = arith.constant 0 : i32
    %c0_i32_1 = arith.constant 0 : i32
    %c0_i32_2 = arith.constant 0 : i32
    return %c0_i32, %c0_i32_0, %c0_i32_1 : i32, i32, i32
  }
  func.func @transform_6(%arg0: i32) -> (i32, i32, i32) {
    %c0_i32 = arith.constant 0 : i32
    %c0_i32_0 = arith.constant 0 : i32
    %c0_i32_1 = arith.constant 0 : i32
    %c0_i32_2 = arith.constant 0 : i32
    return %c0_i32, %c0_i32_0, %c0_i32_1 : i32, i32, i32
  }
  func.func @transform_7(%arg0: i32) -> (i32, i32, i32) {
    %c0_i32 = arith.constant 0 : i32
    %c0_i32_0 = arith.constant 0 : i32
    %c0_i32_1 = arith.constant 0 : i32
    %c0_i32_2 = arith.constant 0 : i32
    return %c0_i32, %c0_i32_0, %c0_i32_1 : i32, i32, i32
  }
  func.func @transform_8(%arg0: i32) -> (i32, i32, i32) {
    %c0_i32 = arith.constant 0 : i32
    %c0_i32_0 = arith.constant 0 : i32
    %c0_i32_1 = arith.constant 0 : i32
    %c0_i32_2 = arith.constant 0 : i32
    return %c0_i32, %c0_i32_0, %c0_i32_1 : i32, i32, i32
  }
  func.func @transform_9(%arg0: i32) -> (i32, i32, i32) {
    %c0_i32 = arith.constant 0 : i32
    %c0_i32_0 = arith.constant 0 : i32
    %c0_i32_1 = arith.constant 0 : i32
    %c0_i32_2 = arith.constant 0 : i32
    return %c0_i32, %c0_i32_0, %c0_i32_1 : i32, i32, i32
  }
  func.func @transform_10(%arg0: i32) -> (i32, i32, i32) {
    %c0_i32 = arith.constant 0 : i32
    %c0_i32_0 = arith.constant 0 : i32
    %c0_i32_1 = arith.constant 0 : i32
    %c0_i32_2 = arith.constant 0 : i32
    return %c0_i32, %c0_i32_0, %c0_i32_1 : i32, i32, i32
  }
  func.func @transform_11(%arg0: i32) -> (i32, i32, i32) {
    %c0_i32 = arith.constant 0 : i32
    %c0_i32_0 = arith.constant 0 : i32
    %c0_i32_1 = arith.constant 0 : i32
    %c0_i32_2 = arith.constant 0 : i32
    return %c0_i32, %c0_i32_0, %c0_i32_1 : i32, i32, i32
  }
  func.func @transform_12(%arg0: i32) -> (i32, i32, i32) {
    %c0_i32 = arith.constant 0 : i32
    %c0_i32_0 = arith.constant 0 : i32
    %c0_i32_1 = arith.constant 0 : i32
    %c0_i32_2 = arith.constant 0 : i32
    return %c0_i32, %c0_i32_0, %c0_i32_1 : i32, i32, i32
  }
  func.func @transform_13(%arg0: i32) -> (i32, i32, i32) {
    %c0_i32 = arith.constant 0 : i32
    %c0_i32_0 = arith.constant 0 : i32
    %c0_i32_1 = arith.constant 0 : i32
    %c0_i32_2 = arith.constant 0 : i32
    return %c0_i32, %c0_i32_0, %c0_i32_1 : i32, i32, i32
  }
  func.func @transform_14(%arg0: i32) -> (i32, i32, i32) {
    %c0_i32 = arith.constant 0 : i32
    %c0_i32_0 = arith.constant 0 : i32
    %c0_i32_1 = arith.constant 0 : i32
    %c0_i32_2 = arith.constant 0 : i32
    return %c0_i32, %c0_i32_0, %c0_i32_1 : i32, i32, i32
  }
  func.func @transform_15(%arg0: i32) -> (i32, i32, i32, i32) {
    %c0_i32 = arith.constant 0 : i32
    %c0_i32_0 = arith.constant 0 : i32
    %c0_i32_1 = arith.constant 0 : i32
    %c0_i32_2 = arith.constant 0 : i32
    %c0_i32_3 = arith.constant 0 : i32
    return %c0_i32, %c0_i32_0, %c0_i32_1, %c0_i32_2 : i32, i32, i32, i32
  }
  func.func @transform_16(%arg0: i32) -> (i32, i32, i32) {
    %c0_i32 = arith.constant 0 : i32
    %c0_i32_0 = arith.constant 0 : i32
    %c0_i32_1 = arith.constant 0 : i32
    %c0_i32_2 = arith.constant 0 : i32
    return %c0_i32, %c0_i32_0, %c0_i32_1 : i32, i32, i32
  }
  func.func @transform_17(%arg0: i32) -> (i32, i32, i32) {
    %c0_i32 = arith.constant 0 : i32
    %c0_i32_0 = arith.constant 0 : i32
    %c0_i32_1 = arith.constant 0 : i32
    %c0_i32_2 = arith.constant 0 : i32
    return %c0_i32, %c0_i32_0, %c0_i32_1 : i32, i32, i32
  }
  func.func @transform_18(%arg0: i32) -> (i32, i32, i32) {
    %c0_i32 = arith.constant 0 : i32
    %c0_i32_0 = arith.constant 0 : i32
    %c0_i32_1 = arith.constant 0 : i32
    %c0_i32_2 = arith.constant 0 : i32
    return %c0_i32, %c0_i32_0, %c0_i32_1 : i32, i32, i32
  }
  func.func @transform_19(%arg0: i32) -> (i32, i32, i32) {
    %c0_i32 = arith.constant 0 : i32
    %c0_i32_0 = arith.constant 0 : i32
    %c0_i32_1 = arith.constant 0 : i32
    %c0_i32_2 = arith.constant 0 : i32
    return %c0_i32, %c0_i32_0, %c0_i32_1 : i32, i32, i32
  }
  func.func @transform_20(%arg0: i32) -> (i32, i32, i32) {
    %c0_i32 = arith.constant 0 : i32
    %c0_i32_0 = arith.constant 0 : i32
    %c0_i32_1 = arith.constant 0 : i32
    %c0_i32_2 = arith.constant 0 : i32
    return %c0_i32, %c0_i32_0, %c0_i32_1 : i32, i32, i32
  }
  func.func @transform_21(%arg0: i32) -> (i32, i32, i32) {
    %c0_i32 = arith.constant 0 : i32
    %c0_i32_0 = arith.constant 0 : i32
    %c0_i32_1 = arith.constant 0 : i32
    %c0_i32_2 = arith.constant 0 : i32
    return %c0_i32, %c0_i32_0, %c0_i32_1 : i32, i32, i32
  }
  func.func @transform_22(%arg0: i32) -> (i32, i32, i32, i32) {
    %c0_i32 = arith.constant 0 : i32
    %c0_i32_0 = arith.constant 0 : i32
    %c0_i32_1 = arith.constant 0 : i32
    %c0_i32_2 = arith.constant 0 : i32
    %c0_i32_3 = arith.constant 0 : i32
    return %c0_i32, %c0_i32_0, %c0_i32_1, %c0_i32_2 : i32, i32, i32, i32
  }
  func.func @transform_23(%arg0: i32) -> (i32, i32, i32) {
    %c0_i32 = arith.constant 0 : i32
    %c0_i32_0 = arith.constant 0 : i32
    %c0_i32_1 = arith.constant 0 : i32
    %c0_i32_2 = arith.constant 0 : i32
    return %c0_i32, %c0_i32_0, %c0_i32_1 : i32, i32, i32
  }
  func.func @transform_24(%arg0: i32) -> (i32, i32, i32) {
    %c0_i32 = arith.constant 0 : i32
    %c0_i32_0 = arith.constant 0 : i32
    %c0_i32_1 = arith.constant 0 : i32
    %c0_i32_2 = arith.constant 0 : i32
    return %c0_i32, %c0_i32_0, %c0_i32_1 : i32, i32, i32
  }
  func.func @transform_25(%arg0: i32) -> (i32, i32, i32) {
    %c0_i32 = arith.constant 0 : i32
    %c0_i32_0 = arith.constant 0 : i32
    %c0_i32_1 = arith.constant 0 : i32
    %c0_i32_2 = arith.constant 0 : i32
    return %c0_i32, %c0_i32_0, %c0_i32_1 : i32, i32, i32
  }
  func.func @transform_26(%arg0: i32) -> (i32, i32, i32) {
    %c0_i32 = arith.constant 0 : i32
    %c0_i32_0 = arith.constant 0 : i32
    %c0_i32_1 = arith.constant 0 : i32
    %c0_i32_2 = arith.constant 0 : i32
    return %c0_i32, %c0_i32_0, %c0_i32_1 : i32, i32, i32
  }
  func.func @transform_27(%arg0: i32) -> (i32, i32, i32) {
    %c0_i32 = arith.constant 0 : i32
    %c0_i32_0 = arith.constant 0 : i32
    %c0_i32_1 = arith.constant 0 : i32
    %c0_i32_2 = arith.constant 0 : i32
    return %c0_i32, %c0_i32_0, %c0_i32_1 : i32, i32, i32
  }
  func.func @transform_28(%arg0: i32) -> (i32, i32, i32) {
    %c0_i32 = arith.constant 0 : i32
    %c0_i32_0 = arith.constant 0 : i32
    %c0_i32_1 = arith.constant 0 : i32
    %c0_i32_2 = arith.constant 0 : i32
    return %c0_i32, %c0_i32_0, %c0_i32_1 : i32, i32, i32
  }
  func.func @transform_29(%arg0: i32) -> (i32, i32, i32) {
    %c0_i32 = arith.constant 0 : i32
    %c0_i32_0 = arith.constant 0 : i32
    %c0_i32_1 = arith.constant 0 : i32
    %c0_i32_2 = arith.constant 0 : i32
    return %c0_i32, %c0_i32_0, %c0_i32_1 : i32, i32, i32
  }
  func.func @transform_30(%arg0: i32) -> (i32, i32, i32) {
    %c0_i32 = arith.constant 0 : i32
    %c0_i32_0 = arith.constant 0 : i32
    %c0_i32_1 = arith.constant 0 : i32
    %c0_i32_2 = arith.constant 0 : i32
    return %c0_i32, %c0_i32_0, %c0_i32_1 : i32, i32, i32
  }
  func.func @transform_31(%arg0: i32) -> (i32, i32) {
    %c0_i32 = arith.constant 0 : i32
    %c0_i32_0 = arith.constant 0 : i32
    %c0_i32_1 = arith.constant 0 : i32
    return %c0_i32, %c0_i32_0 : i32, i32
  }
  func.func @transform_32(%arg0: i32) -> (i32, i32) {
    %c0_i32 = arith.constant 0 : i32
    %c0_i32_0 = arith.constant 0 : i32
    %c0_i32_1 = arith.constant 0 : i32
    return %c0_i32, %c0_i32_0 : i32, i32
  }
  func.func @transform_33(%arg0: i32) -> (i32, i32, i32) {
    %c0_i32 = arith.constant 0 : i32
    %c0_i32_0 = arith.constant 0 : i32
    %c0_i32_1 = arith.constant 0 : i32
    return %arg0, %c0_i32, %c0_i32_0 : i32, i32, i32
  }
}

</mosaic_0001>

<bundles_post_ra>
// kernel: _lambda_.1
= control target key start
LH: loop header
LB: loop body
LE: loop exit
PB: predicated region body
PF: predicated region fallthrough
CT: control target
= control target key end

     0   :  { %s10042_s6 = smov 1   ;;  %s10043_s10 = smov 2   ;;  %s11114_s0 = inlined_call_operand.smem [shape: u32[34], index: -1, kind: input, shape index: {}] }
   0x1   :  { %s10097_s5 = sld [smem:[%s11114_s0]]   ;;  %s10044_s14 = smov 3  }
   0x2   :  { %s10102_s9 = sld [smem:[%s11114_s0 + %s10042_s6]]   ;;  %s10045_s18 = smov 4  }
   0x3   :  { %s10107_s13 = sld [smem:[%s11114_s0 + %s10043_s10]]   ;;  %s10046_s22 = smov 5  }
   0x4   :  { %s10112_s17 = sld [smem:[%s11114_s0 + %s10044_s14]]   ;;  %s10047_s26 = smov 6  }
   0x5   :  { %s10117_s21 = sld [smem:[%s11114_s0 + %s10045_s18]]   ;;  %s10048_s30 = smov 7  }
   0x6   :  { %s10122_s25 = sld [smem:[%s11114_s0 + %s10046_s22]]   ;;  %s10049_s4 = smov 8  }
   0x7   :  { %11164 = sst [smem:[#allocation2_spill]] %s10097_s5  ;;  %s10050_s10 = smov 9  }
   0x8   :  { %11165 = sst [smem:[#allocation3_spill]] %s10102_s9  ;;  %s10051_s15 = smov 10  }
   0x9   :  { %11166 = sst [smem:[#allocation4_spill]] %s10107_s13  ;;  %s10052_s20 = smov 11  }
   0xa   :  { %11167 = sst [smem:[#allocation5_spill]] %s10112_s17  ;;  %s10054_s1 = smov 13  }
   0xb   :  { %11168 = sst [smem:[#allocation6_spill]] %s10117_s21  ;;  %s10055_s7 = smov 14  }
   0xc   :  { %11169 = sst [smem:[#allocation7_spill]] %s10122_s25  ;;  %s10057_s22 = smov 16  }
   0xd   :  { %s10127_s29 = sld [smem:[%s11114_s0 + %s10047_s26]]   ;;  %s10053_s26 = smov 12  }
   0xe   :  { %s10132_s3 = sld [smem:[%s11114_s0 + %s10048_s30]]   ;;  %s10058_s28 = smov 17  }
   0xf   :  { %s10137_s8 = sld [smem:[%s11114_s0 + %s10049_s4]]  }
  0x10   :  { %s10142_s14 = sld [smem:[%s11114_s0 + %s10050_s10]]  }
  0x11   :  { %s10147_s19 = sld [smem:[%s11114_s0 + %s10051_s15]]   ;;  %s10056_s15 = smov 15  }
  0x12   :  { %s10152_s24 = sld [smem:[%s11114_s0 + %s10052_s20]]  }
  0x13   :  { %11170 = sst [smem:[#allocation8_spill]] %s10127_s29 }
  0x14   :  { %11171 = sst [smem:[#allocation9_spill]] %s10132_s3 }
  0x15   :  { %11172 = sst [smem:[#allocation10_spill]] %s10137_s8 }
  0x16   :  { %11173 = sst [smem:[#allocation11_spill]] %s10142_s14 }
  0x17   :  { %11174 = sst [smem:[#allocation12_spill]] %s10147_s19 }
  0x18   :  { %11175 = sst [smem:[#allocation13_spill]] %s10152_s24 }
  0x19   :  { %s10157_s30 = sld [smem:[%s11114_s0 + %s10053_s26]]  }
  0x1a   :  { %s10162_s6 = sld [smem:[%s11114_s0 + %s10054_s1]]  }
  0x1b   :  { %s10167_s12 = sld [smem:[%s11114_s0 + %s10055_s7]]   ;;  %s10059_s7 = smov 18  }
  0x1c   :  { %s10172_s20 = sld [smem:[%s11114_s0 + %s10056_s15]]   ;;  %s10060_s15 = smov 19  }
  0x1d   :  { %s10177_s27 = sld [smem:[%s11114_s0 + %s10057_s22]]   ;;  %s10061_s22 = smov 20  }
  0x1e   :  { %s10182_s4 = sld [smem:[%s11114_s0 + %s10058_s28]]   ;;  %s10062_s28 = smov 21  }
  0x1f   :  { %11176 = sst [smem:[#allocation14_spill]] %s10157_s30 }
  0x20   :  { %11177 = sst [smem:[#allocation15_spill]] %s10162_s6 }
  0x21   :  { %11178 = sst [smem:[#allocation16_spill]] %s10167_s12 }
  0x22   :  { %11179 = sst [smem:[#allocation17_spill]] %s10172_s20 }
  0x23   :  { %11180 = sst [smem:[#allocation18_spill]] %s10177_s27 }
  0x24   :  { %11181 = sst [smem:[#allocation19_spill]] %s10182_s4 }
  0x25   :  { %s10187_s12 = sld [smem:[%s11114_s0 + %s10059_s7]]   ;;  %s10063_s7 = smov 22  }
  0x26   :  { %s10192_s20 = sld [smem:[%s11114_s0 + %s10060_s15]]   ;;  %s10064_s15 = smov 23  }
  0x27   :  { %s10197_s27 = sld [smem:[%s11114_s0 + %s10061_s22]]   ;;  %s10065_s22 = smov 24  }
  0x28   :  { %s10202_s4 = sld [smem:[%s11114_s0 + %s10062_s28]]   ;;  %s10066_s28 = smov 25  }
  0x2b   :  { %11182 = sst [smem:[#allocation20_spill]] %s10187_s12 }
  0x2c   :  { %11183 = sst [smem:[#allocation21_spill]] %s10192_s20 }
  0x2d   :  { %11184 = sst [smem:[#allocation22_spill]] %s10197_s27 }
  0x2e   :  { %11185 = sst [smem:[#allocation23_spill]] %s10202_s4 }
  0x2f   :  { %s10207_s12 = sld [smem:[%s11114_s0 + %s10063_s7]]   ;;  %s10067_s7 = smov 26  }
  0x30   :  { %s10212_s20 = sld [smem:[%s11114_s0 + %s10064_s15]]   ;;  %s10068_s15 = smov 27  }
  0x31   :  { %s10217_s27 = sld [smem:[%s11114_s0 + %s10065_s22]]   ;;  %s10069_s22 = smov 28  }
  0x32   :  { %s10222_s4 = sld [smem:[%s11114_s0 + %s10066_s28]]   ;;  %s10070_s28 = smov 29  }
  0x35   :  { %11186 = sst [smem:[#allocation24_spill]] %s10207_s12 }
  0x36   :  { %11187 = sst [smem:[#allocation25_spill]] %s10212_s20 }
  0x37   :  { %11188 = sst [smem:[#allocation26_spill]] %s10217_s27 }
  0x38   :  { %11189 = sst [smem:[#allocation27_spill]] %s10222_s4 }
  0x39   :  { %s10227_s12 = sld [smem:[%s11114_s0 + %s10067_s7]]   ;;  %s10071_s7 = smov 30  }
  0x3a   :  { %s10232_s20 = sld [smem:[%s11114_s0 + %s10068_s15]]   ;;  %s10072_s15 = smov 31  }
  0x3b   :  { %s10237_s27 = sld [smem:[%s11114_s0 + %s10069_s22]]   ;;  %s10073_s22 = smov 32  }
  0x3c   :  { %s10242_s4 = sld [smem:[%s11114_s0 + %s10070_s28]]   ;;  %s10074_s28 = smov 33  }
  0x3f   :  { %11190 = sst [smem:[#allocation28_spill]] %s10227_s12 }
  0x40   :  { %11191 = sst [smem:[#allocation29_spill]] %s10232_s20 }
  0x41   :  { %11192 = sst [smem:[#allocation30_spill]] %s10237_s27 }
  0x42   :  { %11193 = sst [smem:[#allocation31_spill]] %s10242_s4 }
  0x43   :  { %s10247_s12 = sld [smem:[%s11114_s0 + %s10071_s7]]   ;;  %s10264_s7 = smov 0  }
  0x44   :  { %s10252_s20 = sld [smem:[%s11114_s0 + %s10072_s15]]  }
  0x45   :  { %s10257_s27 = sld [smem:[%s11114_s0 + %s10073_s22]]  }
  0x46   :  { %s10262_s4 = sld [smem:[%s11114_s0 + %s10074_s28]]  }
  0x47 LB: > { %s11194_s6 = sld [smem:[#allocation15_spill]]  ;;  %s11195_s30 = sld [smem:[#allocation14_spill]]  ;;  %s10040_s7 = sphi %s10264_s7, %s77_s7  }
  0x48   : > { %s11196_s29 = sld [smem:[#allocation8_spill]]  ;;  %s11197_s25 = sld [smem:[#allocation7_spill]] }
  0x49   : > { %s11198_s24 = sld [smem:[#allocation13_spill]]  ;;  %s11199_s21 = sld [smem:[#allocation6_spill]] }
  0x4a   : > { %s11200_s19 = sld [smem:[#allocation12_spill]]  ;;  %s11201_s17 = sld [smem:[#allocation5_spill]] }
  0x4b   : > { %s11202_s14 = sld [smem:[#allocation11_spill]]  ;;  %s11203_s13 = sld [smem:[#allocation4_spill]] }
  0x4c   : > { %s11204_s8 = sld [smem:[#allocation10_spill]]  ;;  %s11205_s3 = sld [smem:[#allocation9_spill]] }
  0x4d   : > { %s8683_s10 = sadd.s32 4294967295, %s10040_s7   ;;  %p8687_p0 = scmp.ge.s32.totalorder %s10040_s7, 1 }
  0x4e   : > { %p929_p1 = scmp.lt.s32.totalorder %s10040_s7, 3 }
  0x50   : > { %p930_p2 = pnand %p8687_p0, %p929_p1 }
  0x51   : > { %v1028_v0 = vld [vmem:[%s11203_s13] sm:$0xff] (!%p930_p2)  ;;  %v1029_v1 = vld [vmem:[%s11203_s13 + $0x8] sm:$0xff] (!%p930_p2)  ;;  %v1030_v2 = vld [vmem:[%s11203_s13 + $0x10] sm:$0xff] (!%p930_p2)  ;;  %s11206_s5 = sld [smem:[#allocation2_spill]] (!%p930_p2)  ;;  %v10075_v3 = vmov (!%p930_p2), 0.0|0.0   ;;  %vm10076_vm0 = vmmov (!%p930_p2), 0  }
  0x52   : > { %933 = sbr.rel (%p930_p2) target bundleno = 19829 (0x4d75), region = 152  ;;  %9737 = vmatprep.subr.bf16.mxu0 (!%p930_p2), %v10075_v3  ;;  %v9738_v4 = vpack.c.bf16 (!%p930_p2), %v1029_v1, %v1028_v0  ;;  %v1031_v5 = vld [vmem:[%s11203_s13 + $0x18] sm:$0xff] (!%p930_p2)  ;;  %v10077_v6 = vmov (!%p930_p2), 0.0   ;;  %p1015_p3 = scmp.lt.s32.totalorder (!%p930_p2), %s8683_s10, 1  ;;  %vm1039_vm1 = vcmask (!%p930_p2), 261120   ;;  %vm1120_vm2 = vcmask (!%p930_p2), 64512  }
  0x53   : > { %9166 = vmatprep.mubr.msk.f32.mxu0 (!%p930_p2), %vm10076_vm0, %v10077_v6  ;;  %9169 = vmatprep.subr.mxu1 (!%p930_p2), %v10077_v6  ;;  %v9741_v7 = vpack.c.bf16 (!%p930_p2), %v1031_v5, %v1030_v2  ;;  %v8691_v9 = vld [vmem:[%s11201_s17] ss:$0 sm:$0xff] (!%p930_p2)  ;;  %s11149_s15 = smov (!%p930_p2), 120   ;;  %s11145_s16 = smov (!%p930_p2), 96   ;;  %v1114_v34 = vld [vmem:[%s11199_s21 + $0x8] sm:$0xff] (!%p930_p2)  ;;  %vm2206_vm3 = vcmask (!%p930_p2), 523264  }
  0x54   : > { %9171 = vmatprep.mubr.msk.f32.mxu1 (!%p930_p2), %vm10076_vm0, %v10077_v6  ;;  %9739 = vmatpush3.bf16.msra.mxu0 (!%p930_p2), %v9738_v4  ;;  %s11147_s18 = smov (!%p930_p2), 88   ;;  %s11136_s22 = smov (!%p930_p2), 56   ;;  %v1113_v43 = vld [vmem:[%s11199_s21] sm:$0xff] (!%p930_p2) }
  0x55   : > { %9740 = vmatprep.subr.bf16.mxu0 (!%p930_p2), %v10075_v3  ;;  %s11135_s23 = smov (!%p930_p2), 64   ;;  %s11139_s26 = smov (!%p930_p2), 80  }
  0x56   : > { %s11143_s28 = smov (!%p930_p2), 112   ;;  %s11137_s1 = smov (!%p930_p2), 72  }
  0x57   : > { %s11141_s2 = smov (!%p930_p2), 104   ;;  %s11207_s9 = sld [smem:[#allocation3_spill]] (!%p930_p2) }
  0x58   : > { %9742 = vmatpush3.bf16.msra.mxu0 (!%p930_p2), %v9741_v7 }
  0x59   : > { %s11238_s10 = smov (!%p1015_p3, %s8683_s10), 1  ;;  %9179 = vmatprep.subr.mxu0 %v10077_v6 }
  0x5a   : > { %s10283_s0 = sshll.u32 %s11238_s10, 3  ;;  %s11133_s10 = smov 48  }
  0x5b   : > { %s1018_s11 = scalar_lea.vmem %s11206_s5, %s10283_s0  ;;  %s11222_s5 = smov 112  }
  0x5c   : > { %v10287_v8 = vld [vmem:[%s1018_s11] sm:$0xff]  ;;  %s11131_s11 = smov 40  }
  0x5d   : > { %9167 = vmatmul.mubr.msk.f32.vlgmr.msra.gmra.mrb[0].mxu0 %vm1039_vm1, %v10287_v8 }
  0x5e   : > { %9181 = vmatprep.mubr.msk.f32.mxu0 %vm10076_vm0, %v10077_v6 }
 0x130   : > { %v1109_v10 = vpop.f32.mrb[0].mxu0 }
 0x131   : > { %v10295_v11 = vadd.f32 %v8691_v9, %v1109_v10  ;;  %v9168_v12 = vpop.f32.mrb[1].mxu0  ;;  %v1115_v9 = vld [vmem:[%s11199_s21 + $0x10] sm:$0xff] }
 0x133   : > { %1283 = vrot.lane.b32.xlu1 %v10295_v11, %s11149_s15  ;;  %1118 = vrot.lane.b32.xlu0 %v10295_v11, %s11145_s16 }
 0x137   : > { %1285 = vrot.lane.b32.xlu0 %v10295_v11, %s11147_s18 }
 0x1a5   : > { %v1119_v13 = vpop.permute.xlu0 %1118  ;;  %v1284_v15 = vpop.permute.xlu1 %1283 }
 0x1a6   : > { %9170 = vmatpush3.xpose.msk.msra.mxu1 %vm1120_vm2, %v1119_v13 }
 0x1a7   : > { %9174 = vmatprep.subr.mxu1 %v10077_v6 }
 0x1a9   : > { %9172 = vmatmul.mubr.msk.f32.vlgmr.msra.gmra.mrb[0].mxu1 %vm1120_vm2, %v10295_v11  ;;  %v1286_v14 = vpop.permute.xlu0 %1285 }
 0x1aa   : > { %9180 = vmatpush3.xpose.msk.msra.mxu0 %vm1120_vm2, %v1286_v14  ;;  %9176 = vmatprep.mubr.msk.f32.mxu1 %vm10076_vm0, %v10077_v6 }
 0x1ab   : > { %9189 = vmatprep.subr.mxu0 %v10077_v6 }
 0x1ad   : > { %9182 = vmatmul.mubr.msk.f32.vlgmr.msra.gmra.mrb[2].mxu0 %vm1120_vm2, %v1284_v15 }
 0x1ae   : > { %9191 = vmatprep.mubr.msk.f32.mxu0 %vm10076_vm0, %v10077_v6  ;;  %9190 = vmatpush3.msra.mxu0 %v1114_v34 }
 0x1af   : > { %9199 = vmatprep.subr.mxu0 %v10077_v6 }
 0x27c   : > { %v1191_v16 = vpop.f32.mrb[0].mxu1 }
 0x27d   : > { %v1195_v17 = vmul.f32 0.35355338, %v1191_v16  ;;  %v9173_v18 = vpop.f32.mrb[1].mxu1 }
 0x27f   : > { %v1196_v19 = vsel %vm1120_vm2, %v1195_v17, -inf }
 0x280   : > { %1197 = vmax.xlane.f32.xlu1 %v1196_v19  ;;  %v1357_v20 = vpop.f32.mrb[2].mxu0 }
 0x281   : > { %v1361_v21 = vmul.f32 0.35355338, %v1357_v20  ;;  %v9183_v22 = vpop.f32.mrb[3].mxu0 }
 0x283   : > { %v1362_v23 = vsel %vm1120_vm2, %v1361_v21, -inf }
 0x284   : > { %1363 = vmax.xlane.f32.xlu0 %v1362_v23  ;;  %v1116_v23 = vld [vmem:[%s11199_s21 + $0x18] sm:$0xff] }
 0x30d   : > { %v1198_v24 = vpop.xlane.xlu1 %1197 }
 0x30e   : > { %v1199_v25 = vsub.f32 %v1195_v17, %v1198_v24 }
 0x310   : > { %v1200_v26 = vmul.f32 1.442695, %v1199_v25 }
 0x311   : > { %v1364_v27 = vpop.xlane.xlu0 %1363 }
 0x312   : > { %9918 = vpow2.f32 %v1200_v26  ;;  %v1365_v28 = vsub.f32 %v1361_v21, %v1364_v27 }
 0x314   : > { %v1366_v29 = vmul.f32 1.442695, %v1365_v28 }
 0x316   : > { %9920 = vpow2.f32 %v1366_v29 }
 0x31c   : > { %v9919_v30 = vpop.eup %9918 }
 0x31d   : > { %v1202_v31 = vsel %vm1120_vm2, %v9919_v30, 0.0 }
 0x31e   : > { %1203 = vadd.xlane.f32.xlu0 %v1202_v31 }
 0x320   : > { %v9921_v32 = vpop.eup %9920 }
 0x321   : > { %v1368_v33 = vsel %vm1120_vm2, %v9921_v32, 0.0 }
 0x322   : > { %1369 = vadd.xlane.f32.xlu1 %v1368_v33 }
 0x333   : > { %1373 = vrot.lane.b32.xlu1 %v10295_v11, %s11136_s22 }
 0x334   : > { %1207 = vrot.lane.b32.xlu0 %v10295_v11, %s11135_s23 }
 0x337   : > { %1597 = vrot.lane.b32.xlu1 %v10295_v11, %s11139_s26 }
 0x338   : > { %1595 = vrot.lane.b32.xlu0 %v10295_v11, %s11143_s28 }
 0x3ab   : > { %v1204_v35 = vpop.xlane.xlu0 %1203 }
 0x3ac   : > { %9922 = vrcp.f32 %v1204_v35 }
 0x3af   : > { %v1370_v36 = vpop.xlane.xlu1 %1369  ;;  %v1208_v37 = vpop.permute.xlu0 %1207 }
 0x3b0   : > { %9924 = vrcp.f32 %v1370_v36  ;;  %9175 = vmatpush3.msra.mxu1 %v1208_v37 }
 0x3b1   : > { %9184 = vmatprep.subr.mxu1 %v10077_v6 }
 0x3b3   : > { %v1374_v40 = vpop.permute.xlu1 %1373  ;;  %v1596_v49 = vpop.permute.xlu0 %1595 }
 0x3b6   : > { %v9923_v38 = vpop.eup %9922 }
 0x3b7   : > { %v1206_v39 = vmul.f32 %v9923_v38, %v9919_v30  ;;  %v1598_v47 = vpop.permute.xlu1 %1597 }
 0x3b9   : > { %9177 = vmatmul.mubr.msk.f32.vlgmr.msra.gmra.mrb[2].mxu1 %vm1120_vm2, %v1206_v39 }
 0x3ba   : > { %v9925_v41 = vpop.eup %9924  ;;  %9185 = vmatpush3.msra.mxu1 %v1374_v40  ;;  %9186 = vmatprep.mubr.msk.f32.mxu1 %vm10076_vm0, %v10077_v6 }
 0x3bb   : > { %v1372_v42 = vmul.f32 %v9925_v41, %v9921_v32  ;;  %9194 = vmatprep.subr.mxu1 %v10077_v6  ;;  %v2106_v41 = vld [vmem:[%s11205_s3] sm:$0xff] }
 0x3bd   : > { %9187 = vmatmul.mubr.msk.f32.vlgmr.msra.gmra.mrb[4].mxu1 %vm1120_vm2, %v1372_v42  ;;  %v2107_v42 = vld [vmem:[%s11205_s3 + $0x8] sm:$0xff] }
 0x3be   : > { %9196 = vmatprep.mubr.msk.f32.mxu1 %vm10076_vm0, %v10077_v6  ;;  %9195 = vmatpush3.msra.mxu1 %v1113_v43  ;;  %v9744_v43 = vpack.c.bf16 %v2107_v42, %v2106_v41 }
 0x3bf   : > { %9204 = vmatprep.subr.mxu1 %v10077_v6 }
 0x48c   : > { %v1279_v44 = vpop.f32.mrb[2].mxu1 }
 0x48d   : > { %v9178_v45 = vpop.f32.mrb[3].mxu1  ;;  %9197 = vmatmul.mubr.msk.f32.vlgmr.msra.gmra.mrb[6].mxu1 %vm1120_vm2, %v1279_v44  ;;  %v2109_v44 = vld [vmem:[%s11205_s3 + $0x18] sm:$0xff] }
 0x48e   : > { %9206 = vmatprep.mubr.msk.f32.mxu1 %vm10076_vm0, %v10077_v6 }
 0x490   : > { %v1445_v46 = vpop.f32.mrb[4].mxu1 }
 0x491   : > { %v9188_v48 = vpop.f32.mrb[5].mxu1  ;;  %9192 = vmatmul.mubr.msk.f32.vlgmr.msra.gmra.mrb[4].mxu0 %vm1120_vm2, %v1445_v46  ;;  %v2111_v46 = vld [vmem:[%s11202_s14] sm:$0xff] }
 0x492   : > { %9200 = vmatpush3.xpose.msk.msra.mxu0 %vm1120_vm2, %v1598_v47  ;;  %9201 = vmatprep.mubr.msk.f32.mxu0 %vm10076_vm0, %v10077_v6  ;;  %v2112_v47 = vld [vmem:[%s11202_s14 + $0x8] sm:$0xff]  ;;  %v2113_v48 = vld [vmem:[%s11202_s14 + $0x10] sm:$0xff] }
 0x493   : > { %9209 = vmatprep.subr.mxu0 %v10077_v6 }
 0x495   : > { %9202 = vmatmul.mubr.msk.f32.vlgmr.msra.gmra.mrb[6].mxu0 %vm1120_vm2, %v1596_v49  ;;  %v9750_v49 = vpack.c.bf16 %v2112_v47, %v2111_v46 }
 0x496   : > { %9211 = vmatprep.mubr.msk.f32.mxu0 %vm10076_vm0, %v10077_v6  ;;  %9210 = vmatpush3.msra.mxu0 %v1115_v9 }
 0x497   : > { %9219 = vmatprep.subr.mxu0 %v10077_v6 }
 0x560   : > { %v1591_v50 = vpop.f32.mrb[6].mxu1 }
 0x561   : > { %v9198_v51 = vpop.f32.mrb[7].mxu1 }
 0x564   : > { %v1518_v52 = vpop.f32.mrb[4].mxu0 }
 0x565   : > { %v10349_v53 = vadd.f32 %v1591_v50, %v1518_v52  ;;  %v9193_v54 = vpop.f32.mrb[5].mxu0  ;;  %v2114_v50 = vld [vmem:[%s11202_s14 + $0x18] sm:$0xff]  ;;  %v2115_v52 = vld [vmem:[%s11202_s14 + $0x20] sm:$0xff] }
 0x566   : > { %v9753_v51 = vpack.c.bf16 %v2114_v50, %v2113_v48 }
 0x568   : > { %v1669_v55 = vpop.f32.mrb[6].mxu0 }
 0x569   : > { %v1673_v56 = vmul.f32 0.35355338, %v1669_v55  ;;  %v9203_v57 = vpop.f32.mrb[7].mxu0 }
 0x56b   : > { %v1674_v58 = vsel %vm1120_vm2, %v1673_v56, -inf }
 0x56c   : > { %1675 = vmax.xlane.f32.xlu1 %v1674_v58 }
 0x57d   : > { %1837 = vrot.lane.b32.xlu1 %v10295_v11, %s11137_s1 }
 0x581   : > { %1835 = vrot.lane.b32.xlu1 %v10295_v11, %s11141_s2 }
 0x5f9   : > { %v1676_v59 = vpop.xlane.xlu1 %1675 }
 0x5fa   : > { %v1677_v60 = vsub.f32 %v1673_v56, %v1676_v59  ;;  %v8709_v59 = vld [vmem:[%s11197_s25] ss:$0 sm:$0xff] }
 0x5fc   : > { %v1678_v61 = vmul.f32 1.442695, %v1677_v60 }
 0x5fd   : > { %v1838_v4 = vpop.permute.xlu1 %1837 }
 0x5fe   : > { %9926 = vpow2.f32 %v1678_v61  ;;  %v8710_v61 = vld [vmem:[%s11196_s29] ss:$0 sm:$0xff] }
 0x601   : > { %v1836_v7 = vpop.permute.xlu1 %1835 }
 0x608   : > { %v9927_v62 = vpop.eup %9926 }
 0x609   : > { %v1680_v63 = vsel %vm1120_vm2, %v9927_v62, 0.0 }
 0x60a   : > { %1681 = vadd.xlane.f32.xlu0 %v1680_v63 }
 0x620   : > { %1685 = vrot.lane.b32.xlu0 %v10295_v11, %s11133_s10 }
 0x697   : > { %v1682_v0 = vpop.xlane.xlu0 %1681 }
 0x698   : > { %9928 = vrcp.f32 %v1682_v0  ;;  %v2117_v0 = vld [vmem:[%s11202_s14 + $0x30] sm:$0xff] }
 0x69b   : > { %v1686_v1 = vpop.permute.xlu0 %1685 }
 0x69c   : > { %9205 = vmatpush3.msra.mxu1 %v1686_v1  ;;  %v2118_v1 = vld [vmem:[%s11202_s14 + $0x38] sm:$0xff] }
 0x69d   : > { %9214 = vmatprep.subr.mxu1 %v10077_v6 }
 0x6a2   : > { %v9929_v2 = vpop.eup %9928 }
 0x6a3   : > { %v1684_v5 = vmul.f32 %v9929_v2, %v9927_v62  ;;  %v9759_v2 = vpack.c.bf16 %v2118_v1, %v2117_v0 }
 0x6a5   : > { %9207 = vmatmul.mubr.msk.f32.vlgmr.msra.gmra.mrb[8].mxu1 %vm1120_vm2, %v1684_v5 }
 0x6a6   : > { %9215 = vmatpush3.xpose.msk.msra.mxu1 %vm1120_vm2, %v1838_v4  ;;  %9216 = vmatprep.mubr.msk.f32.mxu1 %vm10076_vm0, %v10077_v6  ;;  %v8711_v4 = vld [vmem:[%s11204_s8] ss:$0 sm:$0xff] }
 0x6a7   : > { %9224 = vmatprep.subr.mxu1 %v10077_v6 }
 0x6a9   : > { %9217 = vmatmul.mubr.msk.f32.vlgmr.msra.gmra.mrb[10].mxu1 %vm1120_vm2, %v1836_v7 }
 0x6aa   : > { %9226 = vmatprep.mubr.msk.f32.mxu1 %vm10076_vm0, %v10077_v6  ;;  %9225 = vmatpush3.msra.mxu1 %v1116_v23  ;;  %v8717_v23 = vld [vmem:[%s11203_s13 + $0x20] sm:$0xff] }
 0x6ab   : > { %9749 = vmatprep.subr.bf16.mxu1 %v10075_v3 }
 0x778   : > { %v1757_v10 = vpop.f32.mrb[8].mxu1 }
 0x779   : > { %v9208_v12 = vpop.f32.mrb[9].mxu1  ;;  %9212 = vmatmul.mubr.msk.f32.vlgmr.msra.gmra.mrb[8].mxu0 %vm1120_vm2, %v1757_v10 }
 0x77a   : > { %9221 = vmatprep.mubr.msk.f32.mxu0 %vm10076_vm0, %v10077_v6  ;;  %v8713_v12 = vld [vmem:[%s11200_s19] ss:$0 sm:$0xff] }
 0x77c   : > { %v1909_v13 = vpop.f32.mrb[10].mxu1 }
 0x77d   : > { %v1913_v14 = vmul.f32 0.35355338, %v1909_v13  ;;  %v9218_v15 = vpop.f32.mrb[11].mxu1 }
 0x77f   : > { %v1914_v16 = vsel %vm1120_vm2, %v1913_v14, -inf }
 0x780   : > { %1915 = vmax.xlane.f32.xlu0 %v1914_v16 }
 0x796   : > { %1925 = vrot.lane.b32.xlu0 %v10295_v11, %s11131_s11 }
 0x80d   : > { %v1916_v17 = vpop.xlane.xlu0 %1915 }
 0x80e   : > { %v1917_v18 = vsub.f32 %v1913_v14, %v1916_v17 }
 0x810   : > { %v1918_v19 = vmul.f32 1.442695, %v1917_v18 }
 0x811   : > { %v1926_v20 = vpop.permute.xlu0 %1925 }
 0x812   : > { %9930 = vpow2.f32 %v1918_v19  ;;  %9220 = vmatpush3.msra.mxu0 %v1926_v20 }
 0x813   : > { %9743 = vmatprep.subr.bf16.mxu0 %v10075_v3 }
 0x81c   : > { %v9931_v21 = vpop.eup %9930 }
 0x81d   : > { %v1920_v22 = vsel %vm1120_vm2, %v9931_v21, 0.0 }
 0x81e   : > { %1921 = vadd.xlane.f32.xlu1 %v1920_v22 }
 0x84c   : > { %v1830_v24 = vpop.f32.mrb[8].mxu0 }
 0x84d   : > { %v1834_v25 = vadd.f32 %v1830_v24, %v10349_v53  ;;  %v9213_v11 = vpop.f32.mrb[9].mxu0  ;;  %v2116_v53 = vld [vmem:[%s11202_s14 + $0x28] sm:$0xff] }
 0x84e   : > { %v9756_v54 = vpack.c.bf16 %v2116_v53, %v2115_v52  ;;  %v8718_v24 = vld [vmem:[%s11203_s13 + $0x28] sm:$0xff]  ;;  %v8719_v11 = vld [vmem:[%s11203_s13 + $0x30] sm:$0xff] }
 0x8ab   : > { %v1922_v26 = vpop.xlane.xlu1 %1921 }
 0x8ac   : > { %9932 = vrcp.f32 %v1922_v26  ;;  %v8720_v26 = vld [vmem:[%s11203_s13 + $0x38] sm:$0xff]  ;;  %s11225_s13 = smov 80  }
 0x8b6   : > { %v9933_v27 = vpop.eup %9932 }
 0x8b7   : > { %v1924_v28 = vmul.f32 %v9933_v27, %v9931_v21  ;;  %v9765_v27 = vpack.c.bf16 %v8720_v26, %v8719_v11 }
 0x8b9   : > { %9222 = vmatmul.mubr.msk.f32.vlgmr.msra.gmra.mrb[10].mxu0 %vm1120_vm2, %v1924_v28 }
 0x8ba   : > { %9237 = vmatprep.mubr.msk.f32.mxu0 %vm10076_vm0, %v10077_v6  ;;  %9745 = vmatpush3.bf16.msra.mxu0 %v9744_v43 }
 0x8bb   : > { %9746 = vmatprep.subr.bf16.mxu0 %v10075_v3 }
 0x98c   : > { %v1997_v29 = vpop.f32.mrb[10].mxu0 }
 0x98d   : > { %v9223_v30 = vpop.f32.mrb[11].mxu0  ;;  %9227 = vmatmul.mubr.msk.f32.vlgmr.msra.gmra.mrb[12].mxu1 %vm1120_vm2, %v1997_v29 }
 0x98e   : > { %9256 = vmatprep.mubr.msk.f32.mxu1 %vm10076_vm0, %v10077_v6  ;;  %9751 = vmatpush3.bf16.msra.mxu1 %v9750_v49 }
 0x98f   : > { %9752 = vmatprep.subr.bf16.mxu1 %v10075_v3 }
 0x992   : > { %9754 = vmatpush3.bf16.msra.mxu1 %v9753_v51 }
 0x993   : > { %9755 = vmatprep.subr.bf16.mxu1 %v10075_v3 }
 0x996   : > { %9757 = vmatpush3.bf16.msra.mxu1 %v9756_v54 }
 0x997   : > { %9758 = vmatprep.subr.bf16.mxu1 %v10075_v3 }
 0x99a   : > { %9760 = vmatpush3.bf16.msra.mxu1 %v9759_v2 }
 0x99b   : > { %9275 = vmatprep.subr.mxu1 %v10077_v6 }
 0xa60   : > { %v2070_v31 = vpop.f32.mrb[12].mxu1 }
 0xa61   : > { %v2074_v32 = vadd.f32 %v2070_v31, %v1834_v25  ;;  %v9228_v33 = vpop.f32.mrb[13].mxu1  ;;  %v9762_v25 = vpack.c.bf16 %v8718_v24, %v8717_v23 }
 0xa63   : > { %v2075_v34 = vadd.f32 %v2074_v32, %v10287_v8  ;;  %v2108_v8 = vld [vmem:[%s11205_s3 + $0x10] sm:$0xff]  ;;  %v8715_v32 = vld [vmem:[%s11198_s24] ss:$0 sm:$0xff] }
 0xa64   : > { %v9747_v45 = vpack.c.bf16 %v2109_v44, %v2108_v8 }
 0xa65   : > { %v2078_v35 = vsel %vm1039_vm1, %v2075_v34, 0.0 }
 0xa66   : > { %2079 = vadd.xlane.f32.xlu1 %v2078_v35  ;;  %9748 = vmatpush3.bf16.msra.mxu0 %v9747_v45 }
 0xa67   : > { %9761 = vmatprep.subr.bf16.mxu0 %v10075_v3 }
 0xaf3   : > { %v2080_v36 = vpop.xlane.xlu1 %2079 }
 0xaf4   : > { %v2082_v37 = vmul.f32 0.03125, %v2080_v36 }
 0xaf6   : > { %v2083_v38 = vsub.f32 %v2075_v34, %v2082_v37  ;;  %v8716_v34 = vld [vmem:[%s11195_s30] ss:$0 sm:$0xff]  ;;  %v8722_v37 = vld [vmem:[%s11201_s17 + $0x1] ss:$0 sm:$0xff]  ;;  %s11227_s17 = sld [smem:[#allocation27_spill]] }
 0xaf8   : > { %v2084_v39 = vmul.f32 %v2083_v38, %v2083_v38 }
 0xafa   : > { %v2085_v40 = vsel %vm1039_vm1, %v2084_v39, 0.0 }
 0xafb   : > { %2086 = vadd.xlane.f32.xlu1 %v2085_v40 }
 0xb88   : > { %v2087_v55 = vpop.xlane.xlu1 %2086 }
 0xb89   : > { %v2088_v56 = vmul.f32 0.03125, %v2087_v55 }
 0xb8b   : > { %v2089_v57 = vadd.f32 1e-05, %v2088_v56 }
 0xb8d   : > { %9934 = vrsqrt.f32 %v2089_v57 }
 0xb97   : > { %v9935_v58 = vpop.eup %9934 }
 0xb98   : > { %v2091_v60 = vmul.f32 %v9935_v58, %v2083_v38 }
 0xb9a   : > { %v2098_v62 = vmul.f32 %v8709_v59, %v2091_v60 }
 0xb9c   : > { %v2105_v63 = vadd.f32 %v8710_v61, %v2098_v62  ;;  %v8725_v61 = vld [vmem:[%s11199_s21 + $0x28] sm:$0xff] }
 0xb9e   : > { %9238 = vmatmul.mubr.msk.f32.vlgmr.msra.gmra.mrb[12].mxu0 %vm1039_vm1, %v2105_v63 }
 0xb9f   : > { %9267 = vmatprep.mubr.msk.f32.mxu0 %vm10076_vm0, %v10077_v6  ;;  %9763 = vmatpush3.bf16.msra.mxu0 %v9762_v25 }
 0xba0   : > { %9764 = vmatprep.subr.bf16.mxu0 %v10075_v3 }
 0xba3   : > { %9766 = vmatpush3.bf16.msra.mxu0 %v9765_v27 }
 0xba4   : > { %9270 = vmatprep.subr.mxu0 %v10077_v6 }
 0xc71   : > { %v2195_v5 = vpop.f32.mrb[12].mxu0 }
 0xc72   : > { %v2196_v7 = vadd.f32 %v8711_v4, %v2195_v5  ;;  %v9239_v9 = vpop.f32.mrb[13].mxu0 }
 0xc73   : > { %v8724_v9 = vld [vmem:[%s11199_s21 + $0x20] sm:$0xff] }
 0xc74   : > { %v2199_v10 = vmax.f32 %v2196_v7, 0.0 }
 0xc76   : > { %9257 = vmatmul.mubr.msk.f32.vlgmr.msra.gmra.mrb[14].mxu1 %vm2206_vm3, %v2199_v10 }
 0xc77   : > { %9277 = vmatprep.mubr.msk.f32.mxu1 %vm10076_vm0, %v10077_v6 }
 0xd49   : > { %v2276_v13 = vpop.f32.mrb[14].mxu1 }
 0xd4a   : > { %v2277_v14 = vadd.f32 %v8713_v12, %v2276_v13  ;;  %v9258_v15 = vpop.f32.mrb[15].mxu1 }
 0xd4c   : > { %v2280_v16 = vadd.f32 %v2277_v14, %v2105_v63 }
 0xd4e   : > { %v2283_v17 = vsel %vm1039_vm1, %v2280_v16, 0.0 }
 0xd4f   : > { %2284 = vadd.xlane.f32.xlu1 %v2283_v17 }
 0xddc   : > { %v2285_v18 = vpop.xlane.xlu1 %2284 }
 0xddd   : > { %v2286_v19 = vmul.f32 0.03125, %v2285_v18 }
 0xddf   : > { %v2287_v20 = vsub.f32 %v2280_v16, %v2286_v19 }
 0xde1   : > { %v2288_v21 = vmul.f32 %v2287_v20, %v2287_v20 }
 0xde3   : > { %v2289_v22 = vsel %vm1039_vm1, %v2288_v21, 0.0 }
 0xde4   : > { %2290 = vadd.xlane.f32.xlu1 %v2289_v22 }
 0xe71   : > { %v2291_v28 = vpop.xlane.xlu1 %2290 }
 0xe72   : > { %v2292_v29 = vmul.f32 0.03125, %v2291_v28 }
 0xe74   : > { %v2293_v30 = vadd.f32 1e-05, %v2292_v29 }
 0xe76   : > { %9936 = vrsqrt.f32 %v2293_v30 }
 0xe80   : > { %v9937_v31 = vpop.eup %9936 }
 0xe81   : > { %v2295_v33 = vmul.f32 %v9937_v31, %v2287_v20 }
 0xe83   : > { %v2302_v35 = vmul.f32 %v8715_v32, %v2295_v33 }
 0xe85   : > { %v10428_v36 = vadd.f32 %v8716_v34, %v2302_v35 }
 0xe87   : > { %9268 = vmatmul.mubr.msk.f32.vlgmr.msra.gmra.mrb[14].mxu0 %vm1039_vm1, %v10428_v36 }
 0xe88   : > { %9272 = vmatprep.mubr.msk.f32.mxu0 %vm10076_vm0, %v10077_v6 }
 0xf5a   : > { %v2392_v38 = vpop.f32.mrb[14].mxu0 }
 0xf5b   : > { %v10435_v39 = vadd.f32 %v8722_v37, %v2392_v38  ;;  %v9269_v40 = vpop.f32.mrb[15].mxu0  ;;  %v8726_v37 = vld [vmem:[%s11199_s21 + $0x30] sm:$0xff] }
 0xf5d   : > { %2568 = vrot.lane.b32.xlu0 %v10435_v39, %s11147_s18  ;;  %2402 = vrot.lane.b32.xlu1 %v10435_v39, %s11145_s16 }
 0xf61   : > { %2566 = vrot.lane.b32.xlu0 %v10435_v39, %s11149_s15 }
 0xfcf   : > { %v2403_v41 = vpop.permute.xlu1 %2402  ;;  %v2569_v42 = vpop.permute.xlu0 %2568 }
 0xfd0   : > { %9271 = vmatpush3.xpose.msk.msra.mxu0 %vm1120_vm2, %v2403_v41 }
 0xfd1   : > { %9280 = vmatprep.subr.mxu0 %v10077_v6 }
 0xfd3   : > { %9273 = vmatmul.mubr.msk.f32.vlgmr.msra.gmra.mrb[16].mxu0 %vm1120_vm2, %v10435_v39  ;;  %v2567_v43 = vpop.permute.xlu0 %2566 }
 0xfd4   : > { %9281 = vmatpush3.xpose.msk.msra.mxu0 %vm1120_vm2, %v2569_v42  ;;  %9282 = vmatprep.mubr.msk.f32.mxu0 %vm10076_vm0, %v10077_v6 }
 0xfd5   : > { %9290 = vmatprep.subr.mxu0 %v10077_v6 }
 0xfd7   : > { %9283 = vmatmul.mubr.msk.f32.vlgmr.msra.gmra.mrb[18].mxu0 %vm1120_vm2, %v2567_v43 }
 0xfd8   : > { %9292 = vmatprep.mubr.msk.f32.mxu0 %vm10076_vm0, %v10077_v6  ;;  %9291 = vmatpush3.msra.mxu0 %v8725_v61 }
 0xfd9   : > { %9300 = vmatprep.subr.mxu0 %v10077_v6 }
0x10a6   : > { %v2474_v8 = vpop.f32.mrb[16].mxu0 }
0x10a7   : > { %v2478_v44 = vmul.f32 0.35355338, %v2474_v8  ;;  %v9274_v45 = vpop.f32.mrb[17].mxu0 }
0x10a9   : > { %v2479_v46 = vsel %vm1120_vm2, %v2478_v44, -inf }
0x10aa   : > { %2480 = vmax.xlane.f32.xlu0 %v2479_v46  ;;  %v2640_v47 = vpop.f32.mrb[18].mxu0 }
0x10ab   : > { %v2644_v48 = vmul.f32 0.35355338, %v2640_v47  ;;  %v9284_v49 = vpop.f32.mrb[19].mxu0 }
0x10ac   : > { %v8727_v49 = vld [vmem:[%s11199_s21 + $0x38] sm:$0xff]  ;;  %s11229_s21 = sld [smem:[#allocation25_spill]] }
0x10ad   : > { %v2645_v50 = vsel %vm1120_vm2, %v2644_v48, -inf }
0x10ae   : > { %2646 = vmax.xlane.f32.xlu1 %v2645_v50 }
0x10bf   : > { %2656 = vrot.lane.b32.xlu1 %v10435_v39, %s11136_s22 }
0x10c3   : > { %2878 = vrot.lane.b32.xlu1 %v10435_v39, %s11143_s28 }
0x1137   : > { %v2481_v51 = vpop.xlane.xlu0 %2480 }
0x1138   : > { %v2482_v52 = vsub.f32 %v2478_v44, %v2481_v51 }
0x113a   : > { %v2483_v53 = vmul.f32 1.442695, %v2482_v52 }
0x113b   : > { %v2647_v54 = vpop.xlane.xlu1 %2646 }
0x113c   : > { %9938 = vpow2.f32 %v2483_v53  ;;  %v2648_v55 = vsub.f32 %v2644_v48, %v2647_v54 }
0x113e   : > { %v2649_v56 = vmul.f32 1.442695, %v2648_v55 }
0x113f   : > { %v2657_v4 = vpop.permute.xlu1 %2656 }
0x1140   : > { %9940 = vpow2.f32 %v2649_v56 }
0x1143   : > { %v2879_v16 = vpop.permute.xlu1 %2878 }
0x1146   : > { %v9939_v57 = vpop.eup %9938 }
0x1147   : > { %v2485_v58 = vsel %vm1120_vm2, %v9939_v57, 0.0 }
0x1148   : > { %2486 = vadd.xlane.f32.xlu0 %v2485_v58 }
0x114a   : > { %v9941_v59 = vpop.eup %9940 }
0x114b   : > { %v2651_v60 = vsel %vm1120_vm2, %v9941_v59, 0.0 }
0x114c   : > { %2652 = vadd.xlane.f32.xlu0 %v2651_v60 }
0x1162   : > { %2490 = vrot.lane.b32.xlu0 %v10435_v39, %s11135_s23 }
0x1166   : > { %2880 = vrot.lane.b32.xlu0 %v10435_v39, %s11139_s26 }
0x11d5   : > { %v2487_v62 = vpop.xlane.xlu0 %2486 }
0x11d6   : > { %9942 = vrcp.f32 %v2487_v62 }
0x11d9   : > { %v2653_v63 = vpop.xlane.xlu0 %2652 }
0x11da   : > { %9944 = vrcp.f32 %v2653_v63 }
0x11dd   : > { %v2491_v0 = vpop.permute.xlu0 %2490 }
0x11de   : > { %9276 = vmatpush3.msra.mxu1 %v2491_v0 }
0x11df   : > { %9285 = vmatprep.subr.mxu1 %v10077_v6 }
0x11e0   : > { %v9943_v1 = vpop.eup %9942 }
0x11e1   : > { %v2489_v2 = vmul.f32 %v9943_v1, %v9939_v57  ;;  %v2881_v14 = vpop.permute.xlu0 %2880 }
0x11e3   : > { %9278 = vmatmul.mubr.msk.f32.vlgmr.msra.gmra.mrb[16].mxu1 %vm1120_vm2, %v2489_v2 }
0x11e4   : > { %v9945_v5 = vpop.eup %9944  ;;  %9286 = vmatpush3.msra.mxu1 %v2657_v4  ;;  %9287 = vmatprep.mubr.msk.f32.mxu1 %vm10076_vm0, %v10077_v6 }
0x11e5   : > { %v2655_v7 = vmul.f32 %v9945_v5, %v9941_v59  ;;  %9295 = vmatprep.subr.mxu1 %v10077_v6  ;;  %v8748_v5 = vld [vmem:[%s11205_s3 + $0x20] sm:$0xff] }
0x11e7   : > { %9288 = vmatmul.mubr.msk.f32.vlgmr.msra.gmra.mrb[18].mxu1 %vm1120_vm2, %v2655_v7  ;;  %v8749_v7 = vld [vmem:[%s11205_s3 + $0x28] sm:$0xff] }
0x11e8   : > { %9297 = vmatprep.mubr.msk.f32.mxu1 %vm10076_vm0, %v10077_v6  ;;  %9296 = vmatpush3.msra.mxu1 %v8724_v9  ;;  %v9768_v9 = vpack.c.bf16 %v8749_v7, %v8748_v5 }
0x11e9   : > { %9305 = vmatprep.subr.mxu1 %v10077_v6 }
0x12b6   : > { %v2562_v10 = vpop.f32.mrb[16].mxu1 }
0x12b7   : > { %v9279_v12 = vpop.f32.mrb[17].mxu1  ;;  %9298 = vmatmul.mubr.msk.f32.vlgmr.msra.gmra.mrb[20].mxu1 %vm1120_vm2, %v2562_v10  ;;  %v8751_v10 = vld [vmem:[%s11205_s3 + $0x38] sm:$0xff] }
0x12b8   : > { %9307 = vmatprep.mubr.msk.f32.mxu1 %vm10076_vm0, %v10077_v6 }
0x12ba   : > { %v2728_v13 = vpop.f32.mrb[18].mxu1 }
0x12bb   : > { %v9289_v15 = vpop.f32.mrb[19].mxu1  ;;  %9293 = vmatmul.mubr.msk.f32.vlgmr.msra.gmra.mrb[20].mxu0 %vm1120_vm2, %v2728_v13  ;;  %v8753_v13 = vld [vmem:[%s11202_s14 + $0x40] sm:$0xff] }
0x12bc   : > { %9301 = vmatpush3.xpose.msk.msra.mxu0 %vm1120_vm2, %v2881_v14  ;;  %9302 = vmatprep.mubr.msk.f32.mxu0 %vm10076_vm0, %v10077_v6  ;;  %v8754_v14 = vld [vmem:[%s11202_s14 + $0x48] sm:$0xff]  ;;  %v8755_v15 = vld [vmem:[%s11202_s14 + $0x50] sm:$0xff] }
0x12bd   : > { %9310 = vmatprep.subr.mxu0 %v10077_v6 }
0x12bf   : > { %9303 = vmatmul.mubr.msk.f32.vlgmr.msra.gmra.mrb[22].mxu0 %vm1120_vm2, %v2879_v16  ;;  %v9774_v16 = vpack.c.bf16 %v8754_v14, %v8753_v13 }
0x12c0   : > { %9312 = vmatprep.mubr.msk.f32.mxu0 %vm10076_vm0, %v10077_v6  ;;  %9311 = vmatpush3.msra.mxu0 %v8726_v37 }
0x12c1   : > { %9320 = vmatprep.subr.mxu0 %v10077_v6 }
0x138a   : > { %v2874_v17 = vpop.f32.mrb[20].mxu1 }
0x138b   : > { %v9299_v18 = vpop.f32.mrb[21].mxu1 }
0x138e   : > { %v2801_v19 = vpop.f32.mrb[20].mxu0 }
0x138f   : > { %v2875_v20 = vadd.f32 %v2874_v17, %v2801_v19  ;;  %v9294_v21 = vpop.f32.mrb[21].mxu0  ;;  %v8756_v17 = vld [vmem:[%s11202_s14 + $0x58] sm:$0xff]  ;;  %v8757_v19 = vld [vmem:[%s11202_s14 + $0x60] sm:$0xff] }
0x1390   : > { %v9777_v18 = vpack.c.bf16 %v8756_v17, %v8755_v15 }
0x1392   : > { %v2952_v22 = vpop.f32.mrb[22].mxu0 }
0x1393   : > { %v2956_v23 = vmul.f32 0.35355338, %v2952_v22  ;;  %v9304_v24 = vpop.f32.mrb[23].mxu0 }
0x1395   : > { %v2957_v25 = vsel %vm1120_vm2, %v2956_v23, -inf }
0x1396   : > { %2958 = vmax.xlane.f32.xlu0 %v2957_v25 }
0x13ac   : > { %2968 = vrot.lane.b32.xlu0 %v10435_v39, %s11133_s10  ;;  %s11208_s10 = sld [smem:[#allocation16_spill]] }
0x13b0   : > { %3118 = vrot.lane.b32.xlu0 %v10435_v39, %s11141_s2 }
0x1423   : > { %v2959_v11 = vpop.xlane.xlu0 %2958 }
0x1424   : > { %v2960_v26 = vsub.f32 %v2956_v23, %v2959_v11  ;;  %v8746_v11 = vld [vmem:[%s11197_s25 + $0x1] ss:$0 sm:$0xff]  ;;  %s11231_s25 = sld [smem:[#allocation28_spill]] }
0x1426   : > { %v2961_v27 = vmul.f32 1.442695, %v2960_v26 }
0x1427   : > { %v2969_v28 = vpop.permute.xlu0 %2968 }
0x1428   : > { %9946 = vpow2.f32 %v2961_v27  ;;  %9306 = vmatpush3.msra.mxu1 %v2969_v28  ;;  %v3600_v27 = vld [vmem:[%s11194_s6] sm:$0xff]  ;;  %v3601_v28 = vld [vmem:[%s11194_s6 + $0x8] sm:$0xff] }
0x1429   : > { %9315 = vmatprep.subr.mxu1 %v10077_v6 }
0x142b   : > { %v3119_v35 = vpop.permute.xlu0 %3118 }
0x1432   : > { %v9947_v29 = vpop.eup %9946 }
0x1433   : > { %v2963_v30 = vsel %vm1120_vm2, %v9947_v29, 0.0 }
0x1434   : > { %2964 = vadd.xlane.f32.xlu1 %v2963_v30 }
0x1445   : > { %3120 = vrot.lane.b32.xlu1 %v10435_v39, %s11137_s1 }
0x14c1   : > { %v2965_v31 = vpop.xlane.xlu1 %2964 }
0x14c2   : > { %9948 = vrcp.f32 %v2965_v31  ;;  %v9786_v31 = vpack.c.bf16 %v3601_v28, %v3600_v27 }
0x14c5   : > { %v3121_v34 = vpop.permute.xlu1 %3120 }
0x14cc   : > { %v9949_v32 = vpop.eup %9948 }
0x14cd   : > { %v2967_v33 = vmul.f32 %v9949_v32, %v9947_v29  ;;  %v8747_v29 = vld [vmem:[%s11196_s29 + $0x1] ss:$0 sm:$0xff]  ;;  %s11232_s29 = sld [smem:[#allocation30_spill]] }
0x14cf   : > { %9308 = vmatmul.mubr.msk.f32.vlgmr.msra.gmra.mrb[22].mxu1 %vm1120_vm2, %v2967_v33  ;;  %v3602_v33 = vld [vmem:[%s11194_s6 + $0x10] sm:$0xff] }
0x14d0   : > { %9316 = vmatpush3.xpose.msk.msra.mxu1 %vm1120_vm2, %v3121_v34  ;;  %9317 = vmatprep.mubr.msk.f32.mxu1 %vm10076_vm0, %v10077_v6  ;;  %v3603_v34 = vld [vmem:[%s11194_s6 + $0x18] sm:$0xff] }
0x14d1   : > { %9325 = vmatprep.subr.mxu1 %v10077_v6 }
0x14d3   : > { %9318 = vmatmul.mubr.msk.f32.vlgmr.msra.gmra.mrb[24].mxu1 %vm1120_vm2, %v3119_v35  ;;  %v9789_v35 = vpack.c.bf16 %v3603_v34, %v3602_v33 }
0x14d4   : > { %9327 = vmatprep.mubr.msk.f32.mxu1 %vm10076_vm0, %v10077_v6  ;;  %9326 = vmatpush3.msra.mxu1 %v8727_v49 }
0x14d5   : > { %9773 = vmatprep.subr.bf16.mxu1 %v10075_v3 }
0x15a2   : > { %v3040_v38 = vpop.f32.mrb[22].mxu1 }
0x15a3   : > { %v9309_v40 = vpop.f32.mrb[23].mxu1  ;;  %9313 = vmatmul.mubr.msk.f32.vlgmr.msra.gmra.mrb[24].mxu0 %vm1120_vm2, %v3040_v38  ;;  %v8759_v38 = vld [vmem:[%s11202_s14 + $0x70] sm:$0xff] }
0x15a4   : > { %9322 = vmatprep.mubr.msk.f32.mxu0 %vm10076_vm0, %v10077_v6  ;;  %v8760_v40 = vld [vmem:[%s11202_s14 + $0x78] sm:$0xff] }
0x15a6   : > { %v3192_v41 = vpop.f32.mrb[24].mxu1 }
0x15a7   : > { %v3196_v42 = vmul.f32 0.35355338, %v3192_v41  ;;  %v9319_v43 = vpop.f32.mrb[25].mxu1  ;;  %v9783_v41 = vpack.c.bf16 %v8760_v40, %v8759_v38 }
0x15a9   : > { %v3197_v8 = vsel %vm1120_vm2, %v3196_v42, -inf }
0x15aa   : > { %3198 = vmax.xlane.f32.xlu1 %v3197_v8 }
0x1637   : > { %v3199_v44 = vpop.xlane.xlu1 %3198 }
0x1638   : > { %v3200_v45 = vsub.f32 %v3196_v42, %v3199_v44  ;;  %v8762_v42 = vld [vmem:[%s11204_s8 + $0x1] ss:$0 sm:$0xff]  ;;  %s11223_s8 = sld [smem:[#allocation24_spill]] }
0x163a   : > { %v3201_v46 = vmul.f32 1.442695, %v3200_v45 }
0x163c   : > { %9950 = vpow2.f32 %v3201_v46  ;;  %v8770_v46 = vld [vmem:[%s11208_s10] ss:$0 sm:$0xff] }
0x1646   : > { %v9951_v47 = vpop.eup %9950 }
0x1647   : > { %v3203_v48 = vsel %vm1120_vm2, %v9951_v47, 0.0 }
0x1648   : > { %3204 = vadd.xlane.f32.xlu0 %v3203_v48 }
0x165e   : > { %3208 = vrot.lane.b32.xlu0 %v10435_v39, %s11131_s11  ;;  %s1022_s11 = scalar_lea.vmem %s11207_s9, %s10283_s0  ;;  %s11224_s9 = smov 104  }
0x165f   : > { %v10557_v37 = vld [vmem:[%s1022_s11] sm:$0xff]  ;;  %s11211_s11 = sld [smem:[#allocation17_spill]] }
0x1665   : > { %v3685_v17 = vld [vmem:[%s11211_s11 + $0x8] sm:$0xff] }
0x1676   : > { %v3113_v50 = vpop.f32.mrb[24].mxu0 }
0x1677   : > { %v3117_v51 = vadd.f32 %v3113_v50, %v2875_v20  ;;  %v9314_v52 = vpop.f32.mrb[25].mxu0  ;;  %v8758_v20 = vld [vmem:[%s11202_s14 + $0x68] sm:$0xff]  ;;  %s11226_s14 = smov 72  }
0x1678   : > { %v9780_v21 = vpack.c.bf16 %v8758_v20, %v8757_v19 }
0x16d5   : > { %v3205_v53 = vpop.xlane.xlu0 %3204 }
0x16d6   : > { %9952 = vrcp.f32 %v3205_v53 }
0x16d9   : > { %v3209_v54 = vpop.permute.xlu0 %3208 }
0x16da   : > { %9321 = vmatpush3.msra.mxu0 %v3209_v54 }
0x16db   : > { %9767 = vmatprep.subr.bf16.mxu0 %v10075_v3 }
0x16e0   : > { %v9953_v55 = vpop.eup %9952 }
0x16e1   : > { %v3207_v56 = vmul.f32 %v9953_v55, %v9951_v47  ;;  %v3688_v55 = vlaneseq }
0x16e3   : > { %9323 = vmatmul.mubr.msk.f32.vlgmr.msra.gmra.mrb[26].mxu0 %vm1120_vm2, %v3207_v56  ;;  %v3689_v56 = vshrl.u32 %v3688_v55, 7 }
0x16e4   : > { %9338 = vmatprep.mubr.msk.f32.mxu0 %vm10076_vm0, %v10077_v6  ;;  %9769 = vmatpush3.bf16.msra.mxu0 %v9768_v9 }
0x16e5   : > { %9770 = vmatprep.subr.bf16.mxu0 %v10075_v3 }
0x17b6   : > { %v3280_v39 = vpop.f32.mrb[26].mxu0 }
0x17b7   : > { %v9324_v57 = vpop.f32.mrb[27].mxu0  ;;  %9328 = vmatmul.mubr.msk.f32.vlgmr.msra.gmra.mrb[26].mxu1 %vm1120_vm2, %v3280_v39  ;;  %v3691_v39 = vand.u32 127, %v3688_v55 }
0x17b8   : > { %9357 = vmatprep.mubr.msk.f32.mxu1 %vm10076_vm0, %v10077_v6  ;;  %9775 = vmatpush3.bf16.msra.mxu1 %v9774_v16 }
0x17b9   : > { %9776 = vmatprep.subr.bf16.mxu1 %v10075_v3  ;;  %vm10593_vm4 = vcmp.le.s32.totalorder %v3691_v39, %v3689_v56 }
0x17bc   : > { %9778 = vmatpush3.bf16.msra.mxu1 %v9777_v18 }
0x17bd   : > { %9779 = vmatprep.subr.bf16.mxu1 %v10075_v3 }
0x17c0   : > { %9781 = vmatpush3.bf16.msra.mxu1 %v9780_v21 }
0x17c1   : > { %9782 = vmatprep.subr.bf16.mxu1 %v10075_v3 }
0x17c4   : > { %9784 = vmatpush3.bf16.msra.mxu1 %v9783_v41 }
0x17c5   : > { %9376 = vmatprep.subr.mxu1 %v10077_v6 }
0x188a   : > { %v3353_v58 = vpop.f32.mrb[26].mxu1 }
0x188b   : > { %v3357_v59 = vadd.f32 %v3353_v58, %v3117_v51  ;;  %v9329_v60 = vpop.f32.mrb[27].mxu1 }
0x188d   : > { %v3358_v61 = vadd.f32 %v3357_v59, %v10428_v36  ;;  %v8750_v36 = vld [vmem:[%s11205_s3 + $0x30] sm:$0xff]  ;;  %s11221_s3 = smov 96  }
0x188e   : > { %v9771_v12 = vpack.c.bf16 %v8751_v10, %v8750_v36 }
0x188f   : > { %v3363_v62 = vsel %vm1039_vm1, %v3358_v61, 0.0 }
0x1890   : > { %3364 = vadd.xlane.f32.xlu1 %v3363_v62  ;;  %9772 = vmatpush3.bf16.msra.mxu0 %v9771_v12 }
0x1891   : > { %9785 = vmatprep.subr.bf16.mxu0 %v10075_v3 }
0x191d   : > { %v3365_v63 = vpop.xlane.xlu1 %3364 }
0x191e   : > { %v3366_v0 = vmul.f32 0.03125, %v3365_v63 }
0x1920   : > { %v3367_v1 = vsub.f32 %v3358_v61, %v3366_v0 }
0x1922   : > { %v3368_v2 = vmul.f32 %v3367_v1, %v3367_v1 }
0x1924   : > { %v3369_v4 = vsel %vm1039_vm1, %v3368_v2, 0.0 }
0x1925   : > { %3370 = vadd.xlane.f32.xlu1 %v3369_v4 }
0x19b2   : > { %v3371_v22 = vpop.xlane.xlu1 %3370 }
0x19b3   : > { %v3372_v23 = vmul.f32 0.03125, %v3371_v22 }
0x19b5   : > { %v3373_v24 = vadd.f32 1e-05, %v3372_v23 }
0x19b7   : > { %9954 = vrsqrt.f32 %v3373_v24 }
0x19c1   : > { %v9955_v25 = vpop.eup %9954 }
0x19c2   : > { %v3375_v26 = vmul.f32 %v9955_v25, %v3367_v1 }
0x19c4   : > { %v3382_v30 = vmul.f32 %v8746_v11, %v3375_v26  ;;  %v3684_v11 = vld [vmem:[%s11211_s11] sm:$0xff] }
0x19c6   : > { %v10546_v32 = vadd.f32 %v8747_v29, %v3382_v30 }
0x19c8   : > { %9339 = vmatmul.mubr.msk.f32.vlgmr.msra.gmra.mrb[28].mxu0 %vm1039_vm1, %v10546_v32 }
0x19c9   : > { %9787 = vmatpush3.bf16.msra.mxu0 %v9786_v31  ;;  %9368 = vmatprep.mubr.msk.f32.mxu0 %vm10076_vm0, %v10077_v6 }
0x19ca   : > { %9788 = vmatprep.subr.bf16.mxu0 %v10075_v3 }
0x19cd   : > { %9790 = vmatpush3.bf16.msra.mxu0 %v9789_v35 }
0x19ce   : > { %9371 = vmatprep.subr.mxu0 %v10077_v6 }
0x19d0   : > { %9369 = vmatmul.mubr.msk.f32.vlgmr.msra.gmra.mrb[30].mxu0 %vm1039_vm1, %v10557_v37 }
0x19d1   : > { %9373 = vmatprep.mubr.msk.f32.mxu0 %vm10076_vm0, %v10077_v6 }
0x1a9b   : > { %v3483_v43 = vpop.f32.mrb[28].mxu0 }
0x1a9c   : > { %v3484_v8 = vadd.f32 %v8762_v42, %v3483_v43  ;;  %v9340_v44 = vpop.f32.mrb[29].mxu0 }
0x1a9e   : > { %v3487_v45 = vmax.f32 %v3484_v8, 0.0 }
0x1aa0   : > { %9358 = vmatmul.mubr.msk.f32.vlgmr.msra.gmra.mrb[28].mxu1 %vm2206_vm3, %v3487_v45 }
0x1aa1   : > { %9378 = vmatprep.mubr.msk.f32.mxu1 %vm10076_vm0, %v10077_v6 }
0x1aa3   : > { %v3680_v47 = vpop.f32.mrb[30].mxu0 }
0x1aa4   : > { %v10572_v48 = vadd.f32 %v8770_v46, %v3680_v47  ;;  %v9370_v49 = vpop.f32.mrb[31].mxu0 }
0x1aa6   : > { %3861 = vrot.lane.b32.xlu0 %v10572_v48, %s11147_s18  ;;  %3694 = vrot.lane.b32.xlu1 %v10572_v48, %s11145_s16  ;;  %s11218_s16 = sld [smem:[#allocation23_spill]]  ;;  %s11219_s18 = sld [smem:[#allocation21_spill]] }
0x1aaa   : > { %3859 = vrot.lane.b32.xlu0 %v10572_v48, %s11149_s15 }
0x1b18   : > { %v3695_v50 = vpop.permute.xlu1 %3694  ;;  %v3862_v51 = vpop.permute.xlu0 %3861 }
0x1b19   : > { %9372 = vmatpush3.xpose.msk.msra.mxu0 %vm1120_vm2, %v3695_v50 }
0x1b1a   : > { %9381 = vmatprep.subr.mxu0 %v10077_v6 }
0x1b1c   : > { %9374 = vmatmul.mubr.msk.f32.vlgmr.msra.gmra.mrb[32].mxu0 %vm1120_vm2, %v10572_v48  ;;  %v3860_v52 = vpop.permute.xlu0 %3859 }
0x1b1d   : > { %9382 = vmatpush3.xpose.msk.msra.mxu0 %vm1120_vm2, %v3862_v51  ;;  %9383 = vmatprep.mubr.msk.f32.mxu0 %vm10076_vm0, %v10077_v6 }
0x1b1e   : > { %9391 = vmatprep.subr.mxu0 %v10077_v6 }
0x1b20   : > { %9384 = vmatmul.mubr.msk.f32.vlgmr.msra.gmra.mrb[34].mxu0 %vm1120_vm2, %v3860_v52 }
0x1b21   : > { %9393 = vmatprep.mubr.msk.f32.mxu0 %vm10076_vm0, %v10077_v6  ;;  %9392 = vmatpush3.msra.mxu0 %v3685_v17 }
0x1b22   : > { %9401 = vmatprep.subr.mxu0 %v10077_v6 }
0x1b73   : > { %v10591_v53 = vpop.f32.mrb[28].mxu1 }
0x1b74   : > { %v9359_v54 = vpop.f32.mrb[29].mxu1 }
0x1bef   : > { %v3766_v57 = vpop.f32.mrb[32].mxu0 }
0x1bf0   : > { %v3770_v59 = vmul.f32 0.35355338, %v3766_v57  ;;  %v9375_v60 = vpop.f32.mrb[33].mxu0  ;;  %v3686_v57 = vld [vmem:[%s11211_s11 + $0x10] sm:$0xff] }
0x1bf2   : > { %v3771_v61 = vsel %vm10593_vm4, %v3770_v59, -1e+30 }
0x1bf3   : > { %v3933_v62 = vpop.f32.mrb[34].mxu0  ;;  %v3772_v63 = vsel %vm1120_vm2, %v3771_v61, -inf }
0x1bf4   : > { %v3937_v0 = vmul.f32 0.35355338, %v3933_v62  ;;  %3773 = vmax.xlane.f32.xlu1 %v3772_v63  ;;  %v9385_v1 = vpop.f32.mrb[35].mxu0 }
0x1bf6   : > { %v3938_v2 = vsel %vm10593_vm4, %v3937_v0, -1e+30 }
0x1bf7   : > { %v3939_v4 = vsel %vm1120_vm2, %v3938_v2, -inf }
0x1bf8   : > { %3940 = vmax.xlane.f32.xlu0 %v3939_v4 }
0x1c81   : > { %v3774_v5 = vpop.xlane.xlu1 %3773 }
0x1c82   : > { %v3775_v7 = vsub.f32 %v3771_v61, %v3774_v5 }
0x1c84   : > { %v3776_v9 = vmul.f32 1.442695, %v3775_v7 }
0x1c85   : > { %v3941_v36 = vpop.xlane.xlu0 %3940 }
0x1c86   : > { %9956 = vpow2.f32 %v3776_v9  ;;  %v3942_v10 = vsub.f32 %v3938_v2, %v3941_v36  ;;  %v8764_v9 = vld [vmem:[%s11200_s19 + $0x1] ss:$0 sm:$0xff]  ;;  %s11228_s19 = sld [smem:[#allocation29_spill]] }
0x1c87   : > { %v3564_v36 = vadd.f32 %v8764_v9, %v10591_v53 }
0x1c88   : > { %v3943_v12 = vmul.f32 1.442695, %v3942_v10 }
0x1c8a   : > { %9958 = vpow2.f32 %v3943_v12 }
0x1c90   : > { %v9957_v13 = vpop.eup %9956 }
0x1c91   : > { %v3778_v14 = vsel %vm1120_vm2, %v9957_v13, 0.0 }
0x1c92   : > { %3779 = vadd.xlane.f32.xlu0 %v3778_v14  ;;  %v3687_v14 = vld [vmem:[%s11211_s11 + $0x18] sm:$0xff] }
0x1c94   : > { %v9959_v15 = vpop.eup %9958 }
0x1c95   : > { %v3945_v16 = vsel %vm1120_vm2, %v9959_v15, 0.0 }
0x1c96   : > { %3946 = vadd.xlane.f32.xlu1 %v3945_v16 }
0x1ca7   : > { %3950 = vrot.lane.b32.xlu1 %v10572_v48, %s11136_s22  ;;  %s11213_s22 = smov 40  }
0x1ca8   : > { %3783 = vrot.lane.b32.xlu0 %v10572_v48, %s11135_s23  ;;  %s11212_s23 = smov 48  }
0x1cab   : > { %4174 = vrot.lane.b32.xlu1 %v10572_v48, %s11139_s26  ;;  %s11215_s26 = sld [smem:[#allocation20_spill]] }
0x1cac   : > { %4172 = vrot.lane.b32.xlu0 %v10572_v48, %s11143_s28  ;;  %s11217_s28 = sld [smem:[#allocation19_spill]] }
0x1d1f   : > { %v3780_v18 = vpop.xlane.xlu0 %3779 }
0x1d20   : > { %9960 = vrcp.f32 %v3780_v18 }
0x1d23   : > { %v3947_v19 = vpop.xlane.xlu1 %3946  ;;  %v3784_v20 = vpop.permute.xlu0 %3783 }
0x1d24   : > { %9962 = vrcp.f32 %v3947_v19  ;;  %9377 = vmatpush3.msra.mxu1 %v3784_v20 }
0x1d25   : > { %9386 = vmatprep.subr.mxu1 %v10077_v6 }
0x1d27   : > { %v3951_v23 = vpop.permute.xlu1 %3950  ;;  %v4173_v31 = vpop.permute.xlu0 %4172 }
0x1d2a   : > { %v9961_v21 = vpop.eup %9960 }
0x1d2b   : > { %v3782_v22 = vmul.f32 %v9961_v21, %v9957_v13  ;;  %v4175_v29 = vpop.permute.xlu1 %4174  ;;  %v3567_v13 = vadd.f32 %v3564_v36, %v10546_v32 }
0x1d2d   : > { %9379 = vmatmul.mubr.msk.f32.vlgmr.msra.gmra.mrb[30].mxu1 %vm1120_vm2, %v3782_v22 }
0x1d2e   : > { %v9963_v24 = vpop.eup %9962  ;;  %9387 = vmatpush3.msra.mxu1 %v3951_v23  ;;  %9388 = vmatprep.mubr.msk.f32.mxu1 %vm10076_vm0, %v10077_v6 }
0x1d2f   : > { %v3949_v25 = vmul.f32 %v9963_v24, %v9959_v15  ;;  %9396 = vmatprep.subr.mxu1 %v10077_v6 }
0x1d31   : > { %9389 = vmatmul.mubr.msk.f32.vlgmr.msra.gmra.mrb[32].mxu1 %vm1120_vm2, %v3949_v25 }
0x1d32   : > { %9398 = vmatprep.mubr.msk.f32.mxu1 %vm10076_vm0, %v10077_v6  ;;  %9397 = vmatpush3.msra.mxu1 %v3684_v11 }
0x1d33   : > { %9406 = vmatprep.subr.mxu1 %v10077_v6 }
0x1e00   : > { %v3855_v26 = vpop.f32.mrb[30].mxu1 }
0x1e01   : > { %v9380_v27 = vpop.f32.mrb[31].mxu1  ;;  %9399 = vmatmul.mubr.msk.f32.vlgmr.msra.gmra.mrb[34].mxu1 %vm1120_vm2, %v3855_v26 }
0x1e02   : > { %9408 = vmatprep.mubr.msk.f32.mxu1 %vm10076_vm0, %v10077_v6 }
0x1e04   : > { %v4022_v28 = vpop.f32.mrb[32].mxu1 }
0x1e05   : > { %v9390_v30 = vpop.f32.mrb[33].mxu1  ;;  %9394 = vmatmul.mubr.msk.f32.vlgmr.msra.gmra.mrb[36].mxu0 %vm1120_vm2, %v4022_v28 }
0x1e06   : > { %9402 = vmatpush3.xpose.msk.msra.mxu0 %vm1120_vm2, %v4175_v29  ;;  %9403 = vmatprep.mubr.msk.f32.mxu0 %vm10076_vm0, %v10077_v6 }
0x1e07   : > { %9411 = vmatprep.subr.mxu0 %v10077_v6 }
0x1e09   : > { %9404 = vmatmul.mubr.msk.f32.vlgmr.msra.gmra.mrb[38].mxu0 %vm1120_vm2, %v4173_v31 }
0x1e0a   : > { %9413 = vmatprep.mubr.msk.f32.mxu0 %vm10076_vm0, %v10077_v6  ;;  %9412 = vmatpush3.msra.mxu0 %v3686_v57  ;;  %v4687_v57 = vld [vmem:[%s11215_s26 + $0x18] sm:$0xff] }
0x1e0b   : > { %9421 = vmatprep.subr.mxu0 %v10077_v6 }
0x1ed4   : > { %v4168_v33 = vpop.f32.mrb[34].mxu1 }
0x1ed5   : > { %v9400_v34 = vpop.f32.mrb[35].mxu1 }
0x1ed8   : > { %v4095_v35 = vpop.f32.mrb[36].mxu0 }
0x1ed9   : > { %v10636_v38 = vadd.f32 %v4168_v33, %v4095_v35  ;;  %v9395_v40 = vpop.f32.mrb[37].mxu0 }
0x1edc   : > { %v4246_v41 = vpop.f32.mrb[38].mxu0 }
0x1edd   : > { %v4250_v42 = vmul.f32 0.35355338, %v4246_v41  ;;  %v9405_v43 = vpop.f32.mrb[39].mxu0 }
0x1edf   : > { %v4251_v8 = vsel %vm10593_vm4, %v4250_v42, -1e+30 }
0x1ee0   : > { %v4252_v44 = vsel %vm1120_vm2, %v4251_v8, -inf }
0x1ee1   : > { %4253 = vmax.xlane.f32.xlu1 %v4252_v44 }
0x1ef2   : > { %4415 = vrot.lane.b32.xlu1 %v10572_v48, %s11137_s1  ;;  %s11214_s1 = sld [smem:[#allocation22_spill]] }
0x1ef6   : > { %4413 = vrot.lane.b32.xlu1 %v10572_v48, %s11141_s2  ;;  %s11216_s2 = sld [smem:[#allocation18_spill]] }
0x1ef8   : > { %v4768_v30 = vld [vmem:[%s11214_s1] sm:$0xff]  ;;  %v4769_v31 = vld [vmem:[%s11214_s1 + $0x8] sm:$0xff]  ;;  %v4770_v34 = vld [vmem:[%s11214_s1 + $0x10] sm:$0xff] }
0x1ef9   : > { %v9798_v33 = vpack.c.bf16 %v4769_v31, %v4768_v30  ;;  %v4771_v35 = vld [vmem:[%s11214_s1 + $0x18] sm:$0xff] }
0x1f6e   : > { %v4254_v45 = vpop.xlane.xlu1 %4253 }
0x1f6f   : > { %v4255_v46 = vsub.f32 %v4251_v8, %v4254_v45 }
0x1f71   : > { %v4256_v47 = vmul.f32 1.442695, %v4255_v46 }
0x1f72   : > { %v4416_v55 = vpop.permute.xlu1 %4415 }
0x1f73   : > { %9964 = vpow2.f32 %v4256_v47  ;;  %v8768_v47 = vld [vmem:[%s11198_s24 + $0x1] ss:$0 sm:$0xff]  ;;  %s11230_s24 = sld [smem:[#allocation26_spill]] }
0x1f76   : > { %v4414_v39 = vpop.permute.xlu1 %4413 }
0x1f7d   : > { %v9965_v49 = vpop.eup %9964 }
0x1f7e   : > { %v4258_v50 = vsel %vm1120_vm2, %v9965_v49, 0.0 }
0x1f7f   : > { %4259 = vadd.xlane.f32.xlu0 %v4258_v50  ;;  %v8769_v50 = vld [vmem:[%s11195_s30 + $0x1] ss:$0 sm:$0xff]  ;;  %s11233_s30 = sld [smem:[#allocation31_spill]] }
0x1f95   : > { %4263 = vrot.lane.b32.xlu0 %v10572_v48, %s11212_s23 }
0x200c   : > { %v4260_v51 = vpop.xlane.xlu0 %4259 }
0x200d   : > { %9966 = vrcp.f32 %v4260_v51 }
0x2010   : > { %v4264_v52 = vpop.permute.xlu0 %4263 }
0x2011   : > { %9407 = vmatpush3.msra.mxu1 %v4264_v52 }
0x2012   : > { %9416 = vmatprep.subr.mxu1 %v10077_v6 }
0x2017   : > { %v9967_v54 = vpop.eup %9966 }
0x2018   : > { %v4262_v56 = vmul.f32 %v9967_v54, %v9965_v49  ;;  %v4684_v54 = vld [vmem:[%s11215_s26] sm:$0xff] }
0x201a   : > { %9409 = vmatmul.mubr.msk.f32.vlgmr.msra.gmra.mrb[36].mxu1 %vm1120_vm2, %v4262_v56 }
0x201b   : > { %9417 = vmatpush3.xpose.msk.msra.mxu1 %vm1120_vm2, %v4416_v55  ;;  %9418 = vmatprep.mubr.msk.f32.mxu1 %vm10076_vm0, %v10077_v6  ;;  %v4685_v55 = vld [vmem:[%s11215_s26 + $0x8] sm:$0xff] }
0x201c   : > { %9426 = vmatprep.subr.mxu1 %v10077_v6  ;;  %v9792_v56 = vpack.c.bf16 %v4685_v55, %v4684_v54 }
0x201e   : > { %9419 = vmatmul.mubr.msk.f32.vlgmr.msra.gmra.mrb[38].mxu1 %vm1120_vm2, %v4414_v39  ;;  %v4686_v39 = vld [vmem:[%s11215_s26 + $0x10] sm:$0xff] }
0x201f   : > { %9428 = vmatprep.mubr.msk.f32.mxu1 %vm10076_vm0, %v10077_v6  ;;  %9427 = vmatpush3.msra.mxu1 %v3687_v14 }
0x2020   : > { %9797 = vmatprep.subr.bf16.mxu1 %v10075_v3 }
0x20ed   : > { %v4335_v59 = vpop.f32.mrb[36].mxu1 }
0x20ee   : > { %v9410_v60 = vpop.f32.mrb[37].mxu1  ;;  %9414 = vmatmul.mubr.msk.f32.vlgmr.msra.gmra.mrb[40].mxu0 %vm1120_vm2, %v4335_v59  ;;  %v9795_v59 = vpack.c.bf16 %v4687_v57, %v4686_v39 }
0x20ef   : > { %9423 = vmatprep.mubr.msk.f32.mxu0 %vm10076_vm0, %v10077_v6 }
0x20f1   : > { %v4487_v61 = vpop.f32.mrb[38].mxu1 }
0x20f2   : > { %v4491_v62 = vmul.f32 0.35355338, %v4487_v61  ;;  %v9420_v63 = vpop.f32.mrb[39].mxu1 }
0x20f4   : > { %v4492_v0 = vsel %vm10593_vm4, %v4491_v62, -1e+30 }
0x20f5   : > { %v4493_v1 = vsel %vm1120_vm2, %v4492_v0, -inf }
0x20f6   : > { %4494 = vmax.xlane.f32.xlu0 %v4493_v1 }
0x210c   : > { %4504 = vrot.lane.b32.xlu0 %v10572_v48, %s11213_s22  ;;  %v3572_v48 = vsel %vm1039_vm1, %v3567_v13, 0.0 }
0x2183   : > { %v4495_v2 = vpop.xlane.xlu0 %4494 }
0x2184   : > { %v4496_v4 = vsub.f32 %v4492_v0, %v4495_v2  ;;  %v8788_v0 = vld [vmem:[%s11216_s2] ss:$0 sm:$0xff] }
0x2185   : > { %v8789_v2 = vld [vmem:[%s11217_s28] ss:$0 sm:$0xff] }
0x2186   : > { %v4497_v5 = vmul.f32 1.442695, %v4496_v4 }
0x2187   : > { %v4505_v7 = vpop.permute.xlu0 %4504 }
0x2188   : > { %9968 = vpow2.f32 %v4497_v5  ;;  %9422 = vmatpush3.msra.mxu0 %v4505_v7  ;;  %v8792_v7 = vld [vmem:[%s11218_s16] ss:$0 sm:$0xff] }
0x2189   : > { %9791 = vmatprep.subr.bf16.mxu0 %v10075_v3 }
0x2192   : > { %v9969_v10 = vpop.eup %9968 }
0x2193   : > { %v4499_v12 = vsel %vm1120_vm2, %v9969_v10, 0.0 }
0x2194   : > { %4500 = vadd.xlane.f32.xlu1 %v4499_v12  ;;  %v8790_v12 = vld [vmem:[%s11219_s18] ss:$0 sm:$0xff] }
0x2198   : > { %3573 = vadd.xlane.f32.xlu1 %v3572_v48 }
0x21c1   : > { %v4408_v15 = vpop.f32.mrb[40].mxu0 }
0x21c2   : > { %v4412_v16 = vadd.f32 %v4408_v15, %v10636_v38  ;;  %v9415_v17 = vpop.f32.mrb[41].mxu0  ;;  %v9801_v38 = vpack.c.bf16 %v4771_v35, %v4770_v34 }
0x2221   : > { %v4501_v18 = vpop.xlane.xlu1 %4500 }
0x2222   : > { %9970 = vrcp.f32 %v4501_v18 }
0x2225   : > { %v3574_v21 = vpop.xlane.xlu1 %3573 }
0x2226   : > { %v3575_v22 = vmul.f32 0.03125, %v3574_v21 }
0x2228   : > { %v3576_v24 = vsub.f32 %v3567_v13, %v3575_v22 }
0x222a   : > { %v3577_v28 = vmul.f32 %v3576_v24, %v3576_v24 }
0x222c   : > { %v9971_v53 = vpop.eup %9970  ;;  %v3578_v29 = vsel %vm1039_vm1, %v3577_v28, 0.0 }
0x222d   : > { %v4503_v19 = vmul.f32 %v9971_v53, %v9969_v10 }
0x222f   : > { %9424 = vmatmul.mubr.msk.f32.vlgmr.msra.gmra.mrb[42].mxu0 %vm1120_vm2, %v4503_v19 }
0x2230   : > { %9439 = vmatprep.mubr.msk.f32.mxu0 %vm10076_vm0, %v10077_v6  ;;  %9793 = vmatpush3.bf16.msra.mxu0 %v9792_v56 }
0x2231   : > { %9794 = vmatprep.subr.bf16.mxu0 %v10075_v3 }
0x2234   : > { %9796 = vmatpush3.bf16.msra.mxu0 %v9795_v59 }
0x2235   : > { %9453 = vmatprep.subr.mxu0 %v10077_v6 }
0x2302   : > { %v4576_v32 = vpop.f32.mrb[42].mxu0 }
0x2303   : > { %v9425_v20 = vpop.f32.mrb[43].mxu0  ;;  %9429 = vmatmul.mubr.msk.f32.vlgmr.msra.gmra.mrb[40].mxu1 %vm1120_vm2, %v4576_v32 }
0x2304   : > { %9450 = vmatprep.mubr.msk.f32.mxu1 %vm10076_vm0, %v10077_v6  ;;  %9799 = vmatpush3.bf16.msra.mxu1 %v9798_v33 }
0x2305   : > { %9800 = vmatprep.subr.bf16.mxu1 %v10075_v3 }
0x2308   : > { %9802 = vmatpush3.bf16.msra.mxu1 %v9801_v38 }
0x2309   : > { %9458 = vmatprep.subr.mxu1 %v10077_v6 }
0x23d6   : > { %v4649_v23 = vpop.f32.mrb[40].mxu1 }
0x23d7   : > { %v4653_v25 = vadd.f32 %v4649_v23, %v4412_v16  ;;  %v9430_v11 = vpop.f32.mrb[41].mxu1 }
0x23d9   : > { %v4654_v26 = vadd.f32 %v4653_v25, %v10557_v37 }
0x23db   : > { %v4657_v27 = vsel %vm1039_vm1, %v4654_v26, 0.0 }
0x23dc   : > { %4658 = vadd.xlane.f32.xlu1 %v4657_v27 }
0x23e0   : > { %3579 = vadd.xlane.f32.xlu1 %v3578_v29 }
0x2469   : > { %v4659_v37 = vpop.xlane.xlu1 %4658 }
0x246a   : > { %v4660_v40 = vmul.f32 0.03125, %v4659_v37 }
0x246c   : > { %v4661_v41 = vsub.f32 %v4654_v26, %v4660_v40 }
0x246d   : > { %v3580_v42 = vpop.xlane.xlu1 %3579 }
0x246e   : > { %v3581_v43 = vmul.f32 0.03125, %v3580_v42  ;;  %v4662_v8 = vmul.f32 %v4661_v41, %v4661_v41 }
0x2470   : > { %v3582_v44 = vadd.f32 1e-05, %v3581_v43  ;;  %v4663_v45 = vsel %vm1039_vm1, %v4662_v8, 0.0  ;;  %v4852_v43 = vld [vmem:[%s11223_s8] sm:$0xff]  ;;  %v4853_v8 = vld [vmem:[%s11223_s8 + $0x8] sm:$0xff] }
0x2471   : > { %4664 = vadd.xlane.f32.xlu1 %v4663_v45 }
0x2472   : > { %9972 = vrsqrt.f32 %v3582_v44 }
0x247c   : > { %v9973_v46 = vpop.eup %9972 }
0x247d   : > { %v3584_v49 = vmul.f32 %v9973_v46, %v3576_v24 }
0x247f   : > { %v3591_v51 = vmul.f32 %v8768_v47, %v3584_v49 }
0x2481   : > { %v10694_v52 = vadd.f32 %v8769_v50, %v3591_v51 }
0x2483   : > { %9451 = vmatmul.mubr.msk.f32.vlgmr.msra.gmra.mrb[42].mxu1 %vm1039_vm1, %v10694_v52 }
0x2484   : > { %9460 = vmatprep.mubr.msk.f32.mxu1 %vm10076_vm0, %v10077_v6 }
0x24fe   : > { %v4665_v60 = vpop.xlane.xlu1 %4664 }
0x24ff   : > { %v4666_v61 = vmul.f32 0.03125, %v4665_v60 }
0x2501   : > { %v4667_v62 = vadd.f32 1e-05, %v4666_v61 }
0x2503   : > { %9974 = vrsqrt.f32 %v4667_v62 }
0x250d   : > { %v9975_v63 = vpop.eup %9974 }
0x250e   : > { %v4669_v1 = vmul.f32 %v9975_v63, %v4661_v41 }
0x2510   : > { %v4676_v4 = vmul.f32 %v8788_v0, %v4669_v1 }
0x2512   : > { %v10708_v5 = vadd.f32 %v8789_v2, %v4676_v4 }
0x2514   : > { %9440 = vmatmul.mubr.msk.f32.vlgmr.msra.gmra.mrb[44].mxu0 %vm1039_vm1, %v10708_v5 }
0x2515   : > { %9455 = vmatprep.mubr.msk.f32.mxu0 %vm10076_vm0, %v10077_v6 }
0x2556   : > { %v4848_v9 = vpop.f32.mrb[42].mxu1 }
0x2557   : > { %v10715_v36 = vadd.f32 %v8792_v7, %v4848_v9  ;;  %v9452_v10 = vpop.f32.mrb[43].mxu1 }
0x2559   : > { %5022 = vrot.lane.b32.xlu1 %v10715_v36, %s11149_s15  ;;  %9454 = vmatpush3.xpose.msk.msra.mxu0 %vm1120_vm2, %v10715_v36 }
0x255a   : > { %9463 = vmatprep.subr.mxu0 %v10077_v6 }
0x25cb   : > { %v5023_v15 = vpop.permute.xlu1 %5022 }
0x25e7   : > { %v4764_v13 = vpop.f32.mrb[44].mxu0 }
0x25e8   : > { %v10723_v48 = vadd.f32 %v8790_v12, %v4764_v13  ;;  %v9441_v14 = vpop.f32.mrb[45].mxu0 }
0x25ea   : > { %5020 = vrot.lane.b32.xlu0 %v10723_v48, %s11149_s15  ;;  %9456 = vmatmul.mubr.msk.f32.vlgmr.msra.gmra.mrb[46].mxu0 %vm1120_vm2, %v10723_v48  ;;  %s11220_s15 = smov 88  }
0x25eb   : > { %9464 = vmatpush3.xpose.msk.msra.mxu0 %vm1120_vm2, %v5023_v15  ;;  %9465 = vmatprep.mubr.msk.f32.mxu0 %vm10076_vm0, %v10077_v6 }
0x25ec   : > { %9473 = vmatprep.subr.mxu0 %v10077_v6 }
0x265c   : > { %v5021_v16 = vpop.permute.xlu0 %5020 }
0x265d   : > { %9466 = vmatmul.mubr.msk.f32.vlgmr.msra.gmra.mrb[48].mxu0 %vm1120_vm2, %v5021_v16 }
0x265e   : > { %9475 = vmatprep.mubr.msk.f32.mxu0 %vm10076_vm0, %v10077_v6  ;;  %9474 = vmatpush3.msra.mxu0 %v4853_v8  ;;  %v5842_v8 = vld [vmem:[%s11227_s17] sm:$0xff] }
0x265f   : > { %9483 = vmatprep.subr.mxu0 %v10077_v6 }
0x26bd   : > { %v4928_v17 = vpop.f32.mrb[46].mxu0 }
0x26be   : > { %v4932_v18 = vmul.f32 0.35355338, %v4928_v17  ;;  %v9457_v53 = vpop.f32.mrb[47].mxu0 }
0x26c0   : > { %v4933_v19 = vsel %vm1120_vm2, %v4932_v18, -inf }
0x26c1   : > { %4934 = vmax.xlane.f32.xlu0 %v4933_v19 }
0x2730   : > { %v5094_v32 = vpop.f32.mrb[48].mxu0 }
0x2731   : > { %v5098_v20 = vmul.f32 0.35355338, %v5094_v32  ;;  %v9467_v21 = vpop.f32.mrb[49].mxu0 }
0x2733   : > { %v5099_v22 = vsel %vm1120_vm2, %v5098_v20, -inf }
0x2734   : > { %5100 = vmax.xlane.f32.xlu1 %v5099_v22 }
0x2745   : > { %5110 = vrot.lane.b32.xlu1 %v10715_v36, %s11220_s15 }
0x274e   : > { %v4935_v23 = vpop.xlane.xlu0 %4934 }
0x274f   : > { %v4936_v24 = vsub.f32 %v4932_v18, %v4935_v23 }
0x2751   : > { %v4937_v25 = vmul.f32 1.442695, %v4936_v24  ;;  %v4855_v24 = vld [vmem:[%s11223_s8 + $0x18] sm:$0xff] }
0x2753   : > { %9976 = vpow2.f32 %v4937_v25 }
0x275d   : > { %v9977_v11 = vpop.eup %9976 }
0x275e   : > { %v4939_v26 = vsel %vm1120_vm2, %v9977_v11, 0.0 }
0x275f   : > { %4940 = vadd.xlane.f32.xlu0 %v4939_v26 }
0x27c1   : > { %v5101_v27 = vpop.xlane.xlu1 %5100 }
0x27c2   : > { %v5102_v28 = vsub.f32 %v5098_v20, %v5101_v27 }
0x27c4   : > { %v5103_v29 = vmul.f32 1.442695, %v5102_v28 }
0x27c5   : > { %v5111_v40 = vpop.permute.xlu1 %5110 }
0x27c6   : > { %9978 = vpow2.f32 %v5103_v29 }
0x27d0   : > { %v9979_v30 = vpop.eup %9978 }
0x27d1   : > { %v5105_v31 = vsel %vm1120_vm2, %v9979_v30, 0.0 }
0x27d2   : > { %5106 = vadd.xlane.f32.xlu0 %v5105_v31 }
0x27e8   : > { %4944 = vrot.lane.b32.xlu0 %v10715_v36, %s11221_s3 }
0x27ec   : > { %5334 = vrot.lane.b32.xlu0 %v10715_v36, %s11222_s5  ;;  %v4941_v33 = vpop.xlane.xlu0 %4940 }
0x27ed   : > { %9980 = vrcp.f32 %v4941_v33 }
0x27f0   : > { %5332 = vrot.lane.b32.xlu0 %v10723_v48, %s11222_s5 }
0x27f7   : > { %v9981_v35 = vpop.eup %9980 }
0x27f8   : > { %v4943_v38 = vmul.f32 %v9981_v35, %v9977_v11 }
0x285f   : > { %v5107_v34 = vpop.xlane.xlu0 %5106 }
0x2860   : > { %9982 = vrcp.f32 %v5107_v34 }
0x2863   : > { %v4945_v37 = vpop.permute.xlu0 %4944 }
0x2864   : > { %9459 = vmatpush3.msra.mxu1 %v4945_v37 }
0x2865   : > { %9461 = vmatmul.mubr.msk.f32.vlgmr.msra.gmra.mrb[44].mxu1 %vm1120_vm2, %v4943_v38  ;;  %9468 = vmatprep.subr.mxu1 %v10077_v6 }
0x2866   : > { %9469 = vmatpush3.msra.mxu1 %v5111_v40  ;;  %9470 = vmatprep.mubr.msk.f32.mxu1 %vm10076_vm0, %v10077_v6 }
0x2867   : > { %9478 = vmatprep.subr.mxu1 %v10077_v6  ;;  %v5335_v46 = vpop.permute.xlu0 %5334 }
0x286a   : > { %v9983_v41 = vpop.eup %9982 }
0x286b   : > { %v5109_v42 = vmul.f32 %v9983_v41, %v9979_v30  ;;  %v5333_v50 = vpop.permute.xlu0 %5332 }
0x286d   : > { %9471 = vmatmul.mubr.msk.f32.vlgmr.msra.gmra.mrb[46].mxu1 %vm1120_vm2, %v5109_v42 }
0x286e   : > { %9480 = vmatprep.mubr.msk.f32.mxu1 %vm10076_vm0, %v10077_v6  ;;  %9479 = vmatpush3.msra.mxu1 %v4852_v43 }
0x286f   : > { %9488 = vmatprep.subr.mxu1 %v10077_v6 }
0x2938   : > { %v5016_v44 = vpop.f32.mrb[44].mxu1 }
0x2939   : > { %v9462_v45 = vpop.f32.mrb[45].mxu1  ;;  %9481 = vmatmul.mubr.msk.f32.vlgmr.msra.gmra.mrb[48].mxu1 %vm1120_vm2, %v5016_v44  ;;  %v5843_v44 = vld [vmem:[%s11227_s17 + $0x8] sm:$0xff] }
0x293a   : > { %9490 = vmatprep.mubr.msk.f32.mxu1 %vm10076_vm0, %v10077_v6  ;;  %v9804_v45 = vpack.c.bf16 %v5843_v44, %v5842_v8 }
0x2940   : > { %v5182_v47 = vpop.f32.mrb[46].mxu1 }
0x2941   : > { %v9472_v49 = vpop.f32.mrb[47].mxu1  ;;  %9476 = vmatmul.mubr.msk.f32.vlgmr.msra.gmra.mrb[50].mxu0 %vm1120_vm2, %v5182_v47 }
0x2942   : > { %9484 = vmatpush3.xpose.msk.msra.mxu0 %vm1120_vm2, %v5335_v46  ;;  %9485 = vmatprep.mubr.msk.f32.mxu0 %vm10076_vm0, %v10077_v6  ;;  %v5845_v46 = vld [vmem:[%s11227_s17 + $0x18] sm:$0xff]  ;;  %v5847_v49 = vld [vmem:[%s11228_s19] sm:$0xff] }
0x2943   : > { %9493 = vmatprep.subr.mxu0 %v10077_v6 }
0x2945   : > { %9486 = vmatmul.mubr.msk.f32.vlgmr.msra.gmra.mrb[52].mxu0 %vm1120_vm2, %v5333_v50  ;;  %v5848_v50 = vld [vmem:[%s11228_s19 + $0x8] sm:$0xff] }
0x2946   : > { %9495 = vmatprep.mubr.msk.f32.mxu0 %vm10076_vm0, %v10077_v6 }
0x2a0c   : > { %v5328_v51 = vpop.f32.mrb[48].mxu1 }
0x2a0d   : > { %v9482_v54 = vpop.f32.mrb[49].mxu1 }
0x2a0e   : > { %v9810_v54 = vpack.c.bf16 %v5848_v50, %v5847_v49 }
0x2a14   : > { %v5255_v55 = vpop.f32.mrb[50].mxu0 }
0x2a15   : > { %v5329_v56 = vadd.f32 %v5328_v51, %v5255_v55  ;;  %v9477_v39 = vpop.f32.mrb[51].mxu0  ;;  %v5849_v51 = vld [vmem:[%s11228_s19 + $0x10] sm:$0xff]  ;;  %v5850_v55 = vld [vmem:[%s11228_s19 + $0x18] sm:$0xff] }
0x2a16   : > { %v5851_v39 = vld [vmem:[%s11228_s19 + $0x20] sm:$0xff] }
0x2a18   : > { %v5406_v57 = vpop.f32.mrb[52].mxu0 }
0x2a19   : > { %v5410_v59 = vmul.f32 0.35355338, %v5406_v57  ;;  %v9487_v60 = vpop.f32.mrb[53].mxu0  ;;  %v5852_v57 = vld [vmem:[%s11228_s19 + $0x28] sm:$0xff] }
0x2a1b   : > { %v5411_v61 = vsel %vm1120_vm2, %v5410_v59, -inf }
0x2a1c   : > { %5412 = vmax.xlane.f32.xlu1 %v5411_v61 }
0x2a2d   : > { %5574 = vrot.lane.b32.xlu1 %v10715_v36, %s11224_s9 }
0x2a31   : > { %5572 = vrot.lane.b32.xlu1 %v10723_v48, %s11224_s9  ;;  %v4854_v48 = vld [vmem:[%s11223_s8 + $0x10] sm:$0xff] }
0x2a32   : > { %9494 = vmatpush3.msra.mxu0 %v4854_v48 }
0x2a33   : > { %9503 = vmatprep.subr.mxu0 %v10077_v6 }
0x2aa9   : > { %v5413_v62 = vpop.xlane.xlu1 %5412 }
0x2aaa   : > { %v5414_v63 = vsub.f32 %v5410_v59, %v5413_v62  ;;  %v9816_v59 = vpack.c.bf16 %v5852_v57, %v5851_v39 }
0x2aac   : > { %v5415_v0 = vmul.f32 1.442695, %v5414_v63 }
0x2aad   : > { %v5575_v10 = vpop.permute.xlu1 %5574 }
0x2aae   : > { %9984 = vpow2.f32 %v5415_v0  ;;  %v8810_v0 = vld [vmem:[%s11229_s21] ss:$0 sm:$0xff] }
0x2ab1   : > { %v5573_v13 = vpop.permute.xlu1 %5572 }
0x2ab8   : > { %v9985_v1 = vpop.eup %9984 }
0x2ab9   : > { %v5417_v2 = vsel %vm1120_vm2, %v9985_v1, 0.0 }
0x2aba   : > { %5418 = vadd.xlane.f32.xlu0 %v5417_v2  ;;  %v8811_v2 = vld [vmem:[%s11230_s24] ss:$0 sm:$0xff] }
0x2ad0   : > { %5422 = vrot.lane.b32.xlu0 %v10715_v36, %s11225_s13 }
0x2b47   : > { %v5419_v4 = vpop.xlane.xlu0 %5418 }
0x2b48   : > { %9986 = vrcp.f32 %v5419_v4 }
0x2b4b   : > { %v5423_v7 = vpop.permute.xlu0 %5422 }
0x2b4c   : > { %9489 = vmatpush3.msra.mxu1 %v5423_v7 }
0x2b4d   : > { %9498 = vmatprep.subr.mxu1 %v10077_v6 }
0x2b52   : > { %v9987_v9 = vpop.eup %9986 }
0x2b53   : > { %v5421_v12 = vmul.f32 %v9987_v9, %v9985_v1  ;;  %v5853_v9 = vld [vmem:[%s11228_s19 + $0x30] sm:$0xff] }
0x2b55   : > { %9491 = vmatmul.mubr.msk.f32.vlgmr.msra.gmra.mrb[50].mxu1 %vm1120_vm2, %v5421_v12 }
0x2b56   : > { %9499 = vmatpush3.xpose.msk.msra.mxu1 %vm1120_vm2, %v5575_v10  ;;  %9500 = vmatprep.mubr.msk.f32.mxu1 %vm10076_vm0, %v10077_v6  ;;  %v5854_v10 = vld [vmem:[%s11228_s19 + $0x38] sm:$0xff] }
0x2b57   : > { %9508 = vmatprep.subr.mxu1 %v10077_v6  ;;  %v9819_v12 = vpack.c.bf16 %v5854_v10, %v5853_v9  ;;  %v8826_v10 = vld [vmem:[%s11211_s11 + $0x28] sm:$0xff] }
0x2b59   : > { %9501 = vmatmul.mubr.msk.f32.vlgmr.msra.gmra.mrb[52].mxu1 %vm1120_vm2, %v5573_v13  ;;  %v8812_v13 = vld [vmem:[%s11231_s25] ss:$0 sm:$0xff] }
0x2b5a   : > { %9510 = vmatprep.mubr.msk.f32.mxu1 %vm10076_vm0, %v10077_v6  ;;  %9509 = vmatpush3.msra.mxu1 %v4855_v24 }
0x2b5b   : > { %9809 = vmatprep.subr.bf16.mxu1 %v10075_v3 }
0x2c28   : > { %v5494_v14 = vpop.f32.mrb[50].mxu1 }
0x2c29   : > { %v9492_v15 = vpop.f32.mrb[51].mxu1  ;;  %9496 = vmatmul.mubr.msk.f32.vlgmr.msra.gmra.mrb[54].mxu0 %vm1120_vm2, %v5494_v14 }
0x2c2a   : > { %9505 = vmatprep.mubr.msk.f32.mxu0 %vm10076_vm0, %v10077_v6 }
0x2c2c   : > { %v5646_v16 = vpop.f32.mrb[52].mxu1 }
0x2c2d   : > { %v5650_v17 = vmul.f32 0.35355338, %v5646_v16  ;;  %v9502_v18 = vpop.f32.mrb[53].mxu1 }
0x2c2f   : > { %v5651_v53 = vsel %vm1120_vm2, %v5650_v17, -inf }
0x2c30   : > { %5652 = vmax.xlane.f32.xlu0 %v5651_v53 }
0x2c46   : > { %5662 = vrot.lane.b32.xlu0 %v10715_v36, %s11226_s14 }
0x2cbd   : > { %v5653_v19 = vpop.xlane.xlu0 %5652 }
0x2cbe   : > { %v5654_v32 = vsub.f32 %v5650_v17, %v5653_v19  ;;  %v8814_v17 = vld [vmem:[%s11232_s29] ss:$0 sm:$0xff] }
0x2cc0   : > { %v5655_v20 = vmul.f32 1.442695, %v5654_v32 }
0x2cc1   : > { %v5663_v21 = vpop.permute.xlu0 %5662 }
0x2cc2   : > { %9988 = vpow2.f32 %v5655_v20  ;;  %9504 = vmatpush3.msra.mxu0 %v5663_v21 }
0x2cc3   : > { %9803 = vmatprep.subr.bf16.mxu0 %v10075_v3 }
0x2ccc   : > { %v9989_v22 = vpop.eup %9988 }
0x2ccd   : > { %v5657_v23 = vsel %vm1120_vm2, %v9989_v22, 0.0 }
0x2cce   : > { %5658 = vadd.xlane.f32.xlu1 %v5657_v23 }
0x2cfc   : > { %v5567_v25 = vpop.f32.mrb[54].mxu0 }
0x2cfd   : > { %v5571_v11 = vadd.f32 %v5567_v25, %v5329_v56  ;;  %v9497_v26 = vpop.f32.mrb[55].mxu0  ;;  %v9813_v56 = vpack.c.bf16 %v5850_v55, %v5849_v51 }
0x2cfe   : > { %v8819_v26 = vld [vmem:[%s11194_s6 + $0x28] sm:$0xff] }
0x2d5b   : > { %v5659_v36 = vpop.xlane.xlu1 %5658 }
0x2d5c   : > { %9990 = vrcp.f32 %v5659_v36 }
0x2d66   : > { %v9991_v27 = vpop.eup %9990 }
0x2d67   : > { %v5661_v28 = vmul.f32 %v9991_v27, %v9989_v22  ;;  %v8820_v27 = vld [vmem:[%s11194_s6 + $0x30] sm:$0xff] }
0x2d69   : > { %9506 = vmatmul.mubr.msk.f32.vlgmr.msra.gmra.mrb[56].mxu0 %vm1120_vm2, %v5661_v28  ;;  %v8821_v28 = vld [vmem:[%s11194_s6 + $0x38] sm:$0xff] }
0x2d6a   : > { %9521 = vmatprep.mubr.msk.f32.mxu0 %vm10076_vm0, %v10077_v6  ;;  %9805 = vmatpush3.bf16.msra.mxu0 %v9804_v45 }
0x2d6b   : > { %9806 = vmatprep.subr.bf16.mxu0 %v10075_v3 }
0x2e3c   : > { %v5734_v29 = vpop.f32.mrb[56].mxu0 }
0x2e3d   : > { %v9507_v30 = vpop.f32.mrb[57].mxu0  ;;  %9511 = vmatmul.mubr.msk.f32.vlgmr.msra.gmra.mrb[54].mxu1 %vm1120_vm2, %v5734_v29  ;;  %v9825_v29 = vpack.c.bf16 %v8821_v28, %v8820_v27 }
0x2e3e   : > { %9540 = vmatprep.mubr.msk.f32.mxu1 %vm10076_vm0, %v10077_v6  ;;  %9811 = vmatpush3.bf16.msra.mxu1 %v9810_v54 }
0x2e3f   : > { %9812 = vmatprep.subr.bf16.mxu1 %v10075_v3 }
0x2e42   : > { %9814 = vmatpush3.bf16.msra.mxu1 %v9813_v56 }
0x2e43   : > { %9815 = vmatprep.subr.bf16.mxu1 %v10075_v3 }
0x2e46   : > { %9817 = vmatpush3.bf16.msra.mxu1 %v9816_v59 }
0x2e47   : > { %9818 = vmatprep.subr.bf16.mxu1 %v10075_v3 }
0x2e4a   : > { %9820 = vmatpush3.bf16.msra.mxu1 %v9819_v12 }
0x2e4b   : > { %9559 = vmatprep.subr.mxu1 %v10077_v6 }
0x2f10   : > { %v5807_v31 = vpop.f32.mrb[54].mxu1 }
0x2f11   : > { %v5811_v33 = vadd.f32 %v5807_v31, %v5571_v11  ;;  %v9512_v34 = vpop.f32.mrb[55].mxu1  ;;  %v8818_v11 = vld [vmem:[%s11194_s6 + $0x20] sm:$0xff]  ;;  %s11234_s6 = smov 120  }
0x2f12   : > { %v9822_v36 = vpack.c.bf16 %v8819_v26, %v8818_v11 }
0x2f13   : > { %v5812_v35 = vadd.f32 %v5811_v33, %v10708_v5  ;;  %v5844_v5 = vld [vmem:[%s11227_s17 + $0x10] sm:$0xff] }
0x2f14   : > { %v9807_v47 = vpack.c.bf16 %v5845_v46, %v5844_v5 }
0x2f15   : > { %v5815_v38 = vsel %vm1039_vm1, %v5812_v35, 0.0 }
0x2f16   : > { %5816 = vadd.xlane.f32.xlu1 %v5815_v38  ;;  %9808 = vmatpush3.bf16.msra.mxu0 %v9807_v47 }
0x2f17   : > { %9821 = vmatprep.subr.bf16.mxu0 %v10075_v3 }
0x2fa3   : > { %v5817_v37 = vpop.xlane.xlu1 %5816 }
0x2fa4   : > { %v5818_v40 = vmul.f32 0.03125, %v5817_v37  ;;  %v8817_v37 = vld [vmem:[%s10247_s12] ss:$0 sm:$0xff] }
0x2fa6   : > { %v5819_v41 = vsub.f32 %v5812_v35, %v5818_v40  ;;  %v8816_v35 = vld [vmem:[%s11233_s30] ss:$0 sm:$0xff] }
0x2fa8   : > { %v5820_v42 = vmul.f32 %v5819_v41, %v5819_v41 }
0x2faa   : > { %v5821_v43 = vsel %vm1039_vm1, %v5820_v42, 0.0  ;;  %v8823_v42 = vld [vmem:[%s11208_s10 + $0x1] ss:$0 sm:$0xff]  ;;  %s11235_s10 = smov 56  }
0x2fab   : > { %5822 = vadd.xlane.f32.xlu1 %v5821_v43 }
0x3038   : > { %v5823_v60 = vpop.xlane.xlu1 %5822 }
0x3039   : > { %v5824_v61 = vmul.f32 0.03125, %v5823_v60 }
0x303b   : > { %v5825_v62 = vadd.f32 1e-05, %v5824_v61 }
0x303d   : > { %9992 = vrsqrt.f32 %v5825_v62 }
0x3047   : > { %v9993_v63 = vpop.eup %9992 }
0x3048   : > { %v5827_v1 = vmul.f32 %v9993_v63, %v5819_v41 }
0x304a   : > { %v5834_v4 = vmul.f32 %v8810_v0, %v5827_v1 }
0x304c   : > { %v5841_v7 = vadd.f32 %v8811_v2, %v5834_v4 }
0x304e   : > { %9522 = vmatmul.mubr.msk.f32.vlgmr.msra.gmra.mrb[58].mxu0 %vm1039_vm1, %v5841_v7 }
0x304f   : > { %9551 = vmatprep.mubr.msk.f32.mxu0 %vm10076_vm0, %v10077_v6  ;;  %9823 = vmatpush3.bf16.msra.mxu0 %v9822_v36 }
0x3050   : > { %9824 = vmatprep.subr.bf16.mxu0 %v10075_v3 }
0x3053   : > { %9826 = vmatpush3.bf16.msra.mxu0 %v9825_v29 }
0x3054   : > { %9554 = vmatprep.subr.mxu0 %v10077_v6 }
0x3121   : > { %v5931_v48 = vpop.f32.mrb[58].mxu0 }
0x3122   : > { %v5932_v14 = vadd.f32 %v8812_v13, %v5931_v48  ;;  %v9523_v15 = vpop.f32.mrb[59].mxu0 }
0x3124   : > { %v5935_v16 = vmax.f32 %v5932_v14, 0.0 }
0x3126   : > { %9541 = vmatmul.mubr.msk.f32.vlgmr.msra.gmra.mrb[56].mxu1 %vm2206_vm3, %v5935_v16 }
0x3127   : > { %9561 = vmatprep.mubr.msk.f32.mxu1 %vm10076_vm0, %v10077_v6 }
0x31f9   : > { %v6011_v18 = vpop.f32.mrb[56].mxu1 }
0x31fa   : > { %v6012_v53 = vadd.f32 %v8814_v17, %v6011_v18  ;;  %v9542_v19 = vpop.f32.mrb[57].mxu1 }
0x31fc   : > { %v6015_v32 = vadd.f32 %v6012_v53, %v5841_v7  ;;  %v8825_v53 = vld [vmem:[%s11211_s11 + $0x20] sm:$0xff] }
0x31fe   : > { %v6018_v20 = vsel %vm1039_vm1, %v6015_v32, 0.0 }
0x31ff   : > { %6019 = vadd.xlane.f32.xlu1 %v6018_v20 }
0x328c   : > { %v6020_v21 = vpop.xlane.xlu1 %6019 }
0x328d   : > { %v6021_v22 = vmul.f32 0.03125, %v6020_v21 }
0x328f   : > { %v6022_v23 = vsub.f32 %v6015_v32, %v6021_v22 }
0x3291   : > { %v6023_v24 = vmul.f32 %v6022_v23, %v6022_v23 }
0x3293   : > { %v6024_v25 = vsel %vm1039_vm1, %v6023_v24, 0.0 }
0x3294   : > { %6025 = vadd.xlane.f32.xlu1 %v6024_v25 }
0x3321   : > { %v6026_v30 = vpop.xlane.xlu1 %6025 }
0x3322   : > { %v6027_v31 = vmul.f32 0.03125, %v6026_v30 }
0x3324   : > { %v6028_v33 = vadd.f32 1e-05, %v6027_v31 }
0x3326   : > { %9994 = vrsqrt.f32 %v6028_v33 }
0x3330   : > { %v9995_v34 = vpop.eup %9994 }
0x3331   : > { %v6030_v38 = vmul.f32 %v9995_v34, %v6022_v23 }
0x3333   : > { %v6037_v40 = vmul.f32 %v8816_v35, %v6030_v38 }
0x3335   : > { %v10847_v41 = vadd.f32 %v8817_v37, %v6037_v40 }
0x3337   : > { %9552 = vmatmul.mubr.msk.f32.vlgmr.msra.gmra.mrb[60].mxu0 %vm1039_vm1, %v10847_v41 }
0x3338   : > { %9556 = vmatprep.mubr.msk.f32.mxu0 %vm10076_vm0, %v10077_v6 }
0x340a   : > { %v6127_v43 = vpop.f32.mrb[60].mxu0 }
0x340b   : > { %v10854_v8 = vadd.f32 %v8823_v42, %v6127_v43  ;;  %v9553_v44 = vpop.f32.mrb[61].mxu0 }
0x340d   : > { %6304 = vrot.lane.b32.xlu0 %v10854_v8, %s11220_s15  ;;  %6137 = vrot.lane.b32.xlu1 %v10854_v8, %s11221_s3 }
0x3411   : > { %6302 = vrot.lane.b32.xlu0 %v10854_v8, %s11234_s6 }
0x347f   : > { %v6138_v45 = vpop.permute.xlu1 %6137  ;;  %v6305_v5 = vpop.permute.xlu0 %6304 }
0x3480   : > { %9555 = vmatpush3.xpose.msk.msra.mxu0 %vm1120_vm2, %v6138_v45 }
0x3481   : > { %9564 = vmatprep.subr.mxu0 %v10077_v6 }
0x3483   : > { %9557 = vmatmul.mubr.msk.f32.vlgmr.msra.gmra.mrb[62].mxu0 %vm1120_vm2, %v10854_v8  ;;  %v6303_v46 = vpop.permute.xlu0 %6302 }
0x3484   : > { %9565 = vmatpush3.xpose.msk.msra.mxu0 %vm1120_vm2, %v6305_v5  ;;  %9566 = vmatprep.mubr.msk.f32.mxu0 %vm10076_vm0, %v10077_v6 }
0x3485   : > { %9574 = vmatprep.subr.mxu0 %v10077_v6 }
0x3487   : > { %9567 = vmatmul.mubr.msk.f32.vlgmr.msra.gmra.mrb[64].mxu0 %vm1120_vm2, %v6303_v46  ;;  %v8827_v46 = vld [vmem:[%s11211_s11 + $0x30] sm:$0xff] }
0x3488   : > { %9576 = vmatprep.mubr.msk.f32.mxu0 %vm10076_vm0, %v10077_v6  ;;  %9575 = vmatpush3.msra.mxu0 %v8826_v10 }
0x3489   : > { %9584 = vmatprep.subr.mxu0 %v10077_v6 }
0x3556   : > { %v6209_v47 = vpop.f32.mrb[62].mxu0 }
0x3557   : > { %v6213_v49 = vmul.f32 0.35355338, %v6209_v47  ;;  %v9558_v50 = vpop.f32.mrb[63].mxu0 }
0x3559   : > { %v6214_v51 = vsel %vm10593_vm4, %v6213_v49, -1e+30 }
0x355a   : > { %v6376_v54 = vpop.f32.mrb[64].mxu0  ;;  %v6215_v55 = vsel %vm1120_vm2, %v6214_v51, -inf }
0x355b   : > { %v6380_v56 = vmul.f32 0.35355338, %v6376_v54  ;;  %6216 = vmax.xlane.f32.xlu0 %v6215_v55  ;;  %v9568_v39 = vpop.f32.mrb[65].mxu0 }
0x355d   : > { %v6381_v57 = vsel %vm10593_vm4, %v6380_v56, -1e+30 }
0x355e   : > { %v6382_v59 = vsel %vm1120_vm2, %v6381_v57, -inf }
0x355f   : > { %6383 = vmax.xlane.f32.xlu1 %v6382_v59 }
0x3570   : > { %6393 = vrot.lane.b32.xlu1 %v10854_v8, %s11235_s10  ;;  %s11236_s10 = smov 64  }
0x3574   : > { %6615 = vrot.lane.b32.xlu1 %v10854_v8, %s11222_s5 }
0x35e8   : > { %v6217_v60 = vpop.xlane.xlu0 %6216 }
0x35e9   : > { %v6218_v61 = vsub.f32 %v6214_v51, %v6217_v60 }
0x35eb   : > { %v6219_v62 = vmul.f32 1.442695, %v6218_v61 }
0x35ec   : > { %v6384_v63 = vpop.xlane.xlu1 %6383 }
0x35ed   : > { %9996 = vpow2.f32 %v6219_v62  ;;  %v6385_v0 = vsub.f32 %v6381_v57, %v6384_v63  ;;  %v8828_v62 = vld [vmem:[%s11211_s11 + $0x38] sm:$0xff] }
0x35ef   : > { %v6386_v1 = vmul.f32 1.442695, %v6385_v0 }
0x35f0   : > { %v6394_v16 = vpop.permute.xlu1 %6393 }
0x35f1   : > { %9998 = vpow2.f32 %v6386_v1 }
0x35f4   : > { %v6616_v23 = vpop.permute.xlu1 %6615 }
0x35f7   : > { %v9997_v2 = vpop.eup %9996 }
0x35f8   : > { %v6221_v4 = vsel %vm1120_vm2, %v9997_v2, 0.0 }
0x35f9   : > { %6222 = vadd.xlane.f32.xlu0 %v6221_v4 }
0x35fb   : > { %v9999_v7 = vpop.eup %9998 }
0x35fc   : > { %v6388_v9 = vsel %vm1120_vm2, %v9999_v7, 0.0 }
0x35fd   : > { %6389 = vadd.xlane.f32.xlu0 %v6388_v9  ;;  %v8857_v9 = vld [vmem:[%s11214_s1 + $0x28] sm:$0xff] }
0x3613   : > { %6226 = vrot.lane.b32.xlu0 %v10854_v8, %s11236_s10 }
0x3617   : > { %6617 = vrot.lane.b32.xlu0 %v10854_v8, %s11225_s13 }
0x3686   : > { %v6223_v12 = vpop.xlane.xlu0 %6222 }
0x3687   : > { %10000 = vrcp.f32 %v6223_v12  ;;  %v8858_v12 = vld [vmem:[%s11214_s1 + $0x30] sm:$0xff] }
0x368a   : > { %v6390_v13 = vpop.xlane.xlu0 %6389 }
0x368b   : > { %10002 = vrcp.f32 %v6390_v13  ;;  %v8859_v13 = vld [vmem:[%s11214_s1 + $0x38] sm:$0xff] }
0x368e   : > { %v6227_v48 = vpop.permute.xlu0 %6226 }
0x368f   : > { %9560 = vmatpush3.msra.mxu1 %v6227_v48 }
0x3690   : > { %9569 = vmatprep.subr.mxu1 %v10077_v6 }
0x3691   : > { %v10001_v14 = vpop.eup %10000 }
0x3692   : > { %v6225_v15 = vmul.f32 %v10001_v14, %v9997_v2  ;;  %v6618_v21 = vpop.permute.xlu0 %6617 }
0x3694   : > { %9562 = vmatmul.mubr.msk.f32.vlgmr.msra.gmra.mrb[58].mxu1 %vm1120_vm2, %v6225_v15  ;;  %v9837_v15 = vpack.c.bf16 %v8859_v13, %v8858_v12  ;;  %v8864_v12 = vld [vmem:[%s11223_s8 + $0x28] sm:$0xff] }
0x3695   : > { %v10003_v17 = vpop.eup %10002  ;;  %9570 = vmatpush3.msra.mxu1 %v6394_v16  ;;  %9571 = vmatprep.mubr.msk.f32.mxu1 %vm10076_vm0, %v10077_v6 }
0x3696   : > { %v6392_v18 = vmul.f32 %v10003_v17, %v9999_v7  ;;  %9579 = vmatprep.subr.mxu1 %v10077_v6 }
0x3698   : > { %9572 = vmatmul.mubr.msk.f32.vlgmr.msra.gmra.mrb[60].mxu1 %vm1120_vm2, %v6392_v18 }
0x3699   : > { %9581 = vmatprep.mubr.msk.f32.mxu1 %vm10076_vm0, %v10077_v6  ;;  %9580 = vmatpush3.msra.mxu1 %v8825_v53 }
0x369a   : > { %9589 = vmatprep.subr.mxu1 %v10077_v6 }
0x3767   : > { %v6298_v19 = vpop.f32.mrb[58].mxu1 }
0x3768   : > { %v9563_v32 = vpop.f32.mrb[59].mxu1  ;;  %9582 = vmatmul.mubr.msk.f32.vlgmr.msra.gmra.mrb[62].mxu1 %vm1120_vm2, %v6298_v19 }
0x3769   : > { %9591 = vmatprep.mubr.msk.f32.mxu1 %vm10076_vm0, %v10077_v6 }
0x376b   : > { %v6465_v20 = vpop.f32.mrb[60].mxu1 }
0x376c   : > { %v9573_v22 = vpop.f32.mrb[61].mxu1  ;;  %9577 = vmatmul.mubr.msk.f32.vlgmr.msra.gmra.mrb[66].mxu0 %vm1120_vm2, %v6465_v20 }
0x376d   : > { %9585 = vmatpush3.xpose.msk.msra.mxu0 %vm1120_vm2, %v6618_v21  ;;  %9586 = vmatprep.mubr.msk.f32.mxu0 %vm10076_vm0, %v10077_v6 }
0x376e   : > { %9594 = vmatprep.subr.mxu0 %v10077_v6 }
0x3770   : > { %9587 = vmatmul.mubr.msk.f32.vlgmr.msra.gmra.mrb[68].mxu0 %vm1120_vm2, %v6616_v23 }
0x3771   : > { %9596 = vmatprep.mubr.msk.f32.mxu0 %vm10076_vm0, %v10077_v6  ;;  %9595 = vmatpush3.msra.mxu0 %v8827_v46 }
0x3772   : > { %9604 = vmatprep.subr.mxu0 %v10077_v6 }
0x383b   : > { %v6611_v24 = vpop.f32.mrb[62].mxu1 }
0x383c   : > { %v9583_v25 = vpop.f32.mrb[63].mxu1 }
0x383d   : > { %v8861_v25 = vld [vmem:[%s11218_s16 + $0x1] ss:$0 sm:$0xff] }
0x383f   : > { %v6538_v11 = vpop.f32.mrb[66].mxu0 }
0x3840   : > { %v6612_v26 = vadd.f32 %v6611_v24, %v6538_v11  ;;  %v9578_v36 = vpop.f32.mrb[67].mxu0 }
0x3843   : > { %v6689_v27 = vpop.f32.mrb[68].mxu0 }
0x3844   : > { %v6693_v28 = vmul.f32 0.35355338, %v6689_v27  ;;  %v9588_v29 = vpop.f32.mrb[69].mxu0  ;;  %v8851_v27 = vld [vmem:[%s11215_s26 + $0x30] sm:$0xff] }
0x3846   : > { %v6694_v30 = vsel %vm10593_vm4, %v6693_v28, -1e+30  ;;  %v8852_v28 = vld [vmem:[%s11215_s26 + $0x38] sm:$0xff] }
0x3847   : > { %v6695_v31 = vsel %vm1120_vm2, %v6694_v30, -inf  ;;  %v9831_v29 = vpack.c.bf16 %v8852_v28, %v8851_v27 }
0x3848   : > { %6696 = vmax.xlane.f32.xlu0 %v6695_v31 }
0x385e   : > { %6706 = vrot.lane.b32.xlu0 %v10854_v8, %s11212_s23 }
0x3862   : > { %6856 = vrot.lane.b32.xlu0 %v10854_v8, %s11224_s9 }
0x38d5   : > { %v6697_v33 = vpop.xlane.xlu0 %6696 }
0x38d6   : > { %v6698_v34 = vsub.f32 %v6694_v30, %v6697_v33 }
0x38d8   : > { %v6699_v35 = vmul.f32 1.442695, %v6698_v34 }
0x38d9   : > { %v6707_v38 = vpop.permute.xlu0 %6706 }
0x38da   : > { %10004 = vpow2.f32 %v6699_v35  ;;  %9590 = vmatpush3.msra.mxu1 %v6707_v38  ;;  %v8847_v35 = vld [vmem:[%s11216_s2 + $0x1] ss:$0 sm:$0xff] }
0x38db   : > { %9599 = vmatprep.subr.mxu1 %v10077_v6 }
0x38dd   : > { %v6857_v5 = vpop.permute.xlu0 %6856 }
0x38e4   : > { %v10005_v37 = vpop.eup %10004 }
0x38e5   : > { %v6701_v40 = vsel %vm1120_vm2, %v10005_v37, 0.0 }
0x38e6   : > { %6702 = vadd.xlane.f32.xlu1 %v6701_v40 }
0x38f7   : > { %6858 = vrot.lane.b32.xlu1 %v10854_v8, %s11226_s14 }
0x3973   : > { %v6703_v42 = vpop.xlane.xlu1 %6702 }
0x3974   : > { %10006 = vrcp.f32 %v6703_v42 }
0x3977   : > { %v6859_v45 = vpop.permute.xlu1 %6858 }
0x397e   : > { %v10007_v43 = vpop.eup %10006 }
0x397f   : > { %v6705_v44 = vmul.f32 %v10007_v43, %v10005_v37  ;;  %v8848_v37 = vld [vmem:[%s11217_s28 + $0x1] ss:$0 sm:$0xff] }
0x3980   : > { %v8854_v43 = vld [vmem:[%s11219_s18 + $0x1] ss:$0 sm:$0xff] }
0x3981   : > { %9592 = vmatmul.mubr.msk.f32.vlgmr.msra.gmra.mrb[64].mxu1 %vm1120_vm2, %v6705_v44 }
0x3982   : > { %9600 = vmatpush3.xpose.msk.msra.mxu1 %vm1120_vm2, %v6859_v45  ;;  %9601 = vmatprep.mubr.msk.f32.mxu1 %vm10076_vm0, %v10077_v6 }
0x3983   : > { %9609 = vmatprep.subr.mxu1 %v10077_v6 }
0x3985   : > { %9602 = vmatmul.mubr.msk.f32.vlgmr.msra.gmra.mrb[66].mxu1 %vm1120_vm2, %v6857_v5 }
0x3986   : > { %9611 = vmatprep.mubr.msk.f32.mxu1 %vm10076_vm0, %v10077_v6  ;;  %9610 = vmatpush3.msra.mxu1 %v8828_v62 }
0x3987   : > { %9833 = vmatprep.subr.bf16.mxu1 %v10075_v3 }
0x3a54   : > { %v6778_v47 = vpop.f32.mrb[64].mxu1 }
0x3a55   : > { %v9593_v49 = vpop.f32.mrb[65].mxu1  ;;  %9597 = vmatmul.mubr.msk.f32.vlgmr.msra.gmra.mrb[70].mxu0 %vm1120_vm2, %v6778_v47 }
0x3a56   : > { %9606 = vmatprep.mubr.msk.f32.mxu0 %vm10076_vm0, %v10077_v6 }
0x3a58   : > { %v6930_v50 = vpop.f32.mrb[66].mxu1 }
0x3a59   : > { %v6934_v51 = vmul.f32 0.35355338, %v6930_v50  ;;  %v9603_v54 = vpop.f32.mrb[67].mxu1 }
0x3a5b   : > { %v6935_v55 = vsel %vm10593_vm4, %v6934_v51, -1e+30 }
0x3a5c   : > { %v6936_v56 = vsel %vm1120_vm2, %v6935_v55, -inf }
0x3a5d   : > { %6937 = vmax.xlane.f32.xlu1 %v6936_v56 }
0x3aea   : > { %v6938_v39 = vpop.xlane.xlu1 %6937 }
0x3aeb   : > { %v6939_v57 = vsub.f32 %v6935_v55, %v6938_v39 }
0x3aed   : > { %v6940_v59 = vmul.f32 1.442695, %v6939_v57 }
0x3aef   : > { %10008 = vpow2.f32 %v6940_v59 }
0x3af9   : > { %v10009_v60 = vpop.eup %10008 }
0x3afa   : > { %v6942_v61 = vsel %vm1120_vm2, %v10009_v60, 0.0 }
0x3afb   : > { %6943 = vadd.xlane.f32.xlu0 %v6942_v61 }
0x3b11   : > { %6947 = vrot.lane.b32.xlu0 %v10854_v8, %s11213_s22  ;;  %v8856_v8 = vld [vmem:[%s11214_s1 + $0x20] sm:$0xff] }
0x3b12   : > { %v9834_v10 = vpack.c.bf16 %v8857_v9, %v8856_v8 }
0x3b28   : > { %v6851_v58 = vpop.f32.mrb[70].mxu0 }
0x3b29   : > { %v6855_v63 = vadd.f32 %v6851_v58, %v6612_v26  ;;  %v9598_v0 = vpop.f32.mrb[71].mxu0  ;;  %v8850_v26 = vld [vmem:[%s11215_s26 + $0x28] sm:$0xff] }
0x3b88   : > { %v6944_v1 = vpop.xlane.xlu0 %6943 }
0x3b89   : > { %10010 = vrcp.f32 %v6944_v1 }
0x3b8c   : > { %v6948_v2 = vpop.permute.xlu0 %6947 }
0x3b8d   : > { %9605 = vmatpush3.msra.mxu0 %v6948_v2 }
0x3b8e   : > { %9827 = vmatprep.subr.bf16.mxu0 %v10075_v3 }
0x3b93   : > { %v10011_v4 = vpop.eup %10010 }
0x3b94   : > { %v6946_v7 = vmul.f32 %v10011_v4, %v10009_v60 }
0x3b96   : > { %9607 = vmatmul.mubr.msk.f32.vlgmr.msra.gmra.mrb[72].mxu0 %vm1120_vm2, %v6946_v7 }
0x3b97   : > { %9622 = vmatprep.mubr.msk.f32.mxu0 %vm10076_vm0, %v10077_v6 }
0x3c69   : > { %v7019_v48 = vpop.f32.mrb[72].mxu0 }
0x3c6a   : > { %v9608_v14 = vpop.f32.mrb[73].mxu0  ;;  %9612 = vmatmul.mubr.msk.f32.vlgmr.msra.gmra.mrb[68].mxu1 %vm1120_vm2, %v7019_v48 }
0x3c6b   : > { %9835 = vmatpush3.bf16.msra.mxu1 %v9834_v10  ;;  %9633 = vmatprep.mubr.msk.f32.mxu1 %vm10076_vm0, %v10077_v6 }
0x3c6c   : > { %9836 = vmatprep.subr.bf16.mxu1 %v10075_v3 }
0x3c6f   : > { %9838 = vmatpush3.bf16.msra.mxu1 %v9837_v15 }
0x3c70   : > { %9641 = vmatprep.subr.mxu1 %v10077_v6 }
0x3c72   : > { %9634 = vmatmul.mubr.msk.f32.vlgmr.msra.gmra.mrb[70].mxu1 %vm1039_vm1, %v10694_v52 }
0x3c73   : > { %9643 = vmatprep.mubr.msk.f32.mxu1 %vm10076_vm0, %v10077_v6 }
0x3d3d   : > { %v7092_v16 = vpop.f32.mrb[68].mxu1 }
0x3d3e   : > { %v7096_v17 = vadd.f32 %v7092_v16, %v6855_v63  ;;  %v9613_v18 = vpop.f32.mrb[69].mxu1  ;;  %v8863_v16 = vld [vmem:[%s11223_s8 + $0x20] sm:$0xff] }
0x3d40   : > { %v7097_v53 = vadd.f32 %v7096_v17, %v10847_v41  ;;  %v8849_v41 = vld [vmem:[%s11215_s26 + $0x20] sm:$0xff] }
0x3d41   : > { %v9828_v36 = vpack.c.bf16 %v8850_v26, %v8849_v41 }
0x3d42   : > { %v7102_v19 = vsel %vm1039_vm1, %v7097_v53, 0.0 }
0x3d43   : > { %7103 = vadd.xlane.f32.xlu1 %v7102_v19  ;;  %9829 = vmatpush3.bf16.msra.mxu0 %v9828_v36 }
0x3d44   : > { %9830 = vmatprep.subr.bf16.mxu0 %v10075_v3 }
0x3d45   : > { %v7294_v32 = vpop.f32.mrb[70].mxu1 }
0x3d46   : > { %v9635_v20 = vpop.f32.mrb[71].mxu1  ;;  %v10965_v11 = vadd.f32 %v8861_v25, %v7294_v32 }
0x3d47   : > { %9832 = vmatpush3.bf16.msra.mxu0 %v9831_v29 }
0x3d48   : > { %9636 = vmatprep.subr.mxu0 %v10077_v6 }
0x3dd0   : > { %v7104_v21 = vpop.xlane.xlu1 %7103 }
0x3dd1   : > { %v7105_v52 = vmul.f32 0.03125, %v7104_v21 }
0x3dd3   : > { %v7106_v22 = vsub.f32 %v7097_v53, %v7105_v52 }
0x3dd5   : > { %v7107_v23 = vmul.f32 %v7106_v22, %v7106_v22 }
0x3dd7   : > { %v7108_v24 = vsel %vm1039_vm1, %v7107_v23, 0.0 }
0x3dd8   : > { %7109 = vadd.xlane.f32.xlu1 %v7108_v24 }
0x3de9   : > { %7469 = vrot.lane.b32.xlu1 %v10965_v11, %s11234_s6 }
0x3e65   : > { %v7110_v30 = vpop.xlane.xlu1 %7109 }
0x3e66   : > { %v7111_v31 = vmul.f32 0.03125, %v7110_v30 }
0x3e68   : > { %v7112_v33 = vadd.f32 1e-05, %v7111_v31 }
0x3e69   : > { %v7470_v46 = vpop.permute.xlu1 %7469 }
0x3e6a   : > { %10012 = vrsqrt.f32 %v7112_v33 }
0x3e74   : > { %v10013_v34 = vpop.eup %10012 }
0x3e75   : > { %v7114_v38 = vmul.f32 %v10013_v34, %v7106_v22 }
0x3e77   : > { %v7121_v40 = vmul.f32 %v8847_v35, %v7114_v38 }
0x3e79   : > { %v10977_v42 = vadd.f32 %v8848_v37, %v7121_v40 }
0x3e7b   : > { %9623 = vmatmul.mubr.msk.f32.vlgmr.msra.gmra.mrb[74].mxu0 %vm1039_vm1, %v10977_v42 }
0x3e7c   : > { %9637 = vmatpush3.xpose.msk.msra.mxu0 %vm1120_vm2, %v10965_v11  ;;  %9638 = vmatprep.mubr.msk.f32.mxu0 %vm10076_vm0, %v10077_v6 }
0x3e7d   : > { %9646 = vmatprep.subr.mxu0 %v10077_v6 }
0x3f4e   : > { %v7211_v44 = vpop.f32.mrb[74].mxu0 }
0x3f4f   : > { %v10987_v45 = vadd.f32 %v8854_v43, %v7211_v44  ;;  %v9624_v5 = vpop.f32.mrb[75].mxu0  ;;  %v8865_v43 = vld [vmem:[%s11223_s8 + $0x30] sm:$0xff] }
0x3f51   : > { %7467 = vrot.lane.b32.xlu0 %v10987_v45, %s11234_s6  ;;  %9639 = vmatmul.mubr.msk.f32.vlgmr.msra.gmra.mrb[76].mxu0 %vm1120_vm2, %v10987_v45 }
0x3f52   : > { %9647 = vmatpush3.xpose.msk.msra.mxu0 %vm1120_vm2, %v7470_v46  ;;  %9648 = vmatprep.mubr.msk.f32.mxu0 %vm10076_vm0, %v10077_v6 }
0x3f53   : > { %9656 = vmatprep.subr.mxu0 %v10077_v6 }
0x3fc3   : > { %v7468_v47 = vpop.permute.xlu0 %7467 }
0x3fc4   : > { %9649 = vmatmul.mubr.msk.f32.vlgmr.msra.gmra.mrb[78].mxu0 %vm1120_vm2, %v7468_v47 }
0x3fc5   : > { %9658 = vmatprep.mubr.msk.f32.mxu0 %vm10076_vm0, %v10077_v6  ;;  %9657 = vmatpush3.msra.mxu0 %v8864_v12 }
0x3fc6   : > { %9666 = vmatprep.subr.mxu0 %v10077_v6 }
0x4024   : > { %v7375_v49 = vpop.f32.mrb[76].mxu0 }
0x4025   : > { %v7379_v50 = vmul.f32 0.35355338, %v7375_v49  ;;  %v9640_v51 = vpop.f32.mrb[77].mxu0 }
0x4027   : > { %v7380_v54 = vsel %vm1120_vm2, %v7379_v50, -inf }
0x4028   : > { %7381 = vmax.xlane.f32.xlu0 %v7380_v54 }
0x4097   : > { %v7541_v55 = vpop.f32.mrb[78].mxu0 }
0x4098   : > { %v7545_v56 = vmul.f32 0.35355338, %v7541_v55  ;;  %v9650_v39 = vpop.f32.mrb[79].mxu0 }
0x4099   : > { %v8866_v39 = vld [vmem:[%s11223_s8 + $0x38] sm:$0xff] }
0x409a   : > { %v7546_v57 = vsel %vm1120_vm2, %v7545_v56, -inf }
0x409b   : > { %7547 = vmax.xlane.f32.xlu1 %v7546_v57 }
0x40ac   : > { %7391 = vrot.lane.b32.xlu1 %v10965_v11, %s11221_s3 }
0x40b0   : > { %7781 = vrot.lane.b32.xlu1 %v10965_v11, %s11222_s5 }
0x40b4   : > { %7779 = vrot.lane.b32.xlu1 %v10987_v45, %s11222_s5  ;;  %s1026_s5 = scalar_lea.vmem %s10262_s4, %s10283_s0 }
0x40b5   : > { %v7382_v59 = vpop.xlane.xlu0 %7381 }
0x40b6   : > { %v7383_v60 = vsub.f32 %v7379_v50, %v7382_v59 }
0x40b8   : > { %v7384_v61 = vmul.f32 1.442695, %v7383_v60 }
0x40ba   : > { %10014 = vpow2.f32 %v7384_v61 }
0x40c4   : > { %v10015_v62 = vpop.eup %10014 }
0x40c5   : > { %v7386_v58 = vsel %vm1120_vm2, %v10015_v62, 0.0 }
0x40c6   : > { %7387 = vadd.xlane.f32.xlu0 %v7386_v58 }
0x4128   : > { %v7548_v63 = vpop.xlane.xlu1 %7547 }
0x4129   : > { %v7549_v0 = vsub.f32 %v7545_v56, %v7548_v63 }
0x412b   : > { %v7550_v1 = vmul.f32 1.442695, %v7549_v0 }
0x412c   : > { %v7392_v2 = vpop.permute.xlu1 %7391 }
0x412d   : > { %10016 = vpow2.f32 %v7550_v1  ;;  %9642 = vmatpush3.msra.mxu1 %v7392_v2 }
0x412e   : > { %9651 = vmatprep.subr.mxu1 %v10077_v6 }
0x4130   : > { %v7782_v53 = vpop.permute.xlu1 %7781 }
0x4134   : > { %v7780_v20 = vpop.permute.xlu1 %7779 }
0x4137   : > { %v10017_v4 = vpop.eup %10016 }
0x4138   : > { %v7552_v7 = vsel %vm1120_vm2, %v10017_v4, 0.0 }
0x4139   : > { %7553 = vadd.xlane.f32.xlu0 %v7552_v7 }
0x414f   : > { %7557 = vrot.lane.b32.xlu0 %v10965_v11, %s11220_s15 }
0x4153   : > { %v7388_v8 = vpop.xlane.xlu0 %7387 }
0x4154   : > { %10018 = vrcp.f32 %v7388_v8 }
0x415e   : > { %v10019_v9 = vpop.eup %10018 }
0x415f   : > { %v7390_v10 = vmul.f32 %v10019_v9, %v10015_v62 }
0x4161   : > { %9644 = vmatmul.mubr.msk.f32.vlgmr.msra.gmra.mrb[72].mxu1 %vm1120_vm2, %v7390_v10 }
0x4162   : > { %9653 = vmatprep.mubr.msk.f32.mxu1 %vm10076_vm0, %v10077_v6 }
0x41c6   : > { %v7554_v13 = vpop.xlane.xlu0 %7553 }
0x41c7   : > { %10020 = vrcp.f32 %v7554_v13 }
0x41ca   : > { %v7558_v48 = vpop.permute.xlu0 %7557 }
0x41cb   : > { %9652 = vmatpush3.msra.mxu1 %v7558_v48 }
0x41cc   : > { %9661 = vmatprep.subr.mxu1 %v10077_v6 }
0x41d1   : > { %v10021_v14 = vpop.eup %10020 }
0x41d2   : > { %v7556_v15 = vmul.f32 %v10021_v14, %v10017_v4  ;;  %v8887_v14 = vld [vmem:[%s11227_s17 + $0x20] sm:$0xff] }
0x41d4   : > { %9654 = vmatmul.mubr.msk.f32.vlgmr.msra.gmra.mrb[74].mxu1 %vm1120_vm2, %v7556_v15  ;;  %v8888_v15 = vld [vmem:[%s11227_s17 + $0x28] sm:$0xff] }
0x41d5   : > { %9662 = vmatpush3.msra.mxu1 %v8863_v16  ;;  %9663 = vmatprep.mubr.msk.f32.mxu1 %vm10076_vm0, %v10077_v6  ;;  %v9840_v16 = vpack.c.bf16 %v8888_v15, %v8887_v14 }
0x41d6   : > { %9671 = vmatprep.subr.mxu1 %v10077_v6 }
0x4234   : > { %v7463_v17 = vpop.f32.mrb[72].mxu1 }
0x4235   : > { %v9645_v18 = vpop.f32.mrb[73].mxu1  ;;  %9664 = vmatmul.mubr.msk.f32.vlgmr.msra.gmra.mrb[76].mxu1 %vm1120_vm2, %v7463_v17  ;;  %v8890_v17 = vld [vmem:[%s11227_s17 + $0x38] sm:$0xff] }
0x4236   : > { %9673 = vmatprep.mubr.msk.f32.mxu1 %vm10076_vm0, %v10077_v6 }
0x42a7   : > { %v7629_v19 = vpop.f32.mrb[74].mxu1 }
0x42a8   : > { %v9655_v32 = vpop.f32.mrb[75].mxu1  ;;  %9659 = vmatmul.mubr.msk.f32.vlgmr.msra.gmra.mrb[80].mxu0 %vm1120_vm2, %v7629_v19  ;;  %v8893_v19 = vld [vmem:[%s11228_s19 + $0x48] sm:$0xff] }
0x42a9   : > { %9667 = vmatpush3.xpose.msk.msra.mxu0 %vm1120_vm2, %v7782_v53  ;;  %9668 = vmatprep.mubr.msk.f32.mxu0 %vm10076_vm0, %v10077_v6  ;;  %v8892_v53 = vld [vmem:[%s11228_s19 + $0x40] sm:$0xff]  ;;  %v8894_v32 = vld [vmem:[%s11228_s19 + $0x50] sm:$0xff] }
0x42aa   : > { %9676 = vmatprep.subr.mxu0 %v10077_v6 }
0x42ac   : > { %9669 = vmatmul.mubr.msk.f32.vlgmr.msra.gmra.mrb[82].mxu0 %vm1120_vm2, %v7780_v20  ;;  %v9846_v20 = vpack.c.bf16 %v8893_v19, %v8892_v53 }
0x42ad   : > { %9678 = vmatprep.mubr.msk.f32.mxu0 %vm10076_vm0, %v10077_v6  ;;  %9677 = vmatpush3.msra.mxu0 %v8865_v43 }
0x42ae   : > { %9686 = vmatprep.subr.mxu0 %v10077_v6 }
0x4308   : > { %v7775_v21 = vpop.f32.mrb[76].mxu1 }
0x4309   : > { %v9665_v52 = vpop.f32.mrb[77].mxu1 }
0x437b   : > { %v7702_v22 = vpop.f32.mrb[80].mxu0 }
0x437c   : > { %v7776_v23 = vadd.f32 %v7775_v21, %v7702_v22  ;;  %v9660_v24 = vpop.f32.mrb[81].mxu0  ;;  %v8895_v21 = vld [vmem:[%s11228_s19 + $0x58] sm:$0xff]  ;;  %v8896_v22 = vld [vmem:[%s11228_s19 + $0x60] sm:$0xff] }
0x437d   : > { %v9849_v52 = vpack.c.bf16 %v8895_v21, %v8894_v32 }
0x437f   : > { %v7853_v25 = vpop.f32.mrb[82].mxu0 }
0x4380   : > { %v7857_v41 = vmul.f32 0.35355338, %v7853_v25  ;;  %v9670_v26 = vpop.f32.mrb[83].mxu0 }
0x4382   : > { %v7858_v36 = vsel %vm1120_vm2, %v7857_v41, -inf }
0x4383   : > { %7859 = vmax.xlane.f32.xlu0 %v7858_v36 }
0x4399   : > { %7869 = vrot.lane.b32.xlu0 %v10965_v11, %s11225_s13 }
0x439d   : > { %8019 = vrot.lane.b32.xlu0 %v10987_v45, %s11224_s9 }
0x4410   : > { %v7860_v27 = vpop.xlane.xlu0 %7859 }
0x4411   : > { %v7861_v28 = vsub.f32 %v7857_v41, %v7860_v27  ;;  %v8885_v27 = vld [vmem:[%s11229_s21 + $0x1] ss:$0 sm:$0xff] }
0x4413   : > { %v7862_v29 = vmul.f32 1.442695, %v7861_v28 }
0x4414   : > { %v7870_v30 = vpop.permute.xlu0 %7869 }
0x4415   : > { %10022 = vpow2.f32 %v7862_v29  ;;  %9672 = vmatpush3.msra.mxu1 %v7870_v30  ;;  %v8886_v29 = vld [vmem:[%s11230_s24 + $0x1] ss:$0 sm:$0xff] }
0x4416   : > { %9681 = vmatprep.subr.mxu1 %v10077_v6 }
0x4418   : > { %v8020_v40 = vpop.permute.xlu0 %8019 }
0x441f   : > { %v10023_v31 = vpop.eup %10022 }
0x4420   : > { %v7864_v33 = vsel %vm1120_vm2, %v10023_v31, 0.0 }
0x4421   : > { %7865 = vadd.xlane.f32.xlu1 %v7864_v33  ;;  %v8898_v33 = vld [vmem:[%s11228_s19 + $0x70] sm:$0xff] }
0x4432   : > { %8021 = vrot.lane.b32.xlu1 %v10965_v11, %s11224_s9 }
0x44ae   : > { %v7866_v34 = vpop.xlane.xlu1 %7865 }
0x44af   : > { %10024 = vrcp.f32 %v7866_v34  ;;  %v8899_v34 = vld [vmem:[%s11228_s19 + $0x78] sm:$0xff] }
0x44b2   : > { %v8022_v37 = vpop.permute.xlu1 %8021 }
0x44b9   : > { %v10025_v35 = vpop.eup %10024 }
0x44ba   : > { %v7868_v38 = vmul.f32 %v10025_v35, %v10023_v31  ;;  %v9855_v35 = vpack.c.bf16 %v8899_v34, %v8898_v33 }
0x44bc   : > { %9674 = vmatmul.mubr.msk.f32.vlgmr.msra.gmra.mrb[78].mxu1 %vm1120_vm2, %v7868_v38  ;;  %v8901_v38 = vld [vmem:[%s11231_s25 + $0x1] ss:$0 sm:$0xff] }
0x44bd   : > { %9682 = vmatpush3.xpose.msk.msra.mxu1 %vm1120_vm2, %v8022_v37  ;;  %9683 = vmatprep.mubr.msk.f32.mxu1 %vm10076_vm0, %v10077_v6 }
0x44be   : > { %9691 = vmatprep.subr.mxu1 %v10077_v6 }
0x44c0   : > { %9684 = vmatmul.mubr.msk.f32.vlgmr.msra.gmra.mrb[80].mxu1 %vm1120_vm2, %v8020_v40 }
0x44c1   : > { %9693 = vmatprep.mubr.msk.f32.mxu1 %vm10076_vm0, %v10077_v6  ;;  %9692 = vmatpush3.msra.mxu1 %v8866_v39  ;;  %v8500_v39 = vld [vmem:[%s10252_s20] sm:$0xff] }
0x44c2   : > { %9845 = vmatprep.subr.bf16.mxu1 %v10075_v3 }
0x458f   : > { %v7941_v44 = vpop.f32.mrb[78].mxu1 }
0x4590   : > { %v9675_v45 = vpop.f32.mrb[79].mxu1  ;;  %9679 = vmatmul.mubr.msk.f32.vlgmr.msra.gmra.mrb[84].mxu0 %vm1120_vm2, %v7941_v44 }
0x4591   : > { %9688 = vmatprep.mubr.msk.f32.mxu0 %vm10076_vm0, %v10077_v6  ;;  %v8903_v45 = vld [vmem:[%s11232_s29 + $0x1] ss:$0 sm:$0xff] }
0x4593   : > { %v8093_v5 = vpop.f32.mrb[80].mxu1 }
0x4594   : > { %v8097_v46 = vmul.f32 0.35355338, %v8093_v5  ;;  %v9685_v47 = vpop.f32.mrb[81].mxu1 }
0x4596   : > { %v8098_v49 = vsel %vm1120_vm2, %v8097_v46, -inf }
0x4597   : > { %8099 = vmax.xlane.f32.xlu1 %v8098_v49 }
0x4624   : > { %v8100_v50 = vpop.xlane.xlu1 %8099 }
0x4625   : > { %v8101_v51 = vsub.f32 %v8097_v46, %v8100_v50 }
0x4627   : > { %v8102_v54 = vmul.f32 1.442695, %v8101_v51 }
0x4629   : > { %10026 = vpow2.f32 %v8102_v54 }
0x4633   : > { %v10027_v55 = vpop.eup %10026 }
0x4634   : > { %v8104_v56 = vsel %vm1120_vm2, %v10027_v55, 0.0 }
0x4635   : > { %8105 = vadd.xlane.f32.xlu0 %v8104_v56 }
0x464b   : > { %8109 = vrot.lane.b32.xlu0 %v10965_v11, %s11226_s14 }
0x4663   : > { %v8014_v57 = vpop.f32.mrb[84].mxu0 }
0x4664   : > { %v8018_v59 = vadd.f32 %v8014_v57, %v7776_v23  ;;  %v9680_v60 = vpop.f32.mrb[85].mxu0  ;;  %v8897_v23 = vld [vmem:[%s11228_s19 + $0x68] sm:$0xff] }
0x4665   : > { %v9852_v24 = vpack.c.bf16 %v8897_v23, %v8896_v22  ;;  %v8501_v57 = vld [vmem:[%s10252_s20 + $0x8] sm:$0xff]  ;;  %v8502_v60 = vld [vmem:[%s10252_s20 + $0x10] sm:$0xff] }
0x46c2   : > { %v8106_v61 = vpop.xlane.xlu0 %8105 }
0x46c3   : > { %10028 = vrcp.f32 %v8106_v61  ;;  %v8503_v61 = vld [vmem:[%s10252_s20 + $0x18] sm:$0xff] }
0x46c6   : > { %v8110_v62 = vpop.permute.xlu0 %8109 }
0x46c7   : > { %9687 = vmatpush3.msra.mxu0 %v8110_v62  ;;  %v9861_v62 = vpack.c.bf16 %v8503_v61, %v8502_v60 }
0x46c8   : > { %9839 = vmatprep.subr.bf16.mxu0 %v10075_v3 }
0x46cd   : > { %v10029_v58 = vpop.eup %10028 }
0x46ce   : > { %v8108_v63 = vmul.f32 %v10029_v58, %v10027_v55 }
0x46d0   : > { %9689 = vmatmul.mubr.msk.f32.vlgmr.msra.gmra.mrb[86].mxu0 %vm1120_vm2, %v8108_v63 }
0x46d1   : > { %9704 = vmatprep.mubr.msk.f32.mxu0 %vm10076_vm0, %v10077_v6  ;;  %9841 = vmatpush3.bf16.msra.mxu0 %v9840_v16 }
0x46d2   : > { %9842 = vmatprep.subr.bf16.mxu0 %v10075_v3 }
0x47a3   : > { %v8181_v11 = vpop.f32.mrb[86].mxu0 }
0x47a4   : > { %v9690_v0 = vpop.f32.mrb[87].mxu0  ;;  %9694 = vmatmul.mubr.msk.f32.vlgmr.msra.gmra.mrb[82].mxu1 %vm1120_vm2, %v8181_v11 }
0x47a5   : > { %9723 = vmatprep.mubr.msk.f32.mxu1 %vm10076_vm0, %v10077_v6  ;;  %9847 = vmatpush3.bf16.msra.mxu1 %v9846_v20 }
0x47a6   : > { %9848 = vmatprep.subr.bf16.mxu1 %v10075_v3 }
0x47a9   : > { %9850 = vmatpush3.bf16.msra.mxu1 %v9849_v52 }
0x47aa   : > { %9851 = vmatprep.subr.bf16.mxu1 %v10075_v3 }
0x47ad   : > { %9853 = vmatpush3.bf16.msra.mxu1 %v9852_v24 }
0x47ae   : > { %9854 = vmatprep.subr.bf16.mxu1 %v10075_v3 }
0x47b1   : > { %9856 = vmatpush3.bf16.msra.mxu1 %v9855_v35 }
0x4877   : > { %v8254_v1 = vpop.f32.mrb[82].mxu1 }
0x4878   : > { %v8258_v2 = vadd.f32 %v8254_v1, %v8018_v59  ;;  %v9695_v4 = vpop.f32.mrb[83].mxu1  ;;  %v9858_v59 = vpack.c.bf16 %v8501_v57, %v8500_v39  ;;  %v8907_v1 = vld [vmem:[%s11233_s30 + $0x1] ss:$0 sm:$0xff] }
0x4879   : > { %v8908_v4 = vld [vmem:[%s10247_s12 + $0x1] ss:$0 sm:$0xff] }
0x487a   : > { %v8259_v7 = vadd.f32 %v8258_v2, %v10977_v42  ;;  %v8889_v42 = vld [vmem:[%s11227_s17 + $0x30] sm:$0xff] }
0x487b   : > { %v9843_v18 = vpack.c.bf16 %v8890_v17, %v8889_v42 }
0x487c   : > { %v8264_v8 = vsel %vm1039_vm1, %v8259_v7, 0.0 }
0x487d   : > { %8265 = vadd.xlane.f32.xlu1 %v8264_v8  ;;  %9844 = vmatpush3.bf16.msra.mxu0 %v9843_v18 }
0x487e   : > { %9857 = vmatprep.subr.bf16.mxu0 %v10075_v3 }
0x490a   : > { %v8266_v9 = vpop.xlane.xlu1 %8265 }
0x490b   : > { %v8267_v10 = vmul.f32 0.03125, %v8266_v9 }
0x490d   : > { %v8268_v12 = vsub.f32 %v8259_v7, %v8267_v10 }
0x490f   : > { %v8269_v13 = vmul.f32 %v8268_v12, %v8268_v12 }
0x4911   : > { %v8270_v48 = vsel %vm1039_vm1, %v8269_v13, 0.0 }
0x4912   : > { %8271 = vadd.xlane.f32.xlu1 %v8270_v48 }
0x499f   : > { %v8272_v25 = vpop.xlane.xlu1 %8271 }
0x49a0   : > { %v8273_v41 = vmul.f32 0.03125, %v8272_v25 }
0x49a2   : > { %v8274_v26 = vadd.f32 1e-05, %v8273_v41 }
0x49a4   : > { %10030 = vrsqrt.f32 %v8274_v26 }
0x49ae   : > { %v10031_v36 = vpop.eup %10030 }
0x49af   : > { %v8276_v28 = vmul.f32 %v10031_v36, %v8268_v12 }
0x49b1   : > { %v8283_v30 = vmul.f32 %v8885_v27, %v8276_v28 }
0x49b3   : > { %v8290_v31 = vadd.f32 %v8886_v29, %v8283_v30 }
0x49b5   : > { %9705 = vmatmul.mubr.msk.f32.vlgmr.msra.gmra.mrb[88].mxu0 %vm1039_vm1, %v8290_v31 }
0x49b6   : > { %9734 = vmatprep.mubr.msk.f32.mxu0 %vm10076_vm0, %v10077_v6  ;;  %9859 = vmatpush3.bf16.msra.mxu0 %v9858_v59 }
0x49b7   : > { %9860 = vmatprep.subr.bf16.mxu0 %v10075_v3  ;;  %v8909_v3 = vld [vmem:[%s10257_s27] ss:$0 sm:$0xff] }
0x49ba   : > { %9862 = vmatpush3.bf16.msra.mxu0 %v9861_v62 }
0x4a88   : > { %v8384_v37 = vpop.f32.mrb[88].mxu0 }
0x4a89   : > { %v8385_v40 = vadd.f32 %v8901_v38, %v8384_v37  ;;  %v9706_v43 = vpop.f32.mrb[89].mxu0 }
0x4a8b   : > { %v8388_v44 = vmax.f32 %v8385_v40, 0.0 }
0x4a8d   : > { %9724 = vmatmul.mubr.msk.f32.vlgmr.msra.gmra.mrb[84].mxu1 %vm2206_vm3, %v8388_v44 }
0x4b60   : > { %v8464_v5 = vpop.f32.mrb[84].mxu1 }
0x4b61   : > { %v8465_v46 = vadd.f32 %v8903_v45, %v8464_v5  ;;  %v9725_v47 = vpop.f32.mrb[85].mxu1 }
0x4b63   : > { %v8468_v6 = vadd.f32 %v8465_v46, %v8290_v31 }
0x4b65   : > { %v8473_v49 = vsel %vm1039_vm1, %v8468_v6, 0.0 }
0x4b66   : > { %8474 = vadd.xlane.f32.xlu1 %v8473_v49 }
0x4bf3   : > { %v8475_v50 = vpop.xlane.xlu1 %8474 }
0x4bf4   : > { %v8476_v51 = vmul.f32 0.03125, %v8475_v50 }
0x4bf6   : > { %v8477_v54 = vsub.f32 %v8468_v6, %v8476_v51 }
0x4bf8   : > { %v8478_v55 = vmul.f32 %v8477_v54, %v8477_v54 }
0x4bfa   : > { %v8479_v56 = vsel %vm1039_vm1, %v8478_v55, 0.0 }
0x4bfb   : > { %8480 = vadd.xlane.f32.xlu1 %v8479_v56 }
0x4c88   : > { %v8481_v58 = vpop.xlane.xlu1 %8480 }
0x4c89   : > { %v8482_v63 = vmul.f32 0.03125, %v8481_v58 }
0x4c8b   : > { %v8483_v11 = vadd.f32 1e-05, %v8482_v63 }
0x4c8d   : > { %10032 = vrsqrt.f32 %v8483_v11 }
0x4c97   : > { %v10033_v0 = vpop.eup %10032 }
0x4c98   : > { %v8485_v2 = vmul.f32 %v10033_v0, %v8477_v54 }
0x4c9a   : > { %v8492_v7 = vmul.f32 %v8907_v1, %v8485_v2 }
0x4c9c   : > { %v8499_v8 = vadd.f32 %v8908_v4, %v8492_v7 }
0x4c9e   : > { %9735 = vmatmul.mubr.msk.f32.vlgmr.msra.gmra.mrb[90].mxu0 %vm1039_vm1, %v8499_v8 }
0x4d71   : > { %v8580_v9 = vpop.f32.mrb[90].mxu0 }
0x4d72   : > { %v8581_v10 = vadd.f32 %v8909_v3, %v8580_v9  ;;  %v9736_v12 = vpop.f32.mrb[91].mxu0 }
0x4d74   : > { %8584 = vst [vmem:[%s1026_s5] sm:$0xff] %v8581_v10 }
0x4d75 PF: > { %s77_s7 = sadd.s32 1, %s10040_s7  }
0x4d76   : > { %p74_p4 = scmp.ge.s32.totalorder %s77_s7, 4  }
0x4d78   :  { %76 = sbr.rel (!%p74_p4) target bundleno = 71 (0x47), region = 247 }

</bundles_post_ra>
